<compile_context>
chip_gen: v7x
topology: tpu7x:2x2x1
jax: 0.10.0
libtpu: 0.0.40
codegen_flags: <defaults>
</compile_context>

<pallas_src>
import functools

import jax
import jax.numpy as jnp
from jax.experimental import pallas as pl
from jax.experimental.pallas import tpu as pltpu


# ----------------------------------------------------------------------------
# Kernel: one grid step == one spatial block's SupConLoss.
# ----------------------------------------------------------------------------
def _supcon_block_kernel(valid_sref, f_ref, lcol_ref, lrow_ref, loss_ref, *,
                         inv_temp):
    b = pl.program_id(0)
    is_valid = valid_sref[b] != 0          # block_labels.sum() != 0

    @pl.when(is_valid)
    def _compute():
        # (N, C) pixel features of this block, (view, batch, h, w)-major rows.
        f = f_ref[0].astype(jnp.float32)
        lcol = lcol_ref[0]                 # (N, 1) int32 labels
        lrow = lrow_ref[0]                 # (1, N) int32 labels

        # logits[i, j] = <f_i, f_j> / temperature  (== F.conv2d trick in torch)
        logits = jax.lax.dot_general(
            f, f, (((1,), (1,)), ((), ())),
            preferred_element_type=jnp.float32) * inv_temp        # (N, N)

        n = logits.shape[0]
        rows = jax.lax.broadcasted_iota(jnp.int32, (n, n), 0)
        cols = jax.lax.broadcasted_iota(jnp.int32, (n, n), 1)
        off_diag = rows != cols                                   # logits_mask

        logits_mask = jnp.where(off_diag, 1.0, 0.0)
        pos_mask = jnp.where(jnp.logical_and(lcol == lrow, off_diag), 1.0, 0.0)

        exp_logits = jnp.exp(logits) * logits_mask
        denom = jnp.sum(exp_logits, axis=1, keepdims=True)        # (N, 1)
        log_prob = logits - jnp.log(denom)

        pos_cnt = jnp.sum(pos_mask, axis=1, keepdims=True)        # (N, 1)
        pos_sum = jnp.sum(pos_mask * log_prob, axis=1, keepdims=True)
        # Safe divide; identical to torch whenever a row has >= 1 positive.
        per_pix = -pos_sum / jnp.maximum(pos_cnt, 1.0)            # (N, 1)

        non_bg = (lcol != 0).astype(jnp.float32)                  # (N, 1)
        n_fg = jnp.sum(non_bg)
        loss_ref[b] = jnp.sum(per_pix * non_bg) / jnp.maximum(n_fg, 1.0)

    @pl.when(jnp.logical_not(is_valid))
    def _skip():
        loss_ref[b] = jnp.float32(0.0)     # skipped block contributes nothing


# ----------------------------------------------------------------------------
# Wrapper: BlockConLoss.forward (labeled path).
# ----------------------------------------------------------------------------
@functools.partial(jax.jit, static_argnames=("temperature", "block_size"))
def block_con_loss(features, labels, *, temperature=0.7, block_size=8):
    """features: (bsz, n_views, C, H, W); labels: (bsz, n_views, H, W) ints."""
    B, V, C, H, W = features.shape
    assert H % block_size == 0 and W % block_size == 0
    d_h, d_w = H // block_size, W // block_size
    num_blocks = d_h * d_w
    n = V * B * block_size * block_size
    assert n % 8 == 0, "pixel count per block must be sublane-aligned"

    # ---- layout-only prep (XLA): slice blocks + flatten to torch's ordering.
    x = features.astype(jnp.float32).reshape(B, V, C, d_h, block_size, d_w,
                                             block_size)
    x = x.transpose(3, 5, 1, 0, 4, 6, 2)       # (dh, dw, V, B, bh, bw, C)
    feats_blocks = x.reshape(num_blocks, n, C)

    l = labels.astype(jnp.int32).reshape(B, V, d_h, block_size, d_w, block_size)
    l = l.transpose(2, 4, 1, 0, 3, 5)           # (dh, dw, V, B, bh, bw)
    labels_blocks = l.reshape(num_blocks, n)
    labels_col = labels_blocks[:, :, None]      # (nb, N, 1)
    labels_row = labels_blocks[:, None, :]      # (nb, 1, N)

    # Per-block skip flag (block_labels.sum() == 0 -> skipped), SMEM-prefetched.
    valid = (labels_blocks.sum(axis=1) != 0).astype(jnp.int32)    # (nb,)

    kernel = functools.partial(_supcon_block_kernel,
                               inv_temp=1.0 / float(temperature))

    losses = pl.pallas_call(
        kernel,
        out_shape=jax.ShapeDtypeStruct((num_blocks,), jnp.float32),
        grid_spec=pltpu.PrefetchScalarGridSpec(
            num_scalar_prefetch=1,
            grid=(num_blocks,),
            in_specs=[
                pl.BlockSpec((1, n, C), lambda b, v_ref: (b, 0, 0)),
                pl.BlockSpec((1, n, 1), lambda b, v_ref: (b, 0, 0)),
                pl.BlockSpec((1, 1, n), lambda b, v_ref: (b, 0, 0)),
            ],
            # Scalar per-block losses live (and are written) in SMEM,
            # resident across the whole grid -> single writeback, no masked vst.
            out_specs=pl.BlockSpec(memory_space=pltpu.MemorySpace.SMEM),
        ),
        compiler_params=pltpu.CompilerParams(
            dimension_semantics=("arbitrary",)),
    )(valid, feats_blocks, labels_col, labels_row)

    # Mean over the non-skipped blocks; 0.0 if every block was skipped.
    n_valid = valid.sum()
    total = jnp.where(valid == 1, losses, 0.0).sum()
    return jnp.where(n_valid > 0,
                     total / jnp.maximum(n_valid, 1).astype(jnp.float32),
                     jnp.float32(0.0))


# ----------------------------------------------------------------------------
# Pure-JAX reference mirroring the PyTorch module (labeled path).
# ----------------------------------------------------------------------------
def _supcon_ref(block_features, block_labels, temperature):
    B, V, C, h, w = block_features.shape
    cf = jnp.concatenate([block_features[:, v] for v in range(V)], axis=0)
    feats = cf.transpose(0, 2, 3, 1).reshape(-1, C)
    logits = jnp.matmul(feats, feats.T,
                        precision=jax.lax.Precision.HIGHEST) / temperature
    lab = jnp.concatenate([block_labels[:, v] for v in range(V)],
                          axis=0).reshape(-1, 1)
    mask = (lab == lab.T).astype(jnp.float32)
    n = logits.shape[0]
    logits_mask = 1.0 - jnp.eye(n, dtype=jnp.float32)
    mask = mask * logits_mask
    exp_logits = jnp.exp(logits) * logits_mask
    log_prob = logits - jnp.log(exp_logits.sum(axis=1, keepdims=True))
    mean_log_prob_pos = (mask * log_prob).sum(axis=1) / mask.sum(axis=1)
    loss = -mean_log_prob_pos
    non_bg = (lab.reshape(-1) != 0).astype(jnp.float32)
    return (loss * non_bg).sum() / non_bg.sum()


def _reference_block_con_loss(features, labels, temperature, block_size):
    H = features.shape[-1]
    d = H // block_size
    losses = []
    for i in range(d):
        for j in range(d):
            bf = features[:, :, :, i * block_size:(i + 1) * block_size,
                          j * block_size:(j + 1) * block_size]
            bl = labels[:, :, i * block_size:(i + 1) * block_size,
                        j * block_size:(j + 1) * block_size]
            if int(bl.sum()) == 0:
                continue
            losses.append(_supcon_ref(bf, bl, temperature))
    if not losses:
        return jnp.float32(0.0)
    return jnp.stack(losses).mean()


if __name__ == "__main__":
    key = jax.random.PRNGKey(0)
    B, V, C, H, W = 2, 2, 16, 16, 16
    block_size = 8

    feats = jax.random.normal(key, (B, V, C, H, W), dtype=jnp.float32)
    # Embedding-style inputs: L2-normalize along channels (keeps exp bounded).
    feats = feats / (jnp.linalg.norm(feats, axis=2, keepdims=True) + 1e-12)

    # Segmentation-style labels, different per view; bottom-right block is all
    # background so it exercises the skip ("continue") path.
    hh = jnp.arange(H)[:, None]
    ww = jnp.arange(W)[None, :]
    lab_v0 = (hh // 2 + ww // 2) % 3
    lab_v1 = (hh // 2 + ww // 2 + 1) % 3
    labels = jnp.stack([jnp.stack([lab_v0, lab_v1], axis=0)] * B, axis=0)
    labels = labels.at[:, :, block_size:, block_size:].set(0)
    labels = labels.astype(jnp.int32)

    loss = jax.block_until_ready(
        block_con_loss(feats, labels, temperature=0.7, block_size=block_size))
    ref = jax.block_until_ready(
        _reference_block_con_loss(feats, labels, 0.7, block_size))

    assert bool(jnp.isfinite(loss)), loss
    assert jnp.allclose(loss, ref, rtol=1e-3, atol=1e-3), (loss, ref)
    print("KERNEL_OK")
</pallas_src>

<mosaic_0001>
module attributes {stable_mosaic.version = 11 : i64} {
  func.func @_supcon_block_kernel(%arg0: i32, %arg1: memref<4xi32, #tpu.memory_space<smem>>, %arg2: memref<1x256x16xf32, #tpu.memory_space<vmem>>, %arg3: memref<1x256x1xi32, #tpu.memory_space<vmem>>, %arg4: memref<1x1x256xi32, #tpu.memory_space<vmem>>, %arg5: memref<4xf32, #tpu.memory_space<smem>>) attributes {dimension_semantics = [#tpu.dimension_semantics<arbitrary>], iteration_bounds = array<i64: 4>, scalar_prefetch = 1 : i64, scratch_operands = 0 : i64, tpu.core_type = #tpu.core_type<tc>, window_params = [{transform_indices = @transform_0, window_bounds = array<i64: 1, 256, 16>}, {transform_indices = @transform_1, window_bounds = array<i64: 1, 256, 1>}, {transform_indices = @transform_2, window_bounds = array<i64: 1, 1, 256>}, {transform_indices = @transform_3, window_bounds = array<i64: 4>}]} {
    %0 = arith.index_cast %arg0 : i32 to index
    %1 = memref.load %arg1[%0] : memref<4xi32, #tpu.memory_space<smem>>
    %c0_i32 = arith.constant 0 : i32
    %2 = arith.cmpi ne, %1, %c0_i32 : i32
    %3 = arith.extui %2 : i1 to i32
    %c0_i32_0 = arith.constant 0 : i32
    %4 = arith.cmpi ne, %3, %c0_i32_0 : i32
    scf.if %4 {
      %c0 = arith.constant 0 : index
      %c0_2 = arith.constant 0 : index
      %c0_3 = arith.constant 0 : index
      %8 = vector.load %arg2[%c0, %c0_2, %c0_3] : memref<1x256x16xf32, #tpu.memory_space<vmem>>, vector<1x256x16xf32>
      %9 = vector.shape_cast %8 : vector<1x256x16xf32> to vector<256x16xf32>
      %c0_4 = arith.constant 0 : index
      %c0_5 = arith.constant 0 : index
      %c0_6 = arith.constant 0 : index
      %10 = vector.load %arg3[%c0_4, %c0_5, %c0_6] : memref<1x256x1xi32, #tpu.memory_space<vmem>>, vector<1x256x1xi32>
      %11 = vector.shape_cast %10 : vector<1x256x1xi32> to vector<256x1xi32>
      %c0_7 = arith.constant 0 : index
      %c0_8 = arith.constant 0 : index
      %c0_9 = arith.constant 0 : index
      %12 = vector.load %arg4[%c0_7, %c0_8, %c0_9] : memref<1x1x256xi32, #tpu.memory_space<vmem>>, vector<1x1x256xi32>
      %13 = vector.shape_cast %12 : vector<1x1x256xi32> to vector<1x256xi32>
      %cst = arith.constant dense<0.000000e+00> : vector<256x256xf32>
      %14 = tpu.matmul %9, %9, %cst {dimension_numbers = #tpu.dot_dimension_numbers<[1], [1], [0], [0], [0, 0, 1, 0], [], []>} : vector<256x16xf32>, vector<256x16xf32>, vector<256x256xf32> -> vector<256x256xf32>
      %cst_10 = arith.constant 1.42857146 : f32
      %15 = vector.broadcast %cst_10 : f32 to vector<256x256xf32>
      %16 = arith.mulf %14, %15 : vector<256x256xf32>
      %17 = tpu.iota {dimensions = array<i32: 0>} : vector<256x256xi32>
      %18 = tpu.iota {dimensions = array<i32: 1>} : vector<256x256xi32>
      %19 = arith.cmpi ne, %17, %18 : vector<256x256xi32>
      %cst_11 = arith.constant 1.000000e+00 : f32
      %cst_12 = arith.constant 0.000000e+00 : f32
      %20 = vector.broadcast %cst_11 : f32 to vector<256x256xf32>
      %21 = vector.broadcast %cst_12 : f32 to vector<256x256xf32>
      %22 = arith.select %19, %20, %21 : vector<256x256xi1>, vector<256x256xf32>
      %23 = vector.broadcast %11 : vector<256x1xi32> to vector<256x256xi32>
      %24 = vector.broadcast %13 : vector<1x256xi32> to vector<256x256xi32>
      %25 = arith.cmpi eq, %23, %24 : vector<256x256xi32>
      %26 = arith.andi %25, %19 : vector<256x256xi1>
      %cst_13 = arith.constant 1.000000e+00 : f32
      %cst_14 = arith.constant 0.000000e+00 : f32
      %27 = vector.broadcast %cst_13 : f32 to vector<256x256xf32>
      %28 = vector.broadcast %cst_14 : f32 to vector<256x256xf32>
      %29 = arith.select %26, %27, %28 : vector<256x256xi1>, vector<256x256xf32>
      %30 = math.exp %16 : vector<256x256xf32>
      %31 = arith.mulf %30, %22 : vector<256x256xf32>
      %cst_15 = arith.constant dense<0.000000e+00> : vector<256xf32>
      %32 = vector.multi_reduction <add>, %31, %cst_15 [1] : vector<256x256xf32> to vector<256xf32>
      %33 = vector.shape_cast %32 : vector<256xf32> to vector<256x1xf32>
      %34 = math.log %33 : vector<256x1xf32>
      %35 = vector.broadcast %34 : vector<256x1xf32> to vector<256x256xf32>
      %36 = arith.subf %16, %35 : vector<256x256xf32>
      %cst_16 = arith.constant dense<0.000000e+00> : vector<256xf32>
      %37 = vector.multi_reduction <add>, %29, %cst_16 [1] : vector<256x256xf32> to vector<256xf32>
      %38 = vector.shape_cast %37 : vector<256xf32> to vector<256x1xf32>
      %39 = arith.mulf %29, %36 : vector<256x256xf32>
      %cst_17 = arith.constant dense<0.000000e+00> : vector<256xf32>
      %40 = vector.multi_reduction <add>, %39, %cst_17 [1] : vector<256x256xf32> to vector<256xf32>
      %41 = vector.shape_cast %40 : vector<256xf32> to vector<256x1xf32>
      %cst_18 = arith.constant 0.000000e+00 : f32
      %42 = vector.broadcast %cst_18 : f32 to vector<256x1xf32>
      %43 = arith.subf %42, %41 : vector<256x1xf32>
      %cst_19 = arith.constant 1.000000e+00 : f32
      %44 = vector.broadcast %cst_19 : f32 to vector<256x1xf32>
      %45 = arith.maximumf %38, %44 : vector<256x1xf32>
      %46 = arith.divf %43, %45 : vector<256x1xf32>
      %c0_i32_20 = arith.constant 0 : i32
      %47 = vector.broadcast %c0_i32_20 : i32 to vector<256x1xi32>
      %48 = arith.cmpi ne, %11, %47 : vector<256x1xi32>
      %49 = arith.extui %48 : vector<256x1xi1> to vector<256x1xi32>
      %50 = arith.sitofp %49 : vector<256x1xi32> to vector<256x1xf32>
      %51 = vector.shape_cast %50 : vector<256x1xf32> to vector<1x256x1xf32>
      %cst_21 = arith.constant dense<0.000000e+00> : vector<1xf32>
      %52 = vector.multi_reduction <add>, %51, %cst_21 [1, 2] : vector<1x256x1xf32> to vector<1xf32>
      %53 = vector.shape_cast %52 : vector<1xf32> to vector<1x1x1xf32>
      %54 = vector.extract %53[0, 0, 0] : f32 from vector<1x1x1xf32>
      %55 = arith.mulf %46, %50 : vector<256x1xf32>
      %56 = vector.shape_cast %55 : vector<256x1xf32> to vector<1x256x1xf32>
      %cst_22 = arith.constant dense<0.000000e+00> : vector<1xf32>
      %57 = vector.multi_reduction <add>, %56, %cst_22 [1, 2] : vector<1x256x1xf32> to vector<1xf32>
      %58 = vector.shape_cast %57 : vector<1xf32> to vector<1x1x1xf32>
      %59 = vector.extract %58[0, 0, 0] : f32 from vector<1x1x1xf32>
      %cst_23 = arith.constant 1.000000e+00 : f32
      %60 = arith.maximumf %54, %cst_23 : f32
      %61 = arith.divf %59, %60 : f32
      %62 = arith.index_cast %arg0 : i32 to index
      %63 = memref.load %arg5[%62] : memref<4xf32, #tpu.memory_space<smem>>
      memref.store %61, %arg5[%62] : memref<4xf32, #tpu.memory_space<smem>>
    } else {
    }
    %true = arith.constant true
    %5 = arith.xori %2, %true : i1
    %6 = arith.extui %5 : i1 to i32
    %c0_i32_1 = arith.constant 0 : i32
    %7 = arith.cmpi ne, %6, %c0_i32_1 : i32
    scf.if %7 {
      %cst = arith.constant 0.000000e+00 : f32
      %8 = arith.index_cast %arg0 : i32 to index
      %9 = memref.load %arg5[%8] : memref<4xf32, #tpu.memory_space<smem>>
      memref.store %cst, %arg5[%8] : memref<4xf32, #tpu.memory_space<smem>>
    } else {
    }
    return
  }
  func.func @transform_0(%arg0: i32, %arg1: memref<4xi32, #tpu.memory_space<smem>>) -> (i32, i32, i32) {
    %c0_i32 = arith.constant 0 : i32
    %c0_i32_0 = arith.constant 0 : i32
    %c0_i32_1 = arith.constant 0 : i32
    return %arg0, %c0_i32, %c0_i32_0 : i32, i32, i32
  }
  func.func @transform_1(%arg0: i32, %arg1: memref<4xi32, #tpu.memory_space<smem>>) -> (i32, i32, i32) {
    %c0_i32 = arith.constant 0 : i32
    %c0_i32_0 = arith.constant 0 : i32
    %c0_i32_1 = arith.constant 0 : i32
    return %arg0, %c0_i32, %c0_i32_0 : i32, i32, i32
  }
  func.func @transform_2(%arg0: i32, %arg1: memref<4xi32, #tpu.memory_space<smem>>) -> (i32, i32, i32) {
    %c0_i32 = arith.constant 0 : i32
    %c0_i32_0 = arith.constant 0 : i32
    %c0_i32_1 = arith.constant 0 : i32
    return %arg0, %c0_i32, %c0_i32_0 : i32, i32, i32
  }
  func.func @transform_3(%arg0: i32, %arg1: memref<4xi32, #tpu.memory_space<smem>>) -> i32 {
    %c0_i32 = arith.constant 0 : i32
    %c0_i32_0 = arith.constant 0 : i32
    return %c0_i32 : i32
  }
}

</mosaic_0001>

<bundles_post_ra>
// kernel: block_con_loss.1
= control target key start
LH: loop header
LB: loop body
LE: loop exit
PB: predicated region body
PF: predicated region fallthrough
CT: control target
= control target key end

     0   :  { %s5269_s0 = inlined_call_operand.vmem [shape: s32[4], index: 0, kind: input, shape index: {}]   ;;  %s5270_s1 = inlined_call_operand.vmem [shape: f32[4,256,16], index: 1, kind: input, shape index: {}]   ;;  %s5271_s2 = inlined_call_operand.vmem [shape: s32[4,256,1], index: 2, kind: input, shape index: {}]   ;;  %s5272_s3 = inlined_call_operand.vmem [shape: s32[4,1,256], index: 3, kind: input, shape index: {}]   ;;  %s5273_s4 = inlined_call_operand.vmem [shape: f32[4], index: 4, kind: output, shape index: {}]  }
   0x1   :  { %s9_s17 = sshll.u32 %s5269_s0, 4  ;;  %s10_s17 = int_to_ptr.vmem [resolvable:$true] %s9_s17 }
   0x2   :  { %s2892_s18 = scalar_lea.vmem %s10_s17, 16  ;;  %p2897_p1 = scmp.lt.s32.totalorder %s10_s17, %s10_s17 }
   0x3   :  { %p2893_p0 = scmp.ne.s32.totalorder %s10_s17, %s2892_s18  ;;  %p2898_p2 = scmp.lt.s32.totalorder %s2892_s18, %s2892_s18 }
   0x5   :  { %p2899_p3 = por %p2898_p2, %p2897_p1 }
   0x7   :  { %p2900_p4 = pnand %p2899_p3, %p2893_p0 }
   0x9   :  { %2903 = shalt.err (!%p2900_p4)  }
   0xa   :  { %s2932_s19 = smov [#allocation3]  }
   0xb   :  { %12 = dma.vmem_to_smem %s10_s17, 16, %s2932_s19, [#allocation2] }
   0xc   :  { %2922 = dma.done.wait [#allocation2], 16 }
   0xd   :  { %2923 = vsyncadd [#allocation2], 4294967280 }
   0xe   :  { %14 = sfence }
   0xf   :  { %15 = vsyncpa [#allocation5], 0  ;;  %s2966_s20 = smov 0  }
  0x10 LB: > { %s2972_s0 = sadd.s32 4294967295, %s2930_s20   ;;  %p2311_p5 = scmp.ge.s32.totalorder %s2930_s20, 1  ;;  %s2930_s20 = sphi %s2966_s20, %s21_s20  }
  0x11   : > { %p159_p6 = scmp.lt.s32.totalorder %s2930_s20, 5 }
  0x13   : > { %p160_p7 = pnand %p2311_p5, %p159_p6 }
  0x14   : > { %p187_p8 = scmp.lt.s32.totalorder (!%p160_p7), %s2972_s0, 3  ;;  %s2978_s21 = sld [smem:[#allocation3 + %s2972_s0]] (!%p160_p7) }
  0x15   : > { %163 = sbr.rel (%p160_p7) target bundleno = 1087 (0x43f), region = 32 }
  0x1a   : > { %p2317_p9 = scmp.eq.s32.totalorder (!%p160_p7), %s2978_s21, 0 }
  0x1c   : > { %s188_s22 = scalar_select %p187_p8, %s2972_s0, 3 }
  0x1d   : > { %205 = sbr.rel (%p2317_p9) target bundleno = 1069 (0x42d), region = 36 }
  0x1e   : > { %s2421_s23 = sshll.u32 %s188_s22, 8  ;;  %s2316_s24 = sshll.u32 %s188_s22, 1 }
  0x1f   : > { %s2984_s27 = scalar_lea.vmem %s5270_s1, %s2421_s23  ;;  %s2989_s30 = scalar_lea.vmem %s5271_s2, %s2421_s23 }
  0x20   : > { %s2994_s7 = scalar_lea.vmem %s5272_s3, %s2316_s24 }
  0x24   : > { %v3000_v0 = vld [vmem:[%s2984_s27 + $0x80] sm:$0xff]  ;;  %v3003_v1 = vld [vmem:[%s2984_s27 + $0x88] sm:$0xff]  ;;  %vm271_vm0 = vcmask 130048   ;;  %v3020_v6 = vld [vmem:[%s2984_s27 + $0x90] sm:$0xff]  ;;  %v2933_v49 = vmov 0   ;;  %v689_v50 = vlaneseq  ;;  %s2935_s9 = smov 1.0  }
  0x25   : > { %v3006_v2 = vld [vmem:[%s2984_s27] sm:$0xff]  ;;  %v2523_v3 = vpack.c.bf16 %v3003_v1, %v3000_v0  ;;  %vm3012_vm1 = vmpackc.low %vm271_vm0, %vm271_vm0  ;;  %v3017_v5 = vld [vmem:[%s2984_s27 + $0x8] sm:$0xff]  ;;  %2491 = vmatprep.mubr.msk.f32.mxu1 %vm271_vm0, %v3000_v0  ;;  %2616 = vset.pattern.permute.xlu1 %v2933_v49  ;;  %s2423_s13 = scalar_lea.smem [#allocation4], %s2930_s20 }
  0x26   : > { %2459 = vmatprep.mubr.msk.f32.mxu0 %vm271_vm0, %v3006_v2  ;;  %v2526_v7 = vpack.c.bf16 %v3017_v5, %v3006_v2  ;;  %v3029_v8 = vld [vmem:[%s2984_s27 + $0x98] sm:$0xff]  ;;  %v3046_v10 = vld [vmem:[%s2984_s27 + $0x10] sm:$0xff]  ;;  %v3052_v12 = vld [vmem:[%s2984_s27 + $0xa0] sm:$0xff]  ;;  %2617 = vset.pattern.permute.xlu0 %v2933_v49  ;;  %v3320_v51 = vshrl.u32 %v689_v50, 7  ;;  %v3322_v52 = vand.u32 127, %v689_v50  ;;  %s2424_s14 = scalar_lea.smem %s2423_s13, 4294967295 [#allocation4] }
  0x27   : > { %2525 = vmatprep.subr.msk.bf16.mxu0 %vm3012_vm1, %v2523_v3  ;;  %2571 = vmatprep.subr.msk.bf16.mxu1 %vm3012_vm1, %v2523_v3  ;;  %v2529_v9 = vpack.c.bf16 %v3029_v8, %v3020_v6  ;;  %v3049_v11 = vld [vmem:[%s2984_s27 + $0x18] sm:$0xff]  ;;  %v3055_v13 = vld [vmem:[%s2984_s27 + $0xa8] sm:$0xff]  ;;  %v3070_v16 = vld [vmem:[%s2984_s27 + $0x20] sm:$0xff] }
  0x28   : > { %2528 = vmatpush3.bf16.xpose.msk.msra.mxu0 %vm3012_vm1, %v2526_v7  ;;  %2579 = vmatpush3.bf16.xpose.msk.msra.mxu1 %vm3012_vm1, %v2526_v7  ;;  %v2532_v14 = vpack.c.bf16 %v3049_v11, %v3046_v10  ;;  %v2535_v15 = vpack.c.bf16 %v3055_v13, %v3052_v12  ;;  %v3073_v17 = vld [vmem:[%s2984_s27 + $0x28] sm:$0xff]  ;;  %v3076_v18 = vld [vmem:[%s2984_s27 + $0xb0] sm:$0xff]  ;;  %v3079_v19 = vld [vmem:[%s2984_s27 + $0xb8] sm:$0xff]  ;;  %v3325_v53 = vadd.s32 128, %v3320_v51  ;;  %v3328_v54 = vadd.s32 128, %v3322_v52 }
  0x29   : > { %2531 = vmatprep.subr.msk.bf16.mxu0 %vm3012_vm1, %v2529_v9  ;;  %2572 = vmatprep.subr.msk.bf16.mxu1 %vm3012_vm1, %v2529_v9  ;;  %v2538_v20 = vpack.c.bf16 %v3073_v17, %v3070_v16  ;;  %v2541_v21 = vpack.c.bf16 %v3079_v19, %v3076_v18  ;;  %v3094_v22 = vld [vmem:[%s2984_s27 + $0x30] sm:$0xff]  ;;  %v3097_v23 = vld [vmem:[%s2984_s27 + $0x38] sm:$0xff]  ;;  %v3100_v24 = vld [vmem:[%s2984_s27 + $0xc0] sm:$0xff]  ;;  %v3331_v55 = vadd.s32 8, %v3320_v51  ;;  %v3334_v56 = vadd.s32 136, %v3320_v51 }
  0x2a   : > { %v3103_v25 = vld [vmem:[%s2984_s27 + $0xc8] sm:$0xff]  ;;  %v2544_v26 = vpack.c.bf16 %v3097_v23, %v3094_v22  ;;  %v3118_v28 = vld [vmem:[%s2984_s27 + $0x40] sm:$0xff]  ;;  %v3124_v30 = vld [vmem:[%s2984_s27 + $0xd0] sm:$0xff]  ;;  %5464 = vst [vmem:[#allocation8_spill] sm:$0xff] %v3325_v53  ;;  %v3337_v57 = vadd.s32 16, %v3320_v51  ;;  %v3340_v58 = vadd.s32 144, %v3320_v51  ;;  %vm725_vm2 = vcmp.ne.s32.totalorder %v3320_v51, %v3322_v52 }
  0x2b   : > { %v2547_v27 = vpack.c.bf16 %v3103_v25, %v3100_v24  ;;  %v3121_v29 = vld [vmem:[%s2984_s27 + $0x48] sm:$0xff]  ;;  %v3127_v31 = vld [vmem:[%s2984_s27 + $0xd8] sm:$0xff]  ;;  %v3142_v34 = vld [vmem:[%s2984_s27 + $0x50] sm:$0xff]  ;;  %5465 = vst [vmem:[#allocation9_spill] sm:$0xff] %v3328_v54  ;;  %v3343_v59 = vadd.s32 24, %v3320_v51  ;;  %v3346_v60 = vadd.s32 152, %v3320_v51  ;;  %vm5311_vm3 = vcmp.ne.s32.totalorder %v3325_v53, %v3328_v54 }
  0x2c   : > { %v2550_v32 = vpack.c.bf16 %v3121_v29, %v3118_v28  ;;  %v2553_v33 = vpack.c.bf16 %v3127_v31, %v3124_v30  ;;  %v3145_v35 = vld [vmem:[%s2984_s27 + $0x58] sm:$0xff]  ;;  %v3148_v36 = vld [vmem:[%s2984_s27 + $0xe0] sm:$0xff]  ;;  %v3151_v37 = vld [vmem:[%s2984_s27 + $0xe8] sm:$0xff]  ;;  %5466 = vst [vmem:[#allocation10_spill] sm:$0xff] %v3331_v55  ;;  %v3349_v61 = vadd.s32 32, %v3320_v51  ;;  %v3354_v62 = vadd.s32 160, %v3320_v51 }
  0x2d   : > { %v2556_v38 = vpack.c.bf16 %v3145_v35, %v3142_v34  ;;  %v2559_v39 = vpack.c.bf16 %v3151_v37, %v3148_v36  ;;  %v3166_v40 = vld [vmem:[%s2984_s27 + $0x60] sm:$0xff]  ;;  %v3169_v41 = vld [vmem:[%s2984_s27 + $0x68] sm:$0xff]  ;;  %v3172_v42 = vld [vmem:[%s2984_s27 + $0xf0] sm:$0xff]  ;;  %5467 = vst [vmem:[#allocation11_spill] sm:$0xff] %v3334_v56  ;;  %vm727_vm4 = vcmp.ne.s32.totalorder %v3331_v55, %v3322_v52  ;;  %v3361_v63 = vadd.s32 40, %v3320_v51 }
  0x2e   : > { %v3175_v43 = vld [vmem:[%s2984_s27 + $0xf8] sm:$0xff]  ;;  %v2562_v44 = vpack.c.bf16 %v3169_v41, %v3166_v40  ;;  %v220_v46 = vld [vmem:[%s2984_s27 + $0x70] sm:$0xff]  ;;  %5468 = vst [vmem:[#allocation12_spill] sm:$0xff] %v3337_v57  ;;  %5469 = vst [vmem:[#allocation13_spill] sm:$0xff] %v3340_v58  ;;  %vm5361_vm5 = vcmp.ne.s32.totalorder %v3334_v56, %v3328_v54  ;;  %vm729_vm6 = vcmp.ne.s32.totalorder %v3337_v57, %v3322_v52 }
  0x2f   : > { %v2565_v45 = vpack.c.bf16 %v3175_v43, %v3172_v42  ;;  %v3191_v47 = vld [vmem:[%s2984_s27 + $0x78] sm:$0xff]  ;;  %5470 = vst [vmem:[#allocation14_spill] sm:$0xff] %v3343_v59  ;;  %5471 = vst [vmem:[#allocation15_spill] sm:$0xff] %v3346_v60  ;;  %vm5307_vm7 = vcmp.ne.s32.totalorder %v3340_v58, %v3328_v54  ;;  %vm731_vm8 = vcmp.ne.s32.totalorder %v3343_v59, %v3322_v52 }
  0x30   : > { %2534 = vmatpush3.bf16.xpose.msk.msra.mxu0 %vm3012_vm1, %v2532_v14  ;;  %2580 = vmatpush3.bf16.xpose.msk.msra.mxu1 %vm3012_vm1, %v2532_v14  ;;  %v2568_v48 = vpack.c.bf16 %v3191_v47, %v220_v46  ;;  %5472 = vst [vmem:[#allocation16_spill] sm:$0xff] %v3349_v61  ;;  %5473 = vst [vmem:[#allocation17_spill] sm:$0xff] %v3354_v62  ;;  %vm5313_vm9 = vcmp.ne.s32.totalorder %v3346_v60, %v3328_v54  ;;  %v3453_v14 = vadd.s32 176, %v3320_v51 }
  0x31   : > { %2537 = vmatprep.subr.msk.bf16.mxu0 %vm3012_vm1, %v2535_v15  ;;  %2573 = vmatprep.subr.msk.bf16.mxu1 %vm3012_vm1, %v2535_v15  ;;  %5474 = vst [vmem:[#allocation18_spill] sm:$0xff] %v3361_v63  ;;  %vm733_vm10 = vcmp.ne.s32.totalorder %v3349_v61, %v3322_v52  ;;  %vm5274_vm11 = vcmp.ne.s32.totalorder %v3354_v62, %v3328_v54 }
  0x32   : > { %vm735_vm12 = vcmp.ne.s32.totalorder %v3361_v63, %v3322_v52  ;;  %5478 = vst [vmem:[#allocation22_spill] sm:$0xff] %v3453_v14 }
  0x38   : > { %2540 = vmatpush3.bf16.xpose.msk.msra.mxu0 %vm3012_vm1, %v2538_v20  ;;  %2581 = vmatpush3.bf16.xpose.msk.msra.mxu1 %vm3012_vm1, %v2538_v20 }
  0x39   : > { %2543 = vmatprep.subr.msk.bf16.mxu0 %vm3012_vm1, %v2541_v21  ;;  %2574 = vmatprep.subr.msk.bf16.mxu1 %vm3012_vm1, %v2541_v21 }
  0x40   : > { %2546 = vmatpush3.bf16.xpose.msk.msra.mxu0 %vm3012_vm1, %v2544_v26  ;;  %2582 = vmatpush3.bf16.xpose.msk.msra.mxu1 %vm3012_vm1, %v2544_v26 }
  0x41   : > { %2549 = vmatprep.subr.msk.bf16.mxu0 %vm3012_vm1, %v2547_v27  ;;  %2575 = vmatprep.subr.msk.bf16.mxu1 %vm3012_vm1, %v2547_v27 }
  0x48   : > { %2552 = vmatpush3.bf16.xpose.msk.msra.mxu0 %vm3012_vm1, %v2550_v32  ;;  %2583 = vmatpush3.bf16.xpose.msk.msra.mxu1 %vm3012_vm1, %v2550_v32 }
  0x49   : > { %2555 = vmatprep.subr.msk.bf16.mxu0 %vm3012_vm1, %v2553_v33  ;;  %2576 = vmatprep.subr.msk.bf16.mxu1 %vm3012_vm1, %v2553_v33 }
  0x50   : > { %2558 = vmatpush3.bf16.xpose.msk.msra.mxu0 %vm3012_vm1, %v2556_v38  ;;  %2584 = vmatpush3.bf16.xpose.msk.msra.mxu1 %vm3012_vm1, %v2556_v38 }
  0x51   : > { %2561 = vmatprep.subr.msk.bf16.mxu0 %vm3012_vm1, %v2559_v39  ;;  %2577 = vmatprep.subr.msk.bf16.mxu1 %vm3012_vm1, %v2559_v39 }
  0x58   : > { %2564 = vmatpush3.bf16.xpose.msk.msra.mxu0 %vm3012_vm1, %v2562_v44  ;;  %2585 = vmatpush3.bf16.xpose.msk.msra.mxu1 %vm3012_vm1, %v2562_v44 }
  0x59   : > { %2567 = vmatprep.subr.msk.bf16.mxu0 %vm3012_vm1, %v2565_v45  ;;  %2578 = vmatprep.subr.msk.bf16.mxu1 %vm3012_vm1, %v2565_v45 }
  0x60   : > { %2570 = vmatpush3.bf16.xpose.msk.msra.mxu0 %vm3012_vm1, %v2568_v48  ;;  %2586 = vmatpush3.bf16.xpose.msk.msra.mxu1 %vm3012_vm1, %v2568_v48 }
  0x67   : > { %2460 = vmatmul.mubr.msk.f32.vlgmr.msra.gmra.mrb[0].mxu0 %vm271_vm0, %v3006_v2  ;;  %2492 = vmatmul.mubr.msk.f32.vlgmr.msra.gmra.mrb[0].mxu1 %vm271_vm0, %v3000_v0  ;;  %v3376_v0 = vadd.s32 168, %v3320_v51  ;;  %v5275_v2 = vmov 0.0  }
  0x68   : > { %2461 = vmatprep.mubr.msk.f32.mxu0 %vm271_vm0, %v3017_v5  ;;  %2493 = vmatprep.mubr.msk.f32.mxu1 %vm271_vm0, %v3003_v1  ;;  %v3385_v3 = vsel %vm725_vm2, 1.0, %v5275_v2  ;;  %v3391_v4 = vsel %vm5311_vm3, 1.0, %v5275_v2  ;;  %v3408_v7 = vsel %vm5361_vm5, 1.0, %v5275_v2  ;;  %v3422_v9 = vsel %vm5307_vm7, 1.0, %v5275_v2 }
  0x69   : > { %5475 = vst [vmem:[#allocation19_spill] sm:$0xff] %v3376_v0  ;;  %vm5308_vm13 = vcmp.ne.s32.totalorder %v3376_v0, %v3328_v54 }
  0x6a   : > { %v3481_v26 = vsel %vm5308_vm13, 1.0, %v5275_v2 }
  0x6b   : > { %2462 = vmatmul.mubr.msk.f32.gmra.mrb[2].mxu0 %vm271_vm0, %v3017_v5  ;;  %2494 = vmatmul.mubr.msk.f32.gmra.mrb[2].mxu1 %vm271_vm0, %v3003_v1  ;;  %v3379_v1 = vadd.s32 48, %v3320_v51  ;;  %v3396_v5 = vadd.s32 56, %v3320_v51 }
  0x6c   : > { %2463 = vmatprep.mubr.msk.f32.mxu0 %vm271_vm0, %v3046_v10  ;;  %2495 = vmatprep.mubr.msk.f32.mxu1 %vm271_vm0, %v3020_v6 }
  0x6d   : > { %5476 = vst [vmem:[#allocation20_spill] sm:$0xff] %v3379_v1  ;;  %5477 = vst [vmem:[#allocation21_spill] sm:$0xff] %v3396_v5  ;;  %vm737_vm14 = vcmp.ne.s32.totalorder %v3379_v1, %v3322_v52  ;;  %vm739_vm15 = vcmp.ne.s32.totalorder %v3396_v5, %v3322_v52 }
  0x6e   : > { %v3487_v27 = vsel %vm737_vm14, 1.0, %v5275_v2 }
  0x6f   : > { %2464 = vmatmul.mubr.msk.f32.gmra.mrb[4].mxu0 %vm271_vm0, %v3046_v10  ;;  %2496 = vmatmul.mubr.msk.f32.gmra.mrb[4].mxu1 %vm271_vm0, %v3020_v6  ;;  %v3402_v6 = vsel %vm727_vm4, 1.0, %v5275_v2  ;;  %v3428_v10 = vsel %vm5313_vm9, 1.0, %v5275_v2 }
  0x70   : > { %2465 = vmatprep.mubr.msk.f32.mxu0 %vm271_vm0, %v3049_v11  ;;  %2497 = vmatprep.mubr.msk.f32.mxu1 %vm271_vm0, %v3029_v8 }
  0x73   : > { %2466 = vmatmul.mubr.msk.f32.gmra.mrb[6].mxu0 %vm271_vm0, %v3049_v11  ;;  %2498 = vmatmul.mubr.msk.f32.gmra.mrb[6].mxu1 %vm271_vm0, %v3029_v8  ;;  %v3414_v8 = vsel %vm729_vm6, 1.0, %v5275_v2  ;;  %v3434_v11 = vsel %vm731_vm8, 1.0, %v5275_v2 }
  0x74   : > { %2467 = vmatprep.mubr.msk.f32.mxu0 %vm271_vm0, %v3070_v16  ;;  %2499 = vmatprep.mubr.msk.f32.mxu1 %vm271_vm0, %v3052_v12 }
  0x77   : > { %2468 = vmatmul.mubr.msk.f32.gmra.mrb[8].mxu0 %vm271_vm0, %v3070_v16  ;;  %2500 = vmatmul.mubr.msk.f32.gmra.mrb[8].mxu1 %vm271_vm0, %v3052_v12  ;;  %v3440_v12 = vsel %vm733_vm10, 1.0, %v5275_v2 }
  0x78   : > { %2469 = vmatprep.mubr.msk.f32.mxu0 %vm271_vm0, %v3073_v17  ;;  %2501 = vmatprep.mubr.msk.f32.mxu1 %vm271_vm0, %v3055_v13 }
  0x7b   : > { %2470 = vmatmul.mubr.msk.f32.gmra.mrb[10].mxu0 %vm271_vm0, %v3073_v17  ;;  %2502 = vmatmul.mubr.msk.f32.gmra.mrb[10].mxu1 %vm271_vm0, %v3055_v13  ;;  %v3446_v13 = vsel %vm5274_vm11, 1.0, %v5275_v2  ;;  %v3459_v17 = vsel %vm735_vm12, 1.0, %v5275_v2 }
  0x7c   : > { %2471 = vmatprep.mubr.msk.f32.mxu0 %vm271_vm0, %v3094_v22  ;;  %2503 = vmatprep.mubr.msk.f32.mxu1 %vm271_vm0, %v3076_v18 }
  0x7f   : > { %2472 = vmatmul.mubr.msk.f32.gmra.mrb[12].mxu0 %vm271_vm0, %v3094_v22  ;;  %2504 = vmatmul.mubr.msk.f32.gmra.mrb[12].mxu1 %vm271_vm0, %v3076_v18  ;;  %v3464_v18 = vadd.s32 184, %v3320_v51 }
  0x80   : > { %2473 = vmatprep.mubr.msk.f32.mxu0 %vm271_vm0, %v3097_v23  ;;  %2505 = vmatprep.mubr.msk.f32.mxu1 %vm271_vm0, %v3079_v19 }
  0x81   : > { %5479 = vst [vmem:[#allocation23_spill] sm:$0xff] %v3464_v18  ;;  %vm5296_vm1 = vcmp.ne.s32.totalorder %v3464_v18, %v3328_v54 }
  0x82   : > { %v3525_v44 = vsel %vm5296_vm1, 1.0, %v5275_v2 }
  0x83   : > { %2474 = vmatmul.mubr.msk.f32.gmra.mrb[14].mxu0 %vm271_vm0, %v3097_v23  ;;  %2506 = vmatmul.mubr.msk.f32.gmra.mrb[14].mxu1 %vm271_vm0, %v3079_v19  ;;  %v3467_v19 = vadd.s32 64, %v3320_v51 }
  0x84   : > { %2475 = vmatprep.mubr.msk.f32.mxu0 %vm271_vm0, %v3118_v28  ;;  %2507 = vmatprep.mubr.msk.f32.mxu1 %vm271_vm0, %v3100_v24 }
  0x85   : > { %5480 = vst [vmem:[#allocation24_spill] sm:$0xff] %v3467_v19  ;;  %vm741_vm11 = vcmp.ne.s32.totalorder %v3467_v19, %v3322_v52 }
  0x87   : > { %2476 = vmatmul.mubr.msk.f32.gmra.mrb[16].mxu0 %vm271_vm0, %v3118_v28  ;;  %2508 = vmatmul.mubr.msk.f32.gmra.mrb[16].mxu1 %vm271_vm0, %v3100_v24 }
  0x88   : > { %2477 = vmatprep.mubr.msk.f32.mxu0 %vm271_vm0, %v3121_v29  ;;  %2509 = vmatprep.mubr.msk.f32.mxu1 %vm271_vm0, %v3103_v25 }
  0x8b   : > { %2478 = vmatmul.mubr.msk.f32.gmra.mrb[18].mxu0 %vm271_vm0, %v3121_v29  ;;  %2510 = vmatmul.mubr.msk.f32.gmra.mrb[18].mxu1 %vm271_vm0, %v3103_v25 }
  0x8c   : > { %2479 = vmatprep.mubr.msk.f32.mxu0 %vm271_vm0, %v3142_v34  ;;  %2511 = vmatprep.mubr.msk.f32.mxu1 %vm271_vm0, %v3124_v30 }
  0x8f   : > { %2480 = vmatmul.mubr.msk.f32.gmra.mrb[20].mxu0 %vm271_vm0, %v3142_v34  ;;  %2512 = vmatmul.mubr.msk.f32.gmra.mrb[20].mxu1 %vm271_vm0, %v3124_v30  ;;  %v3495_v30 = vsel %vm739_vm15, 1.0, %v5275_v2 }
  0x90   : > { %2481 = vmatprep.mubr.msk.f32.mxu0 %vm271_vm0, %v3145_v35  ;;  %2513 = vmatprep.mubr.msk.f32.mxu1 %vm271_vm0, %v3127_v31 }
  0x93   : > { %2482 = vmatmul.mubr.msk.f32.gmra.mrb[22].mxu0 %vm271_vm0, %v3145_v35  ;;  %2514 = vmatmul.mubr.msk.f32.gmra.mrb[22].mxu1 %vm271_vm0, %v3127_v31 }
  0x94   : > { %2483 = vmatprep.mubr.msk.f32.mxu0 %vm271_vm0, %v3166_v40  ;;  %2515 = vmatprep.mubr.msk.f32.mxu1 %vm271_vm0, %v3148_v36 }
  0x97   : > { %2484 = vmatmul.mubr.msk.f32.gmra.mrb[24].mxu0 %vm271_vm0, %v3166_v40  ;;  %2516 = vmatmul.mubr.msk.f32.gmra.mrb[24].mxu1 %vm271_vm0, %v3148_v36 }
  0x98   : > { %2485 = vmatprep.mubr.msk.f32.mxu0 %vm271_vm0, %v3169_v41  ;;  %2517 = vmatprep.mubr.msk.f32.mxu1 %vm271_vm0, %v3151_v37 }
  0x9b   : > { %2486 = vmatmul.mubr.msk.f32.gmra.mrb[26].mxu0 %vm271_vm0, %v3169_v41  ;;  %2518 = vmatmul.mubr.msk.f32.gmra.mrb[26].mxu1 %vm271_vm0, %v3151_v37 }
  0x9c   : > { %2487 = vmatprep.mubr.msk.f32.mxu0 %vm271_vm0, %v220_v46  ;;  %2519 = vmatprep.mubr.msk.f32.mxu1 %vm271_vm0, %v3172_v42 }
  0x9f   : > { %2488 = vmatmul.mubr.msk.f32.gmra.mrb[28].mxu0 %vm271_vm0, %v220_v46  ;;  %2520 = vmatmul.mubr.msk.f32.gmra.mrb[28].mxu1 %vm271_vm0, %v3172_v42 }
  0xa0   : > { %2489 = vmatprep.mubr.msk.f32.mxu0 %vm271_vm0, %v3191_v47  ;;  %2521 = vmatprep.mubr.msk.f32.mxu1 %vm271_vm0, %v3175_v43 }
  0xa3   : > { %2490 = vmatmul.mubr.msk.f32.gmra.mrb[30].mxu0 %vm271_vm0, %v3191_v47  ;;  %2522 = vmatmul.mubr.msk.f32.gmra.mrb[30].mxu1 %vm271_vm0, %v3175_v43  ;;  %vm5295_vm0 = vcmp.ne.s32.totalorder %v3453_v14, %v3328_v54 }
  0xa4   : > { %v3517_v41 = vsel %vm5295_vm0, 1.0, %v5275_v2 }
 0x13a   : > { %v434_v15 = vpop.f32.mrb[0].mxu0  ;;  %v530_v16 = vpop.f32.mrb[0].mxu1 }
 0x13b   : > { %v3469_v20 = vmul.f32 1.4285715, %v434_v15  ;;  %v3471_v21 = vmul.f32 1.4285715, %v530_v16  ;;  %v436_v22 = vpop.f32.mrb[1].mxu0  ;;  %v532_v23 = vpop.f32.mrb[1].mxu1 }
 0x13c   : > { %v3473_v24 = vmul.f32 1.4285715, %v436_v22  ;;  %v3475_v25 = vmul.f32 1.4285715, %v532_v23 }
 0x13d   : > { %5481 = vst [vmem:[#allocation25_spill] sm:$0xff] %v3471_v21  ;;  %v1149_v28 = vmul.f32 1.442695, %v3469_v20  ;;  %v1213_v29 = vmul.f32 1.442695, %v3471_v21 }
 0x13e   : > { %5482 = vst [vmem:[#allocation26_spill] sm:$0xff] %v3475_v25  ;;  %v1151_v31 = vmul.f32 1.442695, %v3473_v24  ;;  %v1215_v32 = vmul.f32 1.442695, %v3475_v25  ;;  %v440_v33 = vpop.f32.mrb[2].mxu0 }
 0x13f   : > { %v536_v34 = vpop.f32.mrb[2].mxu1  ;;  %2618 = vpow2.f32 %v1149_v28  ;;  %v3503_v35 = vmul.f32 1.4285715, %v440_v33  ;;  %v442_v36 = vpop.f32.mrb[3].mxu0  ;;  %v3541_v28 = vsel %vm741_vm11, 1.0, %v5275_v2 }
 0x140   : > { %v3505_v37 = vmul.f32 1.4285715, %v536_v34  ;;  %v538_v38 = vpop.f32.mrb[3].mxu1  ;;  %2620 = vpow2.f32 %v1213_v29  ;;  %v3509_v39 = vmul.f32 1.4285715, %v442_v36 }
 0x141   : > { %v3511_v40 = vmul.f32 1.4285715, %v538_v38  ;;  %2622 = vpow2.f32 %v1151_v31  ;;  %v1153_v42 = vmul.f32 1.442695, %v3503_v35 }
 0x142   : > { %5483 = vst [vmem:[#allocation27_spill] sm:$0xff] %v3505_v37  ;;  %v1217_v43 = vmul.f32 1.442695, %v3505_v37  ;;  %2624 = vpow2.f32 %v1215_v32  ;;  %v1155_v45 = vmul.f32 1.442695, %v3509_v39  ;;  %v446_v46 = vpop.f32.mrb[4].mxu0 }
 0x143   : > { %5484 = vst [vmem:[#allocation28_spill] sm:$0xff] %v3511_v40  ;;  %v1219_v47 = vmul.f32 1.442695, %v3511_v40  ;;  %v542_v48 = vpop.f32.mrb[4].mxu1  ;;  %2626 = vpow2.f32 %v1153_v42  ;;  %v3529_v49 = vmul.f32 1.4285715, %v446_v46 }
 0x144   : > { %v448_v50 = vpop.f32.mrb[5].mxu0  ;;  %v3531_v15 = vmul.f32 1.4285715, %v542_v48  ;;  %v544_v16 = vpop.f32.mrb[5].mxu1  ;;  %2628 = vpow2.f32 %v1155_v45  ;;  %v3546_v32 = vadd.s32 72, %v3320_v51 }
 0x145   : > { %v3533_v22 = vmul.f32 1.4285715, %v448_v50  ;;  %v3535_v23 = vmul.f32 1.4285715, %v544_v16  ;;  %2630 = vpow2.f32 %v1217_v43  ;;  %v1157_v29 = vmul.f32 1.442695, %v3529_v49 }
 0x146   : > { %5485 = vst [vmem:[#allocation29_spill] sm:$0xff] %v3531_v15  ;;  %v1221_v31 = vmul.f32 1.442695, %v3531_v15  ;;  %5487 = vst [vmem:[#allocation31_spill] sm:$0xff] %v3546_v32  ;;  %2632 = vpow2.f32 %v1219_v47  ;;  %v452_v36 = vpop.f32.mrb[6].mxu0  ;;  %v548_v38 = vpop.f32.mrb[6].mxu1  ;;  %vm743_vm0 = vcmp.ne.s32.totalorder %v3546_v32, %v3322_v52 }
 0x147   : > { %5486 = vst [vmem:[#allocation30_spill] sm:$0xff] %v3535_v23  ;;  %v1159_v33 = vmul.f32 1.442695, %v3533_v22  ;;  %v1223_v34 = vmul.f32 1.442695, %v3535_v23  ;;  %2634 = vpow2.f32 %v1157_v29  ;;  %v454_v43 = vpop.f32.mrb[7].mxu0 }
 0x148   : > { %v3550_v42 = vmul.f32 1.4285715, %v452_v36  ;;  %v3552_v45 = vmul.f32 1.4285715, %v548_v38  ;;  %v550_v46 = vpop.f32.mrb[7].mxu1  ;;  %v3559_v47 = vadd.s32 80, %v3320_v51 }
 0x149   : > { %2636 = vpow2.f32 %v1159_v33  ;;  %v3554_v48 = vmul.f32 1.4285715, %v454_v43  ;;  %v3556_v50 = vmul.f32 1.4285715, %v550_v46  ;;  %v2619_v16 = vpop.eup %2618  ;;  %v3564_v36 = vadd.s32 192, %v3320_v51 }
 0x14a   : > { %5488 = vst [vmem:[#allocation32_spill] sm:$0xff] %v3552_v45  ;;  %5490 = vst [vmem:[#allocation34_spill] sm:$0xff] %v3559_v47  ;;  %2638 = vpow2.f32 %v1221_v31  ;;  %v1161_v2 = vmul.f32 1.442695, %v3550_v42  ;;  %v1225_v29 = vmul.f32 1.442695, %v3552_v45  ;;  %v2621_v38 = vpop.eup %2620  ;;  %v1277_v62 = vmul.f32 %v2619_v16, %v3385_v3 }
 0x14b   : > { %5489 = vst [vmem:[#allocation33_spill] sm:$0xff] %v3556_v50  ;;  %5491 = vst [vmem:[#allocation35_spill] sm:$0xff] %v3564_v36  ;;  %2640 = vpow2.f32 %v1223_v34  ;;  %v1163_v33 = vmul.f32 1.442695, %v3554_v48  ;;  %v1227_v43 = vmul.f32 1.442695, %v3556_v50  ;;  %v2623_v18 = vpop.eup %2622  ;;  %vm5372_vm1 = vcmp.ne.s32.totalorder %v3559_v47, %v3322_v52 }
 0x14c   : > { %v458_v46 = vpop.f32.mrb[8].mxu0  ;;  %v554_v14 = vpop.f32.mrb[8].mxu1  ;;  %2642 = vpow2.f32 %v1161_v2  ;;  %v1341_v19 = vadd.f32 %v2623_v18, %v1277_v62  ;;  %vm5354_vm7 = vcmp.ne.s32.totalorder %v3564_v36, %v3328_v54 }
 0x14d   : > { %v3569_v31 = vmul.f32 1.4285715, %v458_v46  ;;  %v460_v58 = vpop.f32.mrb[9].mxu0  ;;  %v3571_v0 = vmul.f32 1.4285715, %v554_v14  ;;  %v556_v53 = vpop.f32.mrb[9].mxu1  ;;  %2644 = vpow2.f32 %v1225_v29 }
 0x14e   : > { %v2625_v60 = vpop.eup %2624  ;;  %v3573_v56 = vmul.f32 1.4285715, %v460_v58  ;;  %v3575_v34 = vmul.f32 1.4285715, %v556_v53  ;;  %2646 = vpow2.f32 %v1163_v33  ;;  %v560_v29 = vpop.f32.mrb[10].mxu1  ;;  %1342 = vadd.xlane.f32.xlu0 %v1341_v19 }
 0x14f   : > { %5492 = vst [vmem:[#allocation36_spill] sm:$0xff] %v3571_v0  ;;  %v2627_v1 = vpop.eup %2626  ;;  %v1165_v5 = vmul.f32 1.442695, %v3569_v31  ;;  %v1229_v3 = vmul.f32 1.442695, %v3571_v0  ;;  %v1310_v2 = vmul.f32 %v2625_v60, %v3391_v4  ;;  %2648 = vpow2.f32 %v1227_v43  ;;  %v464_v58 = vpop.f32.mrb[10].mxu0 }
 0x150   : > { %5493 = vst [vmem:[#allocation37_spill] sm:$0xff] %v3575_v34  ;;  %v2629_v16 = vpop.eup %2628  ;;  %v1167_v14 = vmul.f32 1.442695, %v3573_v56  ;;  %v1231_v46 = vmul.f32 1.442695, %v3575_v34  ;;  %v1279_v53 = vmul.f32 %v2627_v1, %v3402_v6  ;;  %v466_v63 = vpop.f32.mrb[11].mxu0 }
 0x151   : > { %v2631_v62 = vpop.eup %2630  ;;  %2650 = vpow2.f32 %v1165_v5  ;;  %v3583_v18 = vmul.f32 1.4285715, %v560_v29  ;;  %v3585_v33 = vmul.f32 1.4285715, %v464_v58  ;;  %v1389_v61 = vadd.f32 %v2621_v38, %v1310_v2  ;;  %v562_v60 = vpop.f32.mrb[11].mxu1 }
 0x152   : > { %v2633_v4 = vpop.eup %2632  ;;  %2652 = vpow2.f32 %v1167_v14  ;;  %v3587_v43 = vmul.f32 1.4285715, %v466_v63  ;;  %v3589_v57 = vmul.f32 1.4285715, %v562_v60  ;;  %v1344_v59 = vadd.f32 %v2629_v16, %v1279_v53  ;;  %v470_v63 = vpop.f32.mrb[12].mxu0 }
 0x153   : > { %5494 = vst [vmem:[#allocation38_spill] sm:$0xff] %v3583_v18  ;;  %5495 = vst [vmem:[#allocation39_spill] sm:$0xff] %v3585_v33  ;;  %v2635_v19 = vpop.eup %2634  ;;  %2654 = vpow2.f32 %v1229_v3  ;;  %v1233_v1 = vmul.f32 1.442695, %v3583_v18  ;;  %v1169_v5 = vmul.f32 1.442695, %v3585_v33  ;;  %1390 = vadd.xlane.f32.xlu1 %v1389_v61  ;;  %v1312_v6 = vmul.f32 %v2633_v4, %v3408_v7 }
 0x154   : > { %5496 = vst [vmem:[#allocation40_spill] sm:$0xff] %v3587_v43  ;;  %5497 = vst [vmem:[#allocation41_spill] sm:$0xff] %v3589_v57  ;;  %v2637_v29 = vpop.eup %2636  ;;  %2656 = vpow2.f32 %v1231_v46  ;;  %v1171_v38 = vmul.f32 1.442695, %v3587_v43  ;;  %v1235_v2 = vmul.f32 1.442695, %v3589_v57  ;;  %1345 = vadd.xlane.f32.xlu0 %v1344_v59  ;;  %v1281_v14 = vmul.f32 %v2635_v19, %v3414_v8 }
 0x155   : > { %v566_v16 = vpop.f32.mrb[12].mxu1  ;;  %v2639_v58 = vpop.eup %2638  ;;  %2658 = vpow2.f32 %v1233_v1  ;;  %v3597_v3 = vmul.f32 1.4285715, %v470_v63  ;;  %v1392_v60 = vadd.f32 %v2631_v62, %v1312_v6 }
 0x156   : > { %v472_v53 = vpop.f32.mrb[13].mxu0  ;;  %v3599_v61 = vmul.f32 1.4285715, %v566_v16  ;;  %v568_v7 = vpop.f32.mrb[13].mxu1  ;;  %2660 = vpow2.f32 %v1169_v5  ;;  %v1347_v55 = vadd.f32 %v2637_v29, %v1281_v14 }
 0x157   : > { %5498 = vst [vmem:[#allocation42_spill] sm:$0xff] %v3597_v3  ;;  %v2641_v4 = vpop.eup %2640  ;;  %v3601_v46 = vmul.f32 1.4285715, %v472_v53  ;;  %v3603_v43 = vmul.f32 1.4285715, %v568_v7  ;;  %2662 = vpow2.f32 %v1171_v38  ;;  %v476_v6 = vpop.f32.mrb[14].mxu0 }
 0x158   : > { %5499 = vst [vmem:[#allocation43_spill] sm:$0xff] %v3599_v61  ;;  %v2643_v59 = vpop.eup %2642  ;;  %v1173_v8 = vmul.f32 1.442695, %v3597_v3  ;;  %v1237_v19 = vmul.f32 1.442695, %v3599_v61  ;;  %v1314_v1 = vmul.f32 %v2641_v4, %v3422_v9  ;;  %2664 = vpow2.f32 %v1235_v2  ;;  %1393 = vadd.xlane.f32.xlu0 %v1392_v60  ;;  %1348 = vadd.xlane.f32.xlu1 %v1347_v55  ;;  %v572_v63 = vpop.f32.mrb[14].mxu1 }
 0x159   : > { %5500 = vst [vmem:[#allocation44_spill] sm:$0xff] %v3601_v46  ;;  %5501 = vst [vmem:[#allocation45_spill] sm:$0xff] %v3603_v43  ;;  %v2645_v62 = vpop.eup %2644  ;;  %v1175_v5 = vmul.f32 1.442695, %v3601_v46  ;;  %v1239_v29 = vmul.f32 1.442695, %v3603_v43  ;;  %v1283_v4 = vmul.f32 %v2643_v59, %v3434_v11 }
 0x15a   : > { %v2647_v38 = vpop.eup %2646  ;;  %2666 = vpow2.f32 %v1173_v8  ;;  %v3614_v14 = vmul.f32 1.4285715, %v476_v6  ;;  %v478_v9 = vpop.f32.mrb[15].mxu0  ;;  %v3616_v16 = vmul.f32 1.4285715, %v572_v63  ;;  %v1395_v2 = vadd.f32 %v2639_v58, %v1314_v1 }
 0x15b   : > { %v574_v53 = vpop.f32.mrb[15].mxu1  ;;  %v2649_v7 = vpop.eup %2648  ;;  %2668 = vpow2.f32 %v1175_v5  ;;  %v3618_v60 = vmul.f32 1.4285715, %v478_v9  ;;  %v5578_v25 = vld [vmem:[#allocation40_spill] sm:$0xff] }
 0x15c   : > { %5502 = vst [vmem:[#allocation46_spill] sm:$0xff] %v3614_v14  ;;  %5503 = vst [vmem:[#allocation47_spill] sm:$0xff] %v3616_v16  ;;  %v3620_v55 = vmul.f32 1.4285715, %v574_v53  ;;  %v2651_v61 = vpop.eup %2650  ;;  %v1177_v43 = vmul.f32 1.442695, %v3614_v14  ;;  %2670 = vpow2.f32 %v1237_v19  ;;  %v1316_v6 = vmul.f32 %v2649_v7, %v3428_v10  ;;  %1396 = vadd.xlane.f32.xlu1 %v1395_v2 }
 0x15d   : > { %5504 = vst [vmem:[#allocation48_spill] sm:$0xff] %v3618_v60  ;;  %v1241_v8 = vmul.f32 1.442695, %v3616_v16  ;;  %v2653_v63 = vpop.eup %2652  ;;  %v1179_v46 = vmul.f32 1.442695, %v3618_v60  ;;  %2672 = vpow2.f32 %v1239_v29  ;;  %v482_v1 = vpop.f32.mrb[16].mxu0  ;;  %v1285_v5 = vmul.f32 %v2651_v61, %v3440_v12 }
 0x15e   : > { %5505 = vst [vmem:[#allocation49_spill] sm:$0xff] %v3620_v55  ;;  %v1243_v58 = vmul.f32 1.442695, %v3620_v55  ;;  %v3629_v9 = vpop.f32.mrb[16].mxu1  ;;  %v2655_v11 = vpop.eup %2654  ;;  %2674 = vpow2.f32 %v1177_v43  ;;  %v3631_v59 = vmul.f32 1.4285715, %v482_v1  ;;  %v1398_v19 = vadd.f32 %v2645_v62, %v1316_v6 }
 0x15f   : > { %v484_v53 = vpop.f32.mrb[17].mxu0  ;;  %v3633_v16 = vpop.f32.mrb[17].mxu1  ;;  %v3636_v10 = vadd.s32 88, %v3320_v51  ;;  %2676 = vpow2.f32 %v1179_v46  ;;  %v1350_v2 = vadd.f32 %v2647_v38, %v1283_v4  ;;  %v3641_v12 = vadd.s32 200, %v3320_v51 }
 0x160   : > { %5506 = vst [vmem:[#allocation50_spill] sm:$0xff] %v3631_v59  ;;  %v2657_v29 = vpop.eup %2656  ;;  %v3638_v7 = vmul.f32 1.4285715, %v484_v53  ;;  %2678 = vpow2.f32 %v1241_v8  ;;  %v1181_v43 = vmul.f32 1.442695, %v3631_v59  ;;  %1399 = vadd.xlane.f32.xlu0 %v1398_v19  ;;  %v1353_v62 = vadd.f32 %v2653_v63, %v1285_v5  ;;  %v488_v46 = vpop.f32.mrb[18].mxu0 }
 0x161   : > { %5507 = vst [vmem:[#allocation51_spill] sm:$0xff] %v3636_v10  ;;  %5509 = vst [vmem:[#allocation53_spill] sm:$0xff] %v3641_v12  ;;  %v2659_v61 = vpop.eup %2658  ;;  %v1318_v6 = vmul.f32 %v2657_v29, %v3446_v13  ;;  %2680 = vpow2.f32 %v1243_v58  ;;  %1351 = vadd.xlane.f32.xlu1 %v1350_v2  ;;  %v3646_v53 = vpop.f32.mrb[18].mxu1  ;;  %v3649_v38 = vadd.s32 96, %v3320_v51  ;;  %v3653_v8 = vmul.f32 1.4285715, %v488_v46 }
 0x162   : > { %5508 = vst [vmem:[#allocation52_spill] sm:$0xff] %v3638_v7  ;;  %v2661_v1 = vpop.eup %2660  ;;  %v1183_v55 = vmul.f32 1.442695, %v3638_v7  ;;  %2682 = vpow2.f32 %v1181_v43  ;;  %v490_v63 = vpop.f32.mrb[19].mxu0  ;;  %vm747_vm13 = vcmp.ne.s32.totalorder %v3636_v10, %v3322_v52  ;;  %v5513_v2 = vmov 0.0  }
 0x163   : > { %5510 = vst [vmem:[#allocation54_spill] sm:$0xff] %v3649_v38  ;;  %v2663_v4 = vpop.eup %2662  ;;  %5511 = vst [vmem:[#allocation55_spill] sm:$0xff] %v3653_v8  ;;  %v1401_v13 = vadd.f32 %v2655_v11, %v1318_v6  ;;  %v586_v5 = vpop.f32.mrb[19].mxu1  ;;  %v3657_v19 = vmul.f32 1.4285715, %v490_v63  ;;  %v1287_v29 = vmul.f32 %v2661_v1, %v3459_v17  ;;  %v3664_v7 = vsel %vm743_vm0, 1.0, %v5513_v2 }
 0x164   : > { %v2665_v58 = vpop.eup %2664  ;;  %vm5360_vm3 = vcmp.ne.s32.totalorder %v3641_v12, %v3328_v54  ;;  %v1185_v11 = vmul.f32 1.442695, %v3653_v8  ;;  %1354 = vadd.xlane.f32.xlu0 %v1353_v62  ;;  %v3674_v17 = vsel %vm5372_vm1, 1.0, %v5513_v2  ;;  %v3680_v1 = vsel %vm5354_vm7, 1.0, %v5513_v2  ;;  %v494_v62 = vpop.f32.mrb[20].mxu0  ;;  %v5582_v23 = vld [vmem:[#allocation46_spill] sm:$0xff] }
 0x165   : > { %5512 = vst [vmem:[#allocation56_spill] sm:$0xff] %v3657_v19  ;;  %v2667_v43 = vpop.eup %2666  ;;  %v1320_v6 = vmul.f32 %v2665_v58, %v3481_v26  ;;  %2684 = vpow2.f32 %v1183_v55  ;;  %v1187_v63 = vmul.f32 1.442695, %v3657_v19  ;;  %1402 = vadd.xlane.f32.xlu1 %v1401_v13  ;;  %v3683_v32 = vpop.f32.mrb[20].mxu1  ;;  %v3689_v26 = vsel %vm747_vm13, 1.0, %v5513_v2 }
 0x166   : > { %v2669_v46 = vpop.eup %2668  ;;  %vm5364_vm9 = vcmp.ne.s32.totalorder %v3649_v38, %v3322_v52  ;;  %2686 = vpow2.f32 %v1185_v11  ;;  %v3693_v36 = vmul.f32 1.4285715, %v494_v62  ;;  %v496_v47 = vpop.f32.mrb[21].mxu0  ;;  %v3701_v13 = vsel %vm5360_vm3, 1.0, %v5513_v2 }
 0x167   : > { %v2671_v58 = vpop.eup %2670  ;;  %v1404_v55 = vadd.f32 %v2659_v61, %v1320_v6  ;;  %v3695_v19 = vpop.f32.mrb[21].mxu1  ;;  %2688 = vpow2.f32 %v1187_v63  ;;  %v3703_v8 = vmul.f32 1.4285715, %v496_v47  ;;  %v1356_v59 = vadd.f32 %v2663_v4, %v1287_v29 }
 0x168   : > { %5514 = vst [vmem:[#allocation57_spill] sm:$0xff] %v3693_v36  ;;  %v2673_v10 = vpop.eup %2672  ;;  %v1289_v60 = vmul.f32 %v2667_v43, %v3487_v27  ;;  %v1189_v62 = vmul.f32 1.442695, %v3693_v36  ;;  %v3711_v61 = vsel %vm5364_vm9, 1.0, %v5513_v2  ;;  %v3714_v6 = vadd.s32 104, %v3320_v51  ;;  %v500_v29 = vpop.f32.mrb[22].mxu0 }
 0x169   : > { %5515 = vst [vmem:[#allocation58_spill] sm:$0xff] %v3703_v8  ;;  %v2675_v11 = vpop.eup %2674  ;;  %1405 = vadd.xlane.f32.xlu0 %v1404_v55  ;;  %v3717_v63 = vadd.s32 208, %v3320_v51  ;;  %v3720_v4 = vmul.f32 1.4285715, %v3629_v9  ;;  %v1191_v27 = vmul.f32 1.442695, %v3703_v8  ;;  %1357 = vadd.xlane.f32.xlu1 %v1356_v59  ;;  %v1322_v12 = vmul.f32 %v2673_v10, %v3517_v41 }
 0x16a   : > { %5516 = vst [vmem:[#allocation59_spill] sm:$0xff] %v3714_v6  ;;  %v2677_v47 = vpop.eup %2676  ;;  %v1291_v43 = vmul.f32 %v2675_v11, %v3495_v30  ;;  %v596_v55 = vpop.f32.mrb[22].mxu1  ;;  %2690 = vpow2.f32 %v1189_v62  ;;  %v3726_v36 = vmul.f32 1.4285715, %v3633_v16  ;;  %v3728_v14 = vmul.f32 1.4285715, %v500_v29 }
 0x16b   : > { %5517 = vst [vmem:[#allocation60_spill] sm:$0xff] %v3717_v63  ;;  %5518 = vst [vmem:[#allocation61_spill] sm:$0xff] %v3720_v4  ;;  %v2679_v38 = vpop.eup %2678  ;;  %v502_v3 = vpop.f32.mrb[23].mxu0  ;;  %2692 = vpow2.f32 %v1191_v27  ;;  %v1359_v59 = vadd.f32 %v2669_v46, %v1289_v60  ;;  %v3733_v11 = vmul.f32 1.4285715, %v586_v5  ;;  %v3737_v16 = vadd.s32 216, %v3320_v51 }
 0x16c   : > { %5519 = vst [vmem:[#allocation62_spill] sm:$0xff] %v3726_v36  ;;  %5520 = vst [vmem:[#allocation63_spill] sm:$0xff] %v3728_v14  ;;  %v598_v33 = vpop.f32.mrb[23].mxu1  ;;  %v2681_v9 = vpop.eup %2680  ;;  %v3730_v18 = vmul.f32 1.4285715, %v502_v3  ;;  %v1362_v8 = vadd.f32 %v2677_v47, %v1291_v43  ;;  %v1407_v27 = vadd.f32 %v2671_v58, %v1322_v12  ;;  %vm5453_vm7 = vcmp.ne.s32.totalorder %v3714_v6, %v3322_v52  ;;  %v5591_v50 = vld [vmem:[#allocation52_spill] sm:$0xff] }
 0x16d   : > { %v2683_v57 = vpop.eup %2682  ;;  %v1193_v30 = vmul.f32 1.442695, %v3728_v14  ;;  %5522 = vst [vmem:[#allocation65_spill] sm:$0xff] %v3733_v11  ;;  %v1324_v41 = vmul.f32 %v2681_v9, %v3525_v44  ;;  %5523 = vst [vmem:[#allocation66_spill] sm:$0xff] %v3737_v16  ;;  %v1245_v10 = vmul.f32 1.442695, %v3720_v4  ;;  %1360 = vadd.xlane.f32.xlu1 %v1359_v59  ;;  %vm5371_vm5 = vcmp.ne.s32.totalorder %v3737_v16, %v3328_v54 }
 0x16e   : > { %5521 = vst [vmem:[#allocation64_spill] sm:$0xff] %v3730_v18  ;;  %v1195_v62 = vmul.f32 1.442695, %v3730_v18  ;;  %1363 = vadd.xlane.f32.xlu0 %v1362_v8  ;;  %v506_v3 = vpop.f32.mrb[24].mxu0  ;;  %v3741_v60 = vpop.f32.mrb[24].mxu1  ;;  %v3746_v44 = vadd.s32 112, %v3320_v51  ;;  %v1293_v8 = vmul.f32 %v2683_v57, %v3541_v28  ;;  %vm5373_vm9 = vcmp.ne.s32.totalorder %v3717_v63, %v3328_v54 }
 0x16f   : > { %2694 = vpow2.f32 %v1193_v30  ;;  %v3743_v46 = vmul.f32 1.4285715, %v506_v3  ;;  %v508_v5 = vpop.f32.mrb[25].mxu0  ;;  %v1410_v47 = vadd.f32 %v2679_v38, %v1324_v41  ;;  %v604_v29 = vpop.f32.mrb[25].mxu1  ;;  %v1247_v9 = vmul.f32 1.442695, %v3726_v36 }
 0x170   : > { %5525 = vst [vmem:[#allocation68_spill] sm:$0xff] %v3746_v44  ;;  %v2685_v43 = vpop.eup %2684  ;;  %2696 = vpow2.f32 %v1195_v62  ;;  %v3749_v4 = vmul.f32 1.4285715, %v508_v5  ;;  %v3753_v58 = vmul.f32 1.4285715, %v3646_v53  ;;  %v512_v3 = vpop.f32.mrb[26].mxu0  ;;  %vm5365_vm3 = vcmp.ne.s32.totalorder %v3746_v44, %v3322_v52 }
 0x171   : > { %5524 = vst [vmem:[#allocation67_spill] sm:$0xff] %v3743_v46  ;;  %v2687_v12 = vpop.eup %2686  ;;  %v1251_v59 = vmul.f32 1.442695, %v3733_v11  ;;  %v1197_v38 = vmul.f32 1.442695, %v3743_v46  ;;  %2698 = vpow2.f32 %v1245_v10  ;;  %1408 = vadd.xlane.f32.xlu1 %v1407_v27  ;;  %v608_v57 = vpop.f32.mrb[26].mxu1 }
 0x172   : > { %5526 = vst [vmem:[#allocation69_spill] sm:$0xff] %v3749_v4  ;;  %5527 = vst [vmem:[#allocation70_spill] sm:$0xff] %v3753_v58  ;;  %v2689_v30 = vpop.eup %2688  ;;  %v1199_v41 = vmul.f32 1.442695, %v3749_v4  ;;  %1411 = vadd.xlane.f32.xlu0 %v1410_v47  ;;  %v3758_v62 = vmul.f32 1.4285715, %v598_v33  ;;  %v1295_v5 = vmul.f32 %v2687_v12, %v3664_v7  ;;  %v1365_v4 = vadd.f32 %v2685_v43, %v1293_v8 }
 0x173   : > { %2700 = vpow2.f32 %v1197_v38  ;;  %v3762_v28 = vmul.f32 1.4285715, %v3695_v19  ;;  %v3764_v53 = vmul.f32 1.4285715, %v512_v3  ;;  %v514_v36 = vpop.f32.mrb[27].mxu0  ;;  %v610_v11 = vpop.f32.mrb[27].mxu1 }
 0x174   : > { %5528 = vst [vmem:[#allocation71_spill] sm:$0xff] %v3758_v62  ;;  %2702 = vpow2.f32 %v1199_v41  ;;  %v3766_v10 = vmul.f32 1.4285715, %v514_v36  ;;  %v1368_v27 = vadd.f32 %v2689_v30, %v1295_v5  ;;  %v2691_v47 = vpop.eup %2690  ;;  %v1249_v33 = vmul.f32 1.442695, %v3753_v58  ;;  %v518_v36 = vpop.f32.mrb[28].mxu0 }
 0x175   : > { %5529 = vst [vmem:[#allocation72_spill] sm:$0xff] %v3762_v28  ;;  %5530 = vst [vmem:[#allocation73_spill] sm:$0xff] %v3764_v53  ;;  %2704 = vpow2.f32 %v1247_v9  ;;  %v3769_v46 = vmul.f32 1.4285715, %v596_v55  ;;  %v1201_v7 = vmul.f32 1.442695, %v3764_v53  ;;  %v2693_v12 = vpop.eup %2692  ;;  %1366 = vadd.xlane.f32.xlu1 %v1365_v4  ;;  %v1297_v43 = vmul.f32 %v2691_v47, %v3674_v17 }
 0x176   : > { %5531 = vst [vmem:[#allocation74_spill] sm:$0xff] %v3766_v10  ;;  %2706 = vpow2.f32 %v1251_v59  ;;  %v1203_v19 = vmul.f32 1.442695, %v3766_v10  ;;  %v1259_v38 = vmul.f32 1.442695, %v3758_v62  ;;  %1369 = vadd.xlane.f32.xlu0 %v1368_v27  ;;  %v614_v8 = vpop.f32.mrb[28].mxu1 }
 0x177   : > { %5532 = vst [vmem:[#allocation75_spill] sm:$0xff] %v3769_v46  ;;  %v3776_v9 = vmul.f32 1.4285715, %v3683_v32  ;;  %2708 = vpow2.f32 %v1201_v7  ;;  %v3778_v55 = vmul.f32 1.4285715, %v518_v36  ;;  %v520_v30 = vpop.f32.mrb[29].mxu0  ;;  %v1371_v5 = vadd.f32 %v2693_v12, %v1297_v43 }
 0x178   : > { %v616_v41 = vpop.f32.mrb[29].mxu1  ;;  %v1255_v59 = vmul.f32 1.442695, %v3762_v28  ;;  %2710 = vpow2.f32 %v1203_v19  ;;  %v3781_v3 = vmul.f32 1.4285715, %v520_v30  ;;  %v524_v28 = vpop.f32.mrb[30].mxu0 }
 0x179   : > { %5533 = vst [vmem:[#allocation76_spill] sm:$0xff] %v3776_v9  ;;  %5534 = vst [vmem:[#allocation77_spill] sm:$0xff] %v3778_v55  ;;  %v2695_v4 = vpop.eup %2694  ;;  %2712 = vpow2.f32 %v1249_v33  ;;  %v1257_v27 = vmul.f32 1.442695, %v3769_v46  ;;  %v1205_v17 = vmul.f32 1.442695, %v3778_v55  ;;  %1372 = vadd.xlane.f32.xlu1 %v1371_v5 }
 0x17a   : > { %5535 = vst [vmem:[#allocation78_spill] sm:$0xff] %v3781_v3  ;;  %v3785_v47 = vmul.f32 1.4285715, %v604_v29  ;;  %v2697_v32 = vpop.eup %2696  ;;  %2714 = vpow2.f32 %v1259_v38  ;;  %v1207_v7 = vmul.f32 1.442695, %v3781_v3  ;;  %v1299_v19 = vmul.f32 %v2695_v4, %v3689_v26  ;;  %v620_v30 = vpop.f32.mrb[30].mxu1 }
 0x17b   : > { %v3788_v36 = vmul.f32 1.4285715, %v610_v11  ;;  %v1253_v12 = vmul.f32 1.442695, %v3776_v9  ;;  %2716 = vpow2.f32 %v1205_v17  ;;  %v3792_v33 = vmul.f32 1.4285715, %v524_v28  ;;  %v3796_v29 = vpop.eup %2698 }
 0x17c   : > { %v526_v43 = vpop.f32.mrb[31].mxu0  ;;  %v622_v55 = vpop.f32.mrb[31].mxu1  ;;  %v3799_v38 = vmul.f32 1.4285715, %v3741_v60  ;;  %2718 = vpow2.f32 %v1207_v7  ;;  %v1374_v11 = vadd.f32 %v2697_v32, %v1299_v19  ;;  %v1263_v4 = vmul.f32 1.442695, %v3785_v47 }
 0x17d   : > { %5536 = vst [vmem:[#allocation79_spill] sm:$0xff] %v3788_v36  ;;  %5537 = vst [vmem:[#allocation80_spill] sm:$0xff] %v3792_v33  ;;  %v3801_v5 = vmul.f32 1.4285715, %v526_v43  ;;  %v2701_v26 = vpop.eup %2700  ;;  %2720 = vpow2.f32 %v1255_v59  ;;  %v3804_v28 = vmul.f32 1.4285715, %v608_v57 }
 0x17e   : > { %5538 = vst [vmem:[#allocation81_spill] sm:$0xff] %v3799_v38  ;;  %v1209_v17 = vmul.f32 1.442695, %v3792_v33  ;;  %v2703_v3 = vpop.eup %2702  ;;  %2722 = vpow2.f32 %v1257_v27  ;;  %v1267_v9 = vmul.f32 1.442695, %v3788_v36  ;;  %1375 = vadd.xlane.f32.xlu0 %v1374_v11  ;;  %v1301_v60 = vmul.f32 %v2701_v26, %v3711_v61  ;;  %v262_v63 = vld [vmem:[%s2989_s30 + $0xc0] sm:$0xff] }
 0x17f   : > { %5539 = vst [vmem:[#allocation82_spill] sm:$0xff] %v3801_v5  ;;  %v3808_v46 = vmul.f32 1.4285715, %v616_v41  ;;  %v2705_v32 = vpop.eup %2704  ;;  %v1211_v7 = vmul.f32 1.442695, %v3801_v5  ;;  %v815_v57 = vsel %vm5453_vm7, 1.0, %v5513_v2 }
 0x180   : > { %2724 = vpow2.f32 %v1209_v17  ;;  %v3812_v59 = vmul.f32 1.4285715, %v622_v55  ;;  %v2707_v19 = vpop.eup %2706  ;;  %v1261_v27 = vmul.f32 1.442695, %v3799_v38  ;;  %v1377_v43 = vadd.f32 %v2703_v3, %v1301_v60  ;;  %v5596_v37 = vld [vmem:[#allocation58_spill] sm:$0xff] }
 0x181   : > { %5540 = vst [vmem:[#allocation83_spill] sm:$0xff] %v3808_v46  ;;  %2726 = vpow2.f32 %v1253_v12  ;;  %v2709_v61 = vpop.eup %2708  ;;  %v1265_v41 = vmul.f32 1.442695, %v3804_v28  ;;  %v3825_v55 = vadd.s32 120, %v3320_v51  ;;  %v3827_v26 = vmul.f32 1.4285715, %v614_v8 }
 0x182   : > { %5541 = vst [vmem:[#allocation84_spill] sm:$0xff] %v3812_v59  ;;  %2728 = vpow2.f32 %v1263_v4  ;;  %v2711_v11 = vpop.eup %2710  ;;  %v1271_v12 = vmul.f32 1.442695, %v3808_v46  ;;  %1378 = vadd.xlane.f32.xlu1 %v1377_v43  ;;  %v1303_v3 = vmul.f32 %v2709_v61, %v815_v57  ;;  %v3830_v60 = vmul.f32 1.4285715, %v620_v30  ;;  %v5606_v62 = vld [vmem:[#allocation62_spill] sm:$0xff] }
 0x183   : > { %5542 = vst [vmem:[#allocation85_spill] sm:$0xff] %v3825_v55  ;;  %2730 = vpow2.f32 %v1267_v9  ;;  %5543 = vst [vmem:[#allocation86_spill] sm:$0xff] %v3827_v26  ;;  %v2713_v17 = vpop.eup %2712  ;;  %v1275_v4 = vmul.f32 1.442695, %v3812_v59  ;;  %v817_v5 = vsel %vm5365_vm3, 1.0, %v5513_v2  ;;  %v1328_v8 = vmul.f32 %v2707_v19, %v3701_v13 }
 0x184   : > { %2732 = vpow2.f32 %v1211_v7  ;;  %5544 = vst [vmem:[#allocation87_spill] sm:$0xff] %v3830_v60  ;;  %v2715_v33 = vpop.eup %2714  ;;  %v1380_v9 = vadd.f32 %v2711_v11, %v1303_v3  ;;  %v844_v30 = vsel %vm5371_vm5, 1.0, %v5513_v2  ;;  %v3845_v7 = vadd.s32 224, %v3320_v51 }
 0x185   : > { %2734 = vpow2.f32 %v1261_v27  ;;  %v2717_v57 = vpop.eup %2716  ;;  %v3848_v43 = vadd.s32 232, %v3320_v51  ;;  %v1269_v61 = vmul.f32 1.442695, %v3827_v26  ;;  %vm5374_vm3 = vcmp.ne.s32.totalorder %v3825_v55, %v3322_v52 }
 0x186   : > { %2736 = vpow2.f32 %v1265_v41  ;;  %5545 = vst [vmem:[#allocation88_spill] sm:$0xff] %v3845_v7  ;;  %v2719_v27 = vpop.eup %2718  ;;  %1381 = vadd.xlane.f32.xlu0 %v1380_v9  ;;  %v1305_v13 = vmul.f32 %v2717_v57, %v817_v5  ;;  %v1273_v41 = vmul.f32 1.442695, %v3830_v60  ;;  %v1416_v3 = vadd.f32 %v2713_v17, %v1328_v8 }
 0x187   : > { %5546 = vst [vmem:[#allocation89_spill] sm:$0xff] %v3848_v43  ;;  %2738 = vpow2.f32 %v1271_v12  ;;  %v2721_v19 = vpop.eup %2720  ;;  %v1332_v44 = vmul.f32 %v2715_v33, %v844_v30  ;;  %v1326_v38 = vmul.f32 %v2705_v32, %v3680_v1  ;;  %v842_v12 = vsel %vm5373_vm9, 1.0, %v5513_v2 }
 0x188   : > { %2740 = vpow2.f32 %v1275_v4  ;;  %v2723_v11 = vpop.eup %2722  ;;  %v1383_v16 = vadd.f32 %v2719_v27, %v1305_v13  ;;  %v819_v5 = vsel %vm5374_vm3, 1.0, %v5513_v2  ;;  %vm5382_vm5 = vcmp.ne.s32.totalorder %v3845_v7, %v3328_v54 }
 0x189   : > { %2742 = vpow2.f32 %v1269_v61  ;;  %vm5381_vm1 = vcmp.ne.s32.totalorder %v3848_v43, %v3328_v54  ;;  %v3868_v1 = vadd.s32 240, %v3320_v51  ;;  %v3871_v33 = vadd.s32 248, %v3320_v51  ;;  %v263_v43 = vld [vmem:[%s2989_s30 + $0xc8] sm:$0xff] }
 0x18a   : > { %v2725_v6 = vpop.eup %2724  ;;  %1417 = vadd.xlane.f32.xlu0 %v1416_v3  ;;  %1384 = vadd.xlane.f32.xlu1 %v1383_v16  ;;  %2744 = vpow2.f32 %v1273_v41  ;;  %v1422_v9 = vadd.f32 %v2723_v11, %v1332_v44  ;;  %v1413_v8 = vadd.f32 %v3796_v29, %v1326_v38  ;;  %v1330_v57 = vmul.f32 %v2721_v19, %v842_v12 }
 0x18b   : > { %v2727_v4 = vpop.eup %2726  ;;  %5547 = vst [vmem:[#allocation90_spill] sm:$0xff] %v3868_v1  ;;  %5548 = vst [vmem:[#allocation91_spill] sm:$0xff] %v3871_v33  ;;  %v1307_v30 = vmul.f32 %v2725_v6, %v819_v5  ;;  %v846_v16 = vsel %vm5382_vm5, 1.0, %v5513_v2  ;;  %v848_v61 = vsel %vm5381_vm1, 1.0, %v5513_v2  ;;  %vm5378_vm9 = vcmp.ne.s32.totalorder %v3868_v1, %v3328_v54  ;;  %v261_v1 = vld [vmem:[%s2989_s30 + $0xb8] sm:$0xff] }
 0x18c   : > { %v2729_v32 = vpop.eup %2728  ;;  %vm5379_vm3 = vcmp.ne.s32.totalorder %v3871_v33, %v3328_v54  ;;  %v1419_v29 = vadd.f32 %v2727_v4, %v1330_v57  ;;  %v850_v3 = vsel %vm5378_vm9, 1.0, %v5513_v2  ;;  %v258_v33 = vld [vmem:[%s2989_s30 + $0xa0] sm:$0xff]  ;;  %vm5452_vm1 = vcmask 7168   ;;  %v268_v54 = vld [vmem:[%s2989_s30 + $0xf0] sm:$0xff] }
 0x18d   : > { %v2731_v17 = vpop.eup %2730  ;;  %v1334_v19 = vmul.f32 %v2729_v32, %v846_v16  ;;  %v852_v12 = vsel %vm5379_vm3, 1.0, %v5513_v2  ;;  %v3896_v16 = vld [vmem:[%s2989_s30 + $0x18] sm:$0xff] }
 0x18e   : > { %v2733_v27 = vpop.eup %2732  ;;  %1423 = vadd.xlane.f32.xlu0 %v1422_v9  ;;  %1414 = vadd.xlane.f32.xlu1 %v1413_v8  ;;  %v1336_v41 = vmul.f32 %v2731_v17, %v848_v61  ;;  %v238_v61 = vld [vmem:[%s2989_s30] sm:$0xff] }
 0x18f   : > { %v2735_v13 = vpop.eup %2734  ;;  %v1386_v38 = vadd.f32 %v2733_v27, %v1307_v30  ;;  %v239_v27 = vld [vmem:[%s2989_s30 + $0x8] sm:$0xff]  ;;  %vm1949_vm3 = vcmp.ne.s32.totalorder %v238_v61, 0 }
 0x190   : > { %v2737_v6 = vpop.eup %2736  ;;  %v1425_v4 = vadd.f32 %v2735_v13, %v1334_v19  ;;  %v3901_v13 = vld [vmem:[%s2989_s30 + $0x28] sm:$0xff]  ;;  %v3917_v19 = vld [vmem:[%s2989_s30 + $0x30] sm:$0xff]  ;;  %vm1950_vm9 = vcmp.ne.s32.totalorder %v239_v27, 0 }
 0x191   : > { %v2739_v44 = vpop.eup %2738  ;;  %v1428_v32 = vadd.f32 %v2737_v6, %v1336_v41  ;;  %v240_v6 = vld [vmem:[%s2989_s30 + $0x10] sm:$0xff]  ;;  %v3922_v41 = vld [vmem:[%s2989_s30 + $0x58] sm:$0xff] }
 0x192   : > { %v2741_v11 = vpop.eup %2740  ;;  %1420 = vadd.xlane.f32.xlu1 %v1419_v29  ;;  %1387 = vadd.xlane.f32.xlu0 %v1386_v38  ;;  %v1338_v17 = vmul.f32 %v2739_v44, %v850_v3  ;;  %v3906_v44 = vld [vmem:[%s2989_s30 + $0x38] sm:$0xff]  ;;  %v3909_v29 = vld [vmem:[%s2989_s30 + $0x20] sm:$0xff]  ;;  %v3914_v38 = vld [vmem:[%s2989_s30 + $0x48] sm:$0xff]  ;;  %vm1951_vm5 = vcmp.ne.s32.totalorder %v240_v6, 0 }
 0x193   : > { %v2743_v5 = vpop.eup %2742  ;;  %v1340_v9 = vmul.f32 %v2741_v11, %v852_v12  ;;  %v3925_v11 = vld [vmem:[%s2989_s30 + $0x40] sm:$0xff]  ;;  %v3930_v3 = vld [vmem:[%s2989_s30 + $0x68] sm:$0xff]  ;;  %v3933_v12 = vld [vmem:[%s2989_s30 + $0x50] sm:$0xff] }
 0x194   : > { %v2745_v8 = vpop.eup %2744  ;;  %v1431_v57 = vadd.f32 %v2743_v5, %v1338_v17  ;;  %v3938_v5 = vld [vmem:[%s2989_s30 + $0x78] sm:$0xff]  ;;  %v3947_v17 = vld [vmem:[%s2989_s30 + $0x70] sm:$0xff] }
 0x195   : > { %v1434_v30 = vadd.f32 %v2745_v8, %v1340_v9  ;;  %v257_v9 = vld [vmem:[%s2989_s30 + $0x98] sm:$0xff]  ;;  %v254_v8 = vld [vmem:[%s2989_s30 + $0x80] sm:$0xff] }
 0x196   : > { %1426 = vadd.xlane.f32.xlu1 %v1425_v4  ;;  %1429 = vadd.xlane.f32.xlu0 %v1428_v32  ;;  %v3941_v4 = vld [vmem:[%s2989_s30 + $0x60] sm:$0xff]  ;;  %v255_v32 = vld [vmem:[%s2989_s30 + $0x88] sm:$0xff] }
 0x19a   : > { %1432 = vadd.xlane.f32.xlu1 %v1431_v57  ;;  %1435 = vadd.xlane.f32.xlu0 %v1434_v30  ;;  %v259_v57 = vld [vmem:[%s2989_s30 + $0xa8] sm:$0xff]  ;;  %v256_v30 = vld [vmem:[%s2989_s30 + $0x90] sm:$0xff] }
 0x1ab   : > { %857 = vperm.xlu1 %2616, %v239_v27  }
 0x1af   : > { %863 = vperm.xlu1 %2616, %v3896_v16  }
 0x1b0   : > { %854 = vperm.xlu0 %2617, %v238_v61  }
 0x1b3   : > { %869 = vperm.xlu1 %2616, %v3901_v13  }
 0x1b4   : > { %860 = vperm.xlu0 %2617, %v240_v6   ;;  %v267_v6 = vld [vmem:[%s2989_s30 + $0xe8] sm:$0xff] }
 0x1b7   : > { %875 = vperm.xlu1 %2616, %v3906_v44  }
 0x1b8   : > { %866 = vperm.xlu0 %2617, %v3909_v29  }
 0x1bb   : > { %881 = vperm.xlu1 %2616, %v3914_v38  }
 0x1bc   : > { %872 = vperm.xlu0 %2617, %v3917_v19  }
 0x1bf   : > { %887 = vperm.xlu1 %2616, %v3922_v41  }
 0x1c0   : > { %878 = vperm.xlu0 %2617, %v3925_v11  }
 0x1c3   : > { %893 = vperm.xlu1 %2616, %v3930_v3  }
 0x1c4   : > { %884 = vperm.xlu0 %2617, %v3933_v12  }
 0x1c7   : > { %899 = vperm.xlu1 %2616, %v3938_v5  }
 0x1c8   : > { %890 = vperm.xlu0 %2617, %v3941_v4  }
 0x1cb   : > { %905 = vperm.xlu1 %2616, %v255_v32   ;;  %v260_v32 = vld [vmem:[%s2989_s30 + $0xb0] sm:$0xff] }
 0x1cc   : > { %896 = vperm.xlu0 %2617, %v3947_v17  }
 0x1cf   : > { %911 = vperm.xlu1 %2616, %v257_v9   ;;  %v265_v9 = vld [vmem:[%s2989_s30 + $0xd8] sm:$0xff] }
 0x1d0   : > { %902 = vperm.xlu0 %2617, %v254_v8   ;;  %v3961_v8 = vsel %vm1950_vm9, 1.0, %v5513_v2  ;;  %vm1954_vm9 = vcmp.ne.s32.totalorder %v3901_v13, 0 }
 0x1d1   : > { %5549 = vst [vmem:[#allocation92_spill] sm:$0xff] %v3961_v8  ;;  %v2047_v27 = vsel %vm5452_vm1, %v3961_v8, 0.0 }
 0x1d3   : > { %917 = vperm.xlu1 %2616, %v259_v57   ;;  %v3964_v57 = vsel %vm1949_vm3, 1.0, %v5513_v2  ;;  %vm1952_vm3 = vcmp.ne.s32.totalorder %v3896_v16, 0 }
 0x1d4   : > { %908 = vperm.xlu0 %2617, %v256_v30   ;;  %5550 = vst [vmem:[#allocation93_spill] sm:$0xff] %v3964_v57  ;;  %v2046_v61 = vsel %vm5452_vm1, %v3964_v57, 0.0  ;;  %v3975_v30 = vsel %vm1951_vm5, 1.0, %v5513_v2  ;;  %v3983_v8 = vsel %vm1952_vm3, 1.0, %v5513_v2  ;;  %vm1953_vm5 = vcmp.ne.s32.totalorder %v3909_v29, 0 }
 0x1d5   : > { %5551 = vst [vmem:[#allocation94_spill] sm:$0xff] %v3975_v30  ;;  %v2049_v26 = vsel %vm5452_vm1, %v3975_v30, 0.0  ;;  %5552 = vst [vmem:[#allocation95_spill] sm:$0xff] %v3983_v8  ;;  %v2051_v16 = vsel %vm5452_vm1, %v3983_v8, 0.0  ;;  %v3996_v29 = vsel %vm1954_vm9, 1.0, %v5513_v2  ;;  %vm1955_vm3 = vcmp.ne.s32.totalorder %v3917_v19, 0 }
 0x1d6   : > { %5554 = vst [vmem:[#allocation97_spill] sm:$0xff] %v3996_v29  ;;  %v2055_v8 = vsel %vm5452_vm1, %v3996_v29, 0.0  ;;  %v4002_v30 = vsel %vm1955_vm3, 1.0, %v5513_v2  ;;  %vm1957_vm9 = vcmp.ne.s32.totalorder %v3925_v11, 0  ;;  %vm1958_vm3 = vcmp.ne.s32.totalorder %v3914_v38, 0 }
 0x1d7   : > { %923 = vperm.xlu1 %2616, %v261_v1   ;;  %5555 = vst [vmem:[#allocation98_spill] sm:$0xff] %v4002_v30 }
 0x1d8   : > { %914 = vperm.xlu0 %2617, %v258_v33   ;;  %v264_v33 = vld [vmem:[%s2989_s30 + $0xd0] sm:$0xff] }
 0x1db   : > { %929 = vperm.xlu1 %2616, %v263_v43   ;;  %v3966_v1 = vpop.xlane.xlu0 %1342  ;;  %v266_v43 = vld [vmem:[%s2989_s30 + $0xe0] sm:$0xff] }
 0x1dc   : > { %920 = vperm.xlu0 %2617, %v260_v32   ;;  %2746 = vlog2.f32 %v3966_v1 }
 0x1df   : > { %935 = vperm.xlu1 %2616, %v265_v9   ;;  %v269_v9 = vld [vmem:[%s2989_s30 + $0xf8] sm:$0xff] }
 0x1e0   : > { %926 = vperm.xlu0 %2617, %v262_v63   ;;  %v1391_v32 = vpop.xlane.xlu1 %1390  ;;  %v2048_v63 = vadd.f32 %v2047_v27, %v2046_v61 }
 0x1e1   : > { %v1346_v7 = vpop.xlane.xlu0 %1345  ;;  %2748 = vlog2.f32 %v1391_v32 }
 0x1e2   : > { %v2050_v55 = vadd.f32 %v2049_v26, %v2048_v63  ;;  %2750 = vlog2.f32 %v1346_v7 }
 0x1e3   : > { %938 = vperm.xlu1 %2616, %v266_v43  }
 0x1e4   : > { %932 = vperm.xlu0 %2617, %v264_v33   ;;  %v3990_v33 = vsel %vm1953_vm5, 1.0, %v5513_v2  ;;  %v2052_v61 = vadd.f32 %v2051_v16, %v2050_v55  ;;  %vm1956_vm5 = vcmp.ne.s32.totalorder %v3906_v44, 0  ;;  %v2057_v16 = vsel %vm5452_vm1, %v4002_v30, 0.0 }
 0x1e5   : > { %v1349_v57 = vpop.xlane.xlu1 %1348  ;;  %v1394_v43 = vpop.xlane.xlu0 %1393  ;;  %5553 = vst [vmem:[#allocation96_spill] sm:$0xff] %v3990_v33  ;;  %v4020_v30 = vsel %vm1958_vm3, 1.0, %v5513_v2  ;;  %vm1961_vm3 = vcmp.ne.s32.totalorder %v3941_v4, 0 }
 0x1e6   : > { %5558 = vst [vmem:[#allocation101_spill] sm:$0xff] %v4020_v30  ;;  %2752 = vlog2.f32 %v1394_v43 }
 0x1e7   : > { %941 = vperm.xlu1 %2616, %v267_v6   ;;  %v2053_v6 = vsel %vm5452_vm1, %v3990_v33, 0.0  ;;  %v4008_v33 = vsel %vm1956_vm5, 1.0, %v5513_v2  ;;  %vm1959_vm5 = vcmp.ne.s32.totalorder %v3933_v12, 0  ;;  %2754 = vlog2.f32 %v1349_v57  ;;  %v2747_v57 = vpop.eup %2746 }
 0x1e8   : > { %947 = vperm.xlu0 %2617, %v269_v9   ;;  %v2054_v63 = vadd.f32 %v2053_v6, %v2052_v61  ;;  %5556 = vst [vmem:[#allocation99_spill] sm:$0xff] %v4008_v33  ;;  %v2059_v61 = vsel %vm5452_vm1, %v4008_v33, 0.0  ;;  %v4014_v6 = vsel %vm1957_vm9, 1.0, %v5513_v2  ;;  %vm1960_vm9 = vcmp.ne.s32.totalorder %v3922_v41, 0 }
 0x1e9   : > { %v1397_v27 = vpop.xlane.xlu1 %1396  ;;  %5557 = vst [vmem:[#allocation100_spill] sm:$0xff] %v4014_v6  ;;  %v4039_v41 = vsel %vm1961_vm3, 1.0, %v5513_v2  ;;  %vm1964_vm3 = vcmp.ne.s32.totalorder %v3938_v5, 0  ;;  %v951_v5 = vsub.s32 0, %v3320_v51 }
 0x1ea   : > { %v2056_v55 = vadd.f32 %v2055_v8, %v2054_v63  ;;  %v2061_v63 = vsel %vm5452_vm1, %v4014_v6, 0.0  ;;  %v4032_v6 = vsel %vm1960_vm9, 1.0, %v5513_v2  ;;  %5561 = vst [vmem:[#allocation104_spill] sm:$0xff] %v4039_v41  ;;  %2756 = vlog2.f32 %v1397_v27 }
 0x1eb   : > { %944 = vperm.xlu1 %2616, %v268_v54   ;;  %5560 = vst [vmem:[#allocation103_spill] sm:$0xff] %v4032_v6  ;;  %v2069_v4 = vsel %vm5452_vm1, %v4039_v41, 0.0  ;;  %vm1963_vm9 = vcmp.ne.s32.totalorder %v3947_v17, 0 }
 0x1ec   : > { %v2058_v19 = vadd.f32 %v2057_v16, %v2056_v55  ;;  %v2063_v55 = vsel %vm5452_vm1, %v4020_v30, 0.0  ;;  %v4026_v16 = vsel %vm1959_vm5, 1.0, %v5513_v2  ;;  %vm1962_vm5 = vcmp.ne.s32.totalorder %v3930_v3, 0  ;;  %v2749_v3 = vpop.eup %2748 }
 0x1ed   : > { %v1400_v9 = vpop.xlane.xlu0 %1399  ;;  %5559 = vst [vmem:[#allocation102_spill] sm:$0xff] %v4026_v16  ;;  %v4045_v7 = vsel %vm1962_vm5, 1.0, %v5513_v2 }
 0x1ee   : > { %v1352_v26 = vpop.xlane.xlu1 %1351  ;;  %v2060_v44 = vadd.f32 %v2059_v61, %v2058_v19  ;;  %v2065_v61 = vsel %vm5452_vm1, %v4026_v16, 0.0  ;;  %2758 = vlog2.f32 %v1400_v9  ;;  %5562 = vst [vmem:[#allocation105_spill] sm:$0xff] %v4045_v7  ;;  %v2071_v27 = vsel %vm5452_vm1, %v4045_v7, 0.0  ;;  %v2751_v9 = vpop.eup %2750  ;;  %v270_v7 = vld [vmem:[%s2994_s7] sm:$0x3] }
 0x1ef   : > { %2760 = vlog2.f32 %v1352_v26  ;;  %v4052_v26 = vsel %vm1963_vm9, 1.0, %v5513_v2  ;;  %v4078_v16 = vrot.slane %v270_v7, %v951_v5 }
 0x1f0   : > { %v2062_v11 = vadd.f32 %v2061_v63, %v2060_v44  ;;  %v2067_v63 = vsel %vm5452_vm1, %v4032_v6, 0.0  ;;  %5563 = vst [vmem:[#allocation106_spill] sm:$0xff] %v4052_v26 }
 0x1f1   : > { %v1355_v13 = vpop.xlane.xlu0 %1354 }
 0x1f2   : > { %v1403_v54 = vpop.xlane.xlu1 %1402  ;;  %v2064_v38 = vadd.f32 %v2063_v55, %v2062_v11  ;;  %2762 = vlog2.f32 %v1355_v13 }
 0x1f3   : > { %2764 = vlog2.f32 %v1403_v54 }
 0x1f4   : > { %v2066_v12 = vadd.f32 %v2065_v61, %v2064_v38  ;;  %v2753_v61 = vpop.eup %2752 }
 0x1f5   : > { %v2755_v17 = vpop.eup %2754  ;;  %v4074_v6 = vmul.f32 0.6931472, %v2753_v61 }
 0x1f6   : > { %v1358_v59 = vpop.xlane.xlu1 %1357  ;;  %v1406_v29 = vpop.xlane.xlu0 %1405  ;;  %v2068_v55 = vadd.f32 %v2067_v63, %v2066_v12 }
 0x1f7   : > { %2766 = vlog2.f32 %v1406_v29  ;;  %v4055_v29 = vsel %vm1964_vm3, 1.0, %v5513_v2  ;;  %v2757_v12 = vpop.eup %2756  ;;  %5568 = vst [vmem:[#allocation111_spill] sm:$0xff] %v4074_v6  ;;  %v5595_v6 = vld [vmem:[#allocation57_spill] sm:$0xff] }
 0x1f8   : > { %v2070_v43 = vadd.f32 %v2069_v4, %v2068_v55  ;;  %2768 = vlog2.f32 %v1358_v59  ;;  %5564 = vst [vmem:[#allocation107_spill] sm:$0xff] %v4055_v29  ;;  %v2073_v59 = vsel %vm5452_vm1, %v4052_v26, 0.0  ;;  %v2759_v63 = vpop.eup %2758  ;;  %v4061_v55 = vmul.f32 0.6931472, %v2747_v57 }
 0x1f9   : > { %v2761_v41 = vpop.eup %2760  ;;  %v4072_v26 = vmul.f32 0.6931472, %v2751_v9  ;;  %v4076_v57 = vmul.f32 0.6931472, %v2755_v17  ;;  %v4088_v17 = vmul.f32 0.6931472, %v2759_v63 }
 0x1fa   : > { %v1361_v8 = vpop.xlane.xlu1 %1360  ;;  %v2072_v54 = vadd.f32 %v2071_v27, %v2070_v43  ;;  %v4068_v43 = vmul.f32 0.6931472, %v2749_v3  ;;  %v4082_v3 = vmul.f32 0.6931472, %v2757_v12 }
 0x1fb   : > { %v1364_v60 = vpop.xlane.xlu0 %1363  ;;  %2770 = vlog2.f32 %v1361_v8  ;;  %v955_v8 = vsub.s32 1, %v3320_v51  ;;  %5570 = vst [vmem:[#allocation113_spill] sm:$0xff] %v4088_v17 }
 0x1fc   : > { %2772 = vlog2.f32 %v1364_v60  ;;  %5566 = vst [vmem:[#allocation109_spill] sm:$0xff] %v4068_v43  ;;  %v4070_v27 = vadd.f32 %v2073_v59, %v2072_v54  ;;  %5569 = vst [vmem:[#allocation112_spill] sm:$0xff] %v4082_v3  ;;  %v4096_v59 = vmul.f32 0.6931472, %v2761_v41 }
 0x1fd   : > { %v4080_v30 = vrot.slane %v270_v7, %v955_v8 }
 0x1fe   : > { %v1409_v33 = vpop.xlane.xlu1 %1408  ;;  %5567 = vst [vmem:[#allocation110_spill] sm:$0xff] %v4070_v27 }
 0x1ff   : > { %v1412_v19 = vpop.xlane.xlu0 %1411  ;;  %2774 = vlog2.f32 %v1409_v33  ;;  %v4066_v33 = vsel %vm5452_vm1, %v4055_v29, 0.0 }
 0x200   : > { %2776 = vlog2.f32 %v1412_v19  ;;  %5565 = vst [vmem:[#allocation108_spill] sm:$0xff] %v4066_v33  ;;  %v2763_v19 = vpop.eup %2762 }
 0x202   : > { %v1367_v44 = vpop.xlane.xlu1 %1366 }
 0x203   : > { %v1370_v11 = vpop.xlane.xlu0 %1369  ;;  %2778 = vlog2.f32 %v1367_v44  ;;  %v2765_v44 = vpop.eup %2764 }
 0x204   : > { %2780 = vlog2.f32 %v1370_v11  ;;  %v2767_v29 = vpop.eup %2766 }
 0x205   : > { %v2769_v61 = vpop.eup %2768  ;;  %v4118_v8 = vmul.f32 0.6931472, %v2767_v29 }
 0x206   : > { %v1373_v1 = vpop.xlane.xlu1 %1372  ;;  %v2771_v12 = vpop.eup %2770 }
 0x207   : > { %2782 = vlog2.f32 %v1373_v1  ;;  %v2773_v63 = vpop.eup %2772  ;;  %5572 = vst [vmem:[#allocation115_spill] sm:$0xff] %v4118_v8  ;;  %v4128_v27 = vmul.f32 0.6931472, %v2771_v12  ;;  %v5590_v8 = vld [vmem:[#allocation50_spill] sm:$0xff] }
 0x209   : > { %v2775_v1 = vpop.eup %2774 }
 0x20a   : > { %v4144_v43 = vmul.f32 0.6931472, %v2775_v1 }
 0x20b   : > { %v1376_v32 = vpop.xlane.xlu0 %1375 }
 0x20c   : > { %2784 = vlog2.f32 %v1376_v32  ;;  %5574 = vst [vmem:[#allocation116_spill] sm:$0xff] %v4144_v43 }
 0x20f   : > { %v1379_v13 = vpop.xlane.xlu1 %1378 }
 0x210   : > { %2786 = vlog2.f32 %v1379_v13  ;;  %v4110_v13 = vmul.f32 0.6931472, %v2765_v44  ;;  %v4122_v44 = vmul.f32 0.6931472, %v2769_v61  ;;  %v4136_v61 = vmul.f32 0.6931472, %v2773_v63 }
 0x212   : > { %5571 = vst [vmem:[#allocation114_spill] sm:$0xff] %v4110_v13 }
 0x213   : > { %v1382_v38 = vpop.xlane.xlu0 %1381 }
 0x214   : > { %2788 = vlog2.f32 %v1382_v38  ;;  %v4102_v38 = vmul.f32 0.6931472, %v2763_v19  ;;  %v5577_v19 = vld [vmem:[#allocation39_spill] sm:$0xff] }
 0x217   : > { %v1418_v60 = vpop.xlane.xlu0 %1417  ;;  %v1385_v4 = vpop.xlane.xlu1 %1384 }
 0x218   : > { %2790 = vlog2.f32 %v1418_v60  ;;  %v2777_v60 = vpop.eup %2776 }
 0x219   : > { %v2779_v41 = vpop.eup %2778 }
 0x21a   : > { %v2781_v33 = vpop.eup %2780  ;;  %v4148_v63 = vmul.f32 0.6931472, %v2779_v41 }
 0x21b   : > { %v1424_v11 = vpop.xlane.xlu0 %1423  ;;  %v1415_v54 = vpop.xlane.xlu1 %1414  ;;  %v4154_v13 = vmul.f32 0.6931472, %v2781_v33 }
 0x21c   : > { %2792 = vlog2.f32 %v1424_v11  ;;  %v2783_v32 = vpop.eup %2782 }
 0x21d   : > { %2794 = vlog2.f32 %v1385_v4  ;;  %v2785_v12 = vpop.eup %2784  ;;  %v4146_v4 = vmul.f32 0.6931472, %v2777_v60  ;;  %v5579_v60 = vld [vmem:[#allocation42_spill] sm:$0xff]  ;;  %v4162_v29 = vmul.f32 0.6931472, %v2783_v32 }
 0x21e   : > { %2796 = vlog2.f32 %v1415_v54  ;;  %v2787_v54 = vpop.eup %2786 }
 0x21f   : > { %v1421_v9 = vpop.xlane.xlu1 %1420  ;;  %v4112_v5 = vpop.xlane.xlu0 %1387  ;;  %5575 = vst [vmem:[#allocation117_spill] sm:$0xff] %v4146_v4  ;;  %v4176_v45 = vmul.f32 0.6931472, %v2787_v54 }
 0x220   : > { %2798 = vlog2.f32 %v1421_v9  ;;  %v2789_v9 = vpop.eup %2788 }
 0x221   : > { %5587 = vst [vmem:[#allocation40_spill] sm:$0xff] %v4176_v45  ;;  %v4178_v40 = vmul.f32 0.6931472, %v2789_v9 }
 0x222   : > { %v2791_v21 = vpop.eup %2790 }
 0x223   : > { %v1427_v7 = vpop.xlane.xlu1 %1426  ;;  %v1430_v11 = vpop.xlane.xlu0 %1429  ;;  %5588 = vst [vmem:[#allocation42_spill] sm:$0xff] %v4178_v40  ;;  %v4190_v9 = vmul.f32 0.6931472, %v2791_v21  ;;  %v5605_v40 = vsub.f32 %v3509_v39, %v4072_v26 }
 0x224   : > { %2800 = vlog2.f32 %v1427_v7  ;;  %v5580_v7 = vld [vmem:[#allocation44_spill] sm:$0xff] }
 0x225   : > { %2802 = vlog2.f32 %v1430_v11  ;;  %v4164_v11 = vmul.f32 0.6931472, %v2785_v12  ;;  %v5593_v12 = vld [vmem:[#allocation56_spill] sm:$0xff]  ;;  %5594 = vst [vmem:[#allocation44_spill] sm:$0xff] %v4190_v9 }
 0x226   : > { %v2793_v41 = vpop.eup %2792 }
 0x227   : > { %5581 = vst [vmem:[#allocation39_spill] sm:$0xff] %v4164_v11  ;;  %v1433_v34 = vpop.xlane.xlu1 %1432  ;;  %v1436_v3 = vpop.xlane.xlu0 %1435  ;;  %v4198_v15 = vmul.f32 0.6931472, %v2793_v41 }
 0x228   : > { %2804 = vlog2.f32 %v1433_v34  ;;  %v2795_v33 = vpop.eup %2794  ;;  %v5592_v34 = vld [vmem:[#allocation55_spill] sm:$0xff] }
 0x229   : > { %2806 = vlog2.f32 %v1436_v3  ;;  %v2797_v43 = vpop.eup %2796  ;;  %5597 = vst [vmem:[#allocation46_spill] sm:$0xff] %v4198_v15 }
 0x22a   : > { %v2799_v17 = vpop.eup %2798  ;;  %2808 = vlog2.f32 %v4112_v5  ;;  %v4222_v0 = vmul.f32 0.6931472, %v2797_v43 }
 0x22b   : > { %v858_v32 = vpop.permute.xlu1 %857  ;;  %v4224_v41 = vmul.f32 0.6931472, %v2799_v17  ;;  %v5608_v17 = vld [vmem:[#allocation61_spill] sm:$0xff] }
 0x22c   : > { %vm959_vm5 = vcmp.eq.s32.totalorder %v858_v32, %v4078_v16  ;;  %vm960_vm9 = vcmp.eq.s32.totalorder %v858_v32, %v4080_v30  ;;  %v4214_v32 = vmul.f32 0.6931472, %v2795_v33 }
 0x22d   : > { %vm1023_vm3 = vmand %vm959_vm5, %vm727_vm4  ;;  %v1088_v5 = vsel %vm960_vm9, 1.0, %v5513_v2 }
 0x22e   : > { %v2801_v14 = vpop.eup %2800  ;;  %5601 = vst [vmem:[#allocation50_spill] sm:$0xff] %v4214_v32  ;;  %v1087_v21 = vsel %vm1023_vm3, 1.0, %v5513_v2  ;;  %v1664_v51 = vmul.f32 %v5605_v40, %v1088_v5 }
 0x22f   : > { %v2803_v18 = vpop.eup %2802  ;;  %v864_v45 = vpop.permute.xlu1 %863  ;;  %v1568_v53 = vadd.f32 %v1088_v5, %v1087_v21  ;;  %v4232_v32 = vmul.f32 0.6931472, %v2801_v14  ;;  %v5604_v14 = vsub.f32 %v3503_v35, %v4072_v26  ;;  %v5613_v5 = vld [vmem:[#allocation76_spill] sm:$0xff]  ;;  %v5617_v35 = vsub.f32 %v3473_v24, %v4061_v55 }
 0x230   : > { %v855_v1 = vpop.permute.xlu0 %854  ;;  %vm963_vm9 = vcmp.eq.s32.totalorder %v864_v45, %v4078_v16  ;;  %v4241_v10 = vmul.f32 0.6931472, %v2803_v18 }
 0x231   : > { %vm957_vm4 = vcmp.eq.s32.totalorder %v855_v1, %v4078_v16  ;;  %vm958_vm5 = vcmp.eq.s32.totalorder %v855_v1, %v4080_v30  ;;  %1569 = vadd.xlane.f32.xlu0 %v1568_v53  ;;  %v1663_v54 = vmul.f32 %v5604_v14, %v1087_v21  ;;  %vm4265_vm1 = vmand %vm963_vm9, %vm731_vm8 }
 0x232   : > { %vm1021_vm3 = vmand %vm957_vm4, %vm725_vm2  ;;  %v1086_v43 = vsel %vm958_vm5, 1.0, %v5513_v2  ;;  %v2805_v4 = vpop.eup %2804 }
 0x233   : > { %v1085_v1 = vsel %vm1021_vm3, 1.0, %v5513_v2  ;;  %v870_v33 = vpop.permute.xlu1 %869  ;;  %v2807_v3 = vpop.eup %2806  ;;  %vm964_vm3 = vcmp.eq.s32.totalorder %v864_v45, %v4080_v30  ;;  %v4271_v26 = vmul.f32 0.6931472, %v2805_v4  ;;  %v4284_v4 = vadd.f32 %v1664_v51, %v1663_v54 }
 0x234   : > { %v861_v15 = vpop.permute.xlu0 %860  ;;  %v1565_v18 = vadd.f32 %v1086_v43, %v1085_v1  ;;  %vm967_vm2 = vcmp.eq.s32.totalorder %v870_v33, %v4078_v16  ;;  %v4286_v11 = vpop.eup %2808  ;;  %v4288_v21 = vmul.f32 0.6931472, %v2807_v3  ;;  %v1092_v14 = vsel %vm964_vm3, 1.0, %v5513_v2 }
 0x235   : > { %vm961_vm4 = vcmp.eq.s32.totalorder %v861_v15, %v4078_v16  ;;  %vm962_vm5 = vcmp.eq.s32.totalorder %v861_v15, %v4080_v30  ;;  %5614 = vst [vmem:[#allocation52_spill] sm:$0xff] %v4286_v11  ;;  %v1091_v3 = vsel %vm4265_vm1, 1.0, %v5513_v2  ;;  %v5616_v51 = vsub.f32 %v3469_v20, %v4061_v55 }
 0x236   : > { %vm1025_vm7 = vmand %vm961_vm4, %vm729_vm6  ;;  %1566 = vadd.xlane.f32.xlu1 %v1565_v18  ;;  %v1090_v15 = vsel %vm962_vm5, 1.0, %v5513_v2  ;;  %vm968_vm6 = vcmp.eq.s32.totalorder %v870_v33, %v4080_v30  ;;  %v1574_v54 = vadd.f32 %v1092_v14, %v1091_v3  ;;  %v1662_v9 = vmul.f32 %v5617_v35, %v1086_v43 }
 0x237   : > { %v1089_v40 = vsel %vm1025_vm7, 1.0, %v5513_v2  ;;  %v876_v18 = vpop.permute.xlu1 %875  ;;  %vm1031_vm7 = vmand %vm967_vm2, %vm735_vm12  ;;  %v1661_v33 = vmul.f32 %v5616_v51, %v1085_v1  ;;  %v1096_v36 = vsel %vm968_vm6, 1.0, %v5513_v2  ;;  %v5620_v20 = vsub.f32 %v3533_v22, %v4076_v57  ;;  %v5621_v51 = vld [vmem:[#allocation87_spill] sm:$0xff] }
 0x238   : > { %v867_v58 = vpop.permute.xlu0 %866  ;;  %v1571_v53 = vadd.f32 %v1090_v15, %v1089_v40  ;;  %vm971_vm8 = vcmp.eq.s32.totalorder %v876_v18, %v4078_v16  ;;  %v1095_v39 = vsel %vm1031_vm7, 1.0, %v5513_v2 }
 0x239   : > { %vm965_vm9 = vcmp.eq.s32.totalorder %v867_v58, %v4078_v16  ;;  %vm966_vm4 = vcmp.eq.s32.totalorder %v867_v58, %v4080_v30  ;;  %v1666_v1 = vmul.f32 %v5620_v20, %v1090_v15  ;;  %vm4334_vm1 = vmand %vm971_vm8, %vm739_vm15  ;;  %v1580_v35 = vadd.f32 %v1096_v36, %v1095_v39 }
 0x23a   : > { %1572 = vadd.xlane.f32.xlu1 %v1571_v53  ;;  %vm1029_vm12 = vmand %vm965_vm9, %vm733_vm10  ;;  %v5619_v53 = vsub.f32 %v3529_v49, %v4076_v57  ;;  %vm972_vm10 = vcmp.eq.s32.totalorder %v876_v18, %v4080_v30  ;;  %v1094_v57 = vsel %vm966_vm4, 1.0, %v5513_v2  ;;  %v5626_v20 = vsub.f32 %v3550_v42, %v4096_v59 }
 0x23b   : > { %v1093_v15 = vsel %vm1029_vm12, 1.0, %v5513_v2  ;;  %v5627_v58 = vsub.f32 %v3554_v48, %v4096_v59  ;;  %v1100_v42 = vsel %vm972_vm10, 1.0, %v5513_v2  ;;  %v5632_v18 = vsub.f32 %v3573_v56, %v4102_v38 }
 0x23c   : > { %v1665_v45 = vmul.f32 %v5619_v53, %v1089_v40  ;;  %v882_v40 = vpop.permute.xlu1 %881  ;;  %v873_v22 = vpop.permute.xlu0 %872  ;;  %v4345_v53 = vadd.f32 %v1662_v9, %v1661_v33  ;;  %v1667_v11 = vmul.f32 %v5626_v20, %v1091_v3  ;;  %v1099_v9 = vsel %vm4334_vm1, 1.0, %v5513_v2 }
 0x23d   : > { %vm975_vm2 = vcmp.eq.s32.totalorder %v882_v40, %v4078_v16  ;;  %vm969_vm5 = vcmp.eq.s32.totalorder %v873_v22, %v4078_v16  ;;  %vm970_vm3 = vcmp.eq.s32.totalorder %v873_v22, %v4080_v30  ;;  %v1668_v43 = vmul.f32 %v5627_v58, %v1092_v14 }
 0x23e   : > { %1575 = vadd.xlane.f32.xlu1 %v1574_v54  ;;  %vm1033_vm15 = vmand %vm969_vm5, %vm737_vm14  ;;  %v1098_v22 = vsel %vm970_vm3, 1.0, %v5513_v2  ;;  %v4357_v46 = vadd.f32 %v1666_v1, %v1665_v45  ;;  %vm976_vm6 = vcmp.eq.s32.totalorder %v882_v40, %v4080_v30  ;;  %v1577_v45 = vadd.f32 %v1094_v57, %v1093_v15 }
 0x23f   : > { %vm4371_vm14 = vmand %vm975_vm2, %vm743_vm0  ;;  %v1097_v54 = vsel %vm1033_vm15, 1.0, %v5513_v2  ;;  %v1670_v33 = vmul.f32 %v5632_v18, %v1094_v57  ;;  %v5633_v1 = vsub.f32 %v3569_v31, %v4102_v38  ;;  %v4392_v57 = vadd.f32 %v1100_v42, %v1099_v9 }
 0x240   : > { %v888_v14 = vpop.permute.xlu1 %887  ;;  %v879_v3 = vpop.permute.xlu0 %878  ;;  %v1583_v56 = vadd.f32 %v1098_v22, %v1097_v54  ;;  %v4394_v58 = vadd.f32 %v1668_v43, %v1667_v11  ;;  %v5637_v48 = vsub.f32 %v5577_v19, %v4122_v44  ;;  %v5639_v31 = vsub.f32 %v5578_v25, %v4122_v44 }
 0x241   : > { %vm979_vm7 = vcmp.eq.s32.totalorder %v888_v14, %v4078_v16  ;;  %vm973_vm8 = vcmp.eq.s32.totalorder %v879_v3, %v4078_v16  ;;  %vm974_vm9 = vcmp.eq.s32.totalorder %v879_v3, %v4080_v30  ;;  %v1669_v24 = vmul.f32 %v5633_v1, %v1093_v15 }
 0x242   : > { %vm4388_vm0 = vmand %vm979_vm7, %vm747_vm13  ;;  %1578 = vadd.xlane.f32.xlu1 %v1577_v45  ;;  %v1671_v18 = vmul.f32 %v5637_v48, %v1095_v39  ;;  %v1672_v38 = vmul.f32 %v5639_v31, %v1096_v36  ;;  %v1103_v15 = vsel %vm4371_vm14, 1.0, %v5513_v2  ;;  %v1104_v43 = vsel %vm976_vm6, 1.0, %v5513_v2  ;;  %1584 = vadd.xlane.f32.xlu0 %v1583_v56  ;;  %v5647_v45 = vld [vmem:[#allocation48_spill] sm:$0xff] }
 0x243   : > { %vm1037_vm4 = vmand %vm973_vm8, %vm741_vm11  ;;  %v5640_v19 = vsub.f32 %v5580_v7, %v4128_v27  ;;  %vm980_vm13 = vcmp.eq.s32.totalorder %v888_v14, %v4080_v30  ;;  %v1102_v36 = vsel %vm974_vm9, 1.0, %v5513_v2  ;;  %v5641_v44 = vsub.f32 %v5579_v60, %v4128_v27 }
 0x244   : > { %v894_v55 = vpop.permute.xlu1 %893  ;;  %v885_v11 = vpop.permute.xlu0 %884  ;;  %v1101_v25 = vsel %vm1037_vm4, 1.0, %v5513_v2  ;;  %v4425_v7 = vadd.f32 %v1670_v33, %v1669_v24  ;;  %v4434_v3 = vadd.f32 %v1104_v43, %v1103_v15  ;;  %v5646_v27 = vsub.f32 %v5582_v23, %v4136_v61  ;;  %v5649_v24 = vld [vmem:[#allocation34_spill] sm:$0xff] }
 0x245   : > { %v1674_v39 = vmul.f32 %v5640_v19, %v1098_v22  ;;  %v1673_v40 = vmul.f32 %v5641_v44, %v1097_v54  ;;  %vm983_vm11 = vcmp.eq.s32.totalorder %v894_v55, %v4078_v16  ;;  %vm977_vm12 = vcmp.eq.s32.totalorder %v885_v11, %v4078_v16  ;;  %v5642_v22 = vld [vmem:[#allocation59_spill] sm:$0xff] }
 0x246   : > { %vm978_vm10 = vcmp.eq.s32.totalorder %v885_v11, %v4080_v30  ;;  %vm5643_vm1 = vcmp.ne.s32.totalorder %v5642_v22, %v3322_v52  ;;  %1581 = vadd.xlane.f32.xlu1 %v1580_v35  ;;  %v1675_v60 = vmul.f32 %v5646_v27, %v1099_v9  ;;  %v5648_v54 = vsub.f32 %v5647_v45, %v4136_v61  ;;  %v5663_v22 = vld [vmem:[#allocation85_spill] sm:$0xff] }
 0x247   : > { %vm4430_vm2 = vmand %vm983_vm11, %vm5643_vm1  ;;  %v1107_v33 = vsel %vm4388_vm0, 1.0, %v5513_v2  ;;  %vm984_vm5 = vcmp.eq.s32.totalorder %v894_v55, %v4080_v30  ;;  %vm5650_vm3 = vcmp.ne.s32.totalorder %v5649_v24, %v3322_v52  ;;  %v1108_v35 = vsel %vm980_vm13, 1.0, %v5513_v2  ;;  %1729 = vadd.xlane.f32.xlu0 %v4284_v4  ;;  %v5671_v24 = vld [vmem:[#allocation86_spill] sm:$0xff] }
 0x248   : > { %v1676_v1 = vmul.f32 %v5648_v54, %v1100_v42  ;;  %vm1041_vm15 = vmand %vm977_vm12, %vm5650_vm3  ;;  %v5651_v23 = vsub.f32 %v5590_v8, %v4148_v63  ;;  %v5652_v61 = vsub.f32 %v5591_v50, %v4148_v63  ;;  %v900_v49 = vpop.permute.xlu1 %899  ;;  %v891_v20 = vpop.permute.xlu0 %890  ;;  %v4459_v56 = vadd.f32 %v1672_v38, %v1671_v18 }
 0x249   : > { %v4461_v48 = vadd.f32 %v1674_v39, %v1673_v40  ;;  %v1106_v14 = vsel %vm978_vm10, 1.0, %v5513_v2  ;;  %v5653_v8 = vsub.f32 %v5592_v34, %v4154_v13  ;;  %vm981_vm6 = vcmp.eq.s32.totalorder %v891_v20, %v4078_v16 }
 0x24a   : > { %v1677_v9 = vmul.f32 %v5651_v23, %v1101_v25  ;;  %v1678_v42 = vmul.f32 %v5652_v61, %v1102_v36  ;;  %vm982_vm14 = vcmp.eq.s32.totalorder %v891_v20, %v4080_v30  ;;  %v1105_v50 = vsel %vm1041_vm15, 1.0, %v5513_v2  ;;  %1726 = vadd.xlane.f32.xlu1 %v4345_v53  ;;  %v5673_v20 = vld [vmem:[#allocation39_spill] sm:$0xff] }
 0x24b   : > { %v1679_v31 = vmul.f32 %v5653_v8, %v1103_v15  ;;  %v5654_v63 = vsub.f32 %v5593_v12, %v4154_v13  ;;  %vm987_vm7 = vcmp.eq.s32.totalorder %v900_v49, %v4078_v16  ;;  %v4477_v18 = vadd.f32 %v1108_v35, %v1107_v33  ;;  %v5657_v12 = vld [vmem:[#allocation81_spill] sm:$0xff]  ;;  %1732 = vadd.xlane.f32.xlu0 %v4357_v46 }
 0x24c   : > { %v4482_v34 = vsel %vm4430_vm2, 1.0, %v5513_v2  ;;  %v4487_v38 = vsel %vm984_vm5, 1.0, %v5513_v2  ;;  %v1589_v15 = vadd.f32 %v1102_v36, %v1101_v25  ;;  %v4489_v19 = vadd.f32 %v1676_v1, %v1675_v60  ;;  %v906_v55 = vpop.permute.xlu1 %905  ;;  %v897_v11 = vpop.permute.xlu0 %896  ;;  %v5668_v60 = vld [vmem:[#allocation9_spill] sm:$0xff] }
 0x24d   : > { %v1680_v4 = vmul.f32 %v5654_v63, %v1104_v43  ;;  %5655 = vst [vmem:[#allocation55_spill] sm:$0xff] %v4482_v34  ;;  %5656 = vst [vmem:[#allocation56_spill] sm:$0xff] %v4487_v38  ;;  %v4491_v13 = vadd.f32 %v1678_v42, %v1677_v9  ;;  %vm988_vm8 = vcmp.eq.s32.totalorder %v900_v49, %v4080_v30  ;;  %v5658_v43 = vld [vmem:[#allocation54_spill] sm:$0xff]  ;;  %v1110_v36 = vsel %vm982_vm14, 1.0, %v5513_v2  ;;  %v5672_v42 = vld [vmem:[#allocation63_spill] sm:$0xff] }
 0x24e   : > { %vm5659_vm9 = vcmp.ne.s32.totalorder %v5658_v43, %v3322_v52  ;;  %v4504_v25 = vadd.f32 %v1106_v14, %v1105_v50  ;;  %v5662_v44 = vsub.f32 %v5596_v37, %v4162_v29  ;;  %vm5664_vm4 = vcmp.ne.s32.totalorder %v5663_v22, %v3322_v52  ;;  %v5667_v37 = vld [vmem:[#allocation11_spill] sm:$0xff]  ;;  %1587 = vadd.xlane.f32.xlu1 %v4392_v57  ;;  %v5680_v43 = vld [vmem:[#allocation68_spill] sm:$0xff] }
 0x24f   : > { %vm4499_vm0 = vmand %vm981_vm6, %vm5659_vm9  ;;  %vm991_vm11 = vcmp.eq.s32.totalorder %v906_v55, %v4078_v16  ;;  %vm992_vm12 = vcmp.eq.s32.totalorder %v906_v55, %v4080_v30  ;;  %v4523_v46 = vadd.f32 %v1680_v4, %v1679_v31  ;;  %v4527_v27 = vadd.f32 %v4487_v38, %v4482_v34  ;;  %v5675_v31 = vld [vmem:[#allocation64_spill] sm:$0xff]  ;;  %1735 = vadd.xlane.f32.xlu0 %v4394_v58  ;;  %v5684_v58 = vld [vmem:[#allocation15_spill] sm:$0xff] }
 0x250   : > { %v1682_v40 = vmul.f32 %v5662_v44, %v1106_v14  ;;  %vm4517_vm13 = vmand %vm987_vm7, %vm5664_vm4  ;;  %vm5669_vm10 = vcmp.ne.s32.totalorder %v5667_v37, %v5668_v60  ;;  %v1119_v45 = vsel %vm991_vm11, 1.0, %v5513_v2  ;;  %vm985_vm2 = vcmp.eq.s32.totalorder %v897_v11, %v4078_v16  ;;  %v5686_v55 = vld [vmem:[#allocation69_spill] sm:$0xff]  ;;  %v5687_v44 = vld [vmem:[#allocation40_spill] sm:$0xff] }
 0x251   : > { %vm1056_vm1 = vmand %vm992_vm12, %vm5669_vm10  ;;  %v5670_v54 = vsub.f32 %v5595_v6, %v4162_v29  ;;  %v1109_v61 = vsel %vm4499_vm0, 1.0, %v5513_v2  ;;  %v5674_v14 = vsub.f32 %v5672_v42, %v5673_v20  ;;  %v5676_v57 = vsub.f32 %v5675_v31, %v5673_v20  ;;  %v912_v6 = vpop.permute.xlu1 %911  ;;  %v903_v29 = vpop.permute.xlu0 %902  ;;  %v5689_v37 = vld [vmem:[#allocation27_spill] sm:$0xff]  ;;  %v5692_v31 = vld [vmem:[#allocation8_spill] sm:$0xff] }
 0x252   : > { %v1120_v9 = vsel %vm1056_vm1, 1.0, %v5513_v2  ;;  %vm986_vm5 = vcmp.eq.s32.totalorder %v897_v11, %v4080_v30  ;;  %vm5681_vm3 = vcmp.ne.s32.totalorder %v5680_v43, %v3322_v52  ;;  %vm995_vm6 = vcmp.eq.s32.totalorder %v912_v6, %v4078_v16  ;;  %1590 = vadd.xlane.f32.xlu1 %v1589_v15 }
 0x253   : > { %v1681_v1 = vmul.f32 %v5670_v54, %v1105_v50  ;;  %v1683_v8 = vmul.f32 %v5674_v14, %v1107_v33  ;;  %v1684_v63 = vmul.f32 %v5676_v57, %v1108_v35  ;;  %v4550_v4 = vadd.f32 %v1120_v9, %v1119_v45  ;;  %vm4569_vm15 = vmand %vm985_vm2, %vm5681_vm3  ;;  %v5690_v54 = vld [vmem:[#allocation111_spill] sm:$0xff]  ;;  %1738 = vadd.xlane.f32.xlu0 %v4425_v7  ;;  %v5699_v35 = vld [vmem:[#allocation28_spill] sm:$0xff] }
 0x254   : > { %v4557_v50 = vsel %vm4517_vm13, 1.0, %v5513_v2  ;;  %v4562_v33 = vsel %vm988_vm8, 1.0, %v5513_v2  ;;  %vm996_vm14 = vcmp.eq.s32.totalorder %v912_v6, %v4080_v30  ;;  %vm989_vm7 = vcmp.eq.s32.totalorder %v903_v29, %v4078_v16  ;;  %v5697_v7 = vld [vmem:[#allocation19_spill] sm:$0xff] }
 0x255   : > { %5677 = vst [vmem:[#allocation57_spill] sm:$0xff] %v4550_v4  ;;  %5678 = vst [vmem:[#allocation58_spill] sm:$0xff] %v4557_v50  ;;  %vm990_vm9 = vcmp.eq.s32.totalorder %v903_v29, %v4080_v30  ;;  %vm5685_vm8 = vcmp.ne.s32.totalorder %v5684_v58, %v5668_v60  ;;  %v1123_v52 = vsel %vm995_vm6, 1.0, %v5513_v2  ;;  %v4581_v49 = vadd.f32 %v1110_v36, %v1109_v61 }
 0x256   : > { %5679 = vst [vmem:[#allocation10_spill] sm:$0xff] %v4562_v33  ;;  %vm1060_vm0 = vmand %vm996_vm14, %vm5685_vm8  ;;  %v4583_v39 = vadd.f32 %v1682_v40, %v1681_v1  ;;  %v5688_v22 = vsub.f32 %v5686_v55, %v5687_v44  ;;  %v5691_v42 = vsub.f32 %v5689_v37, %v5690_v54  ;;  %vm5693_vm4 = vcmp.ne.s32.totalorder %v5692_v31, %v5668_v60  ;;  %v909_v1 = vpop.permute.xlu0 %908  ;;  %v5701_v37 = vld [vmem:[#allocation13_spill] sm:$0xff] }
 0x257   : > { %v1124_v14 = vsel %vm1060_vm0, 1.0, %v5513_v2  ;;  %vm1054_vm13 = vmand %vm990_vm9, %vm5693_vm4  ;;  %v4602_v15 = vsel %vm986_vm5, 1.0, %v5513_v2  ;;  %v4605_v40 = vsel %vm989_vm7, 1.0, %v5513_v2  ;;  %v4613_v57 = vsel %vm4569_vm15, 1.0, %v5513_v2  ;;  %1593 = vadd.xlane.f32.xlu1 %v4434_v3  ;;  %1741 = vadd.xlane.f32.xlu0 %v4459_v56 }
 0x258   : > { %v4588_v59 = vmul.f32 %v5688_v22, %v1110_v36  ;;  %v4593_v20 = vmul.f32 %v5691_v42, %v1119_v45  ;;  %5694 = vst [vmem:[#allocation62_spill] sm:$0xff] %v4602_v15  ;;  %v4607_v36 = vadd.f32 %v1124_v14, %v1123_v52  ;;  %v918_v45 = vpop.permute.xlu1 %917  ;;  %5696 = vst [vmem:[#allocation14_spill] sm:$0xff] %v4613_v57  ;;  %v4618_v11 = vsel %vm1054_vm13, 1.0, %v5513_v2  ;;  %v5703_v42 = vld [vmem:[#allocation67_spill] sm:$0xff] }
 0x259   : > { %v4615_v6 = vadd.f32 %v1684_v63, %v1683_v8  ;;  %vm999_vm11 = vcmp.eq.s32.totalorder %v918_v45, %v4078_v16  ;;  %vm1000_vm12 = vcmp.eq.s32.totalorder %v918_v45, %v4080_v30  ;;  %vm993_vm10 = vcmp.eq.s32.totalorder %v909_v1, %v4078_v16 }
 0x25a   : > { %5695 = vst [vmem:[#allocation61_spill] sm:$0xff] %v4607_v36  ;;  %vm994_vm1 = vcmp.eq.s32.totalorder %v909_v1, %v4080_v30  ;;  %vm5698_vm2 = vcmp.ne.s32.totalorder %v5697_v7, %v5668_v60  ;;  %v1127_v29 = vsel %vm999_vm11, 1.0, %v5513_v2  ;;  %v1121_v8 = vsel %vm993_vm10, 1.0, %v5513_v2  ;;  %v5705_v1 = vld [vmem:[#allocation32_spill] sm:$0xff]  ;;  %v5706_v7 = vld [vmem:[#allocation113_spill] sm:$0xff] }
 0x25b   : > { %vm1064_vm5 = vmand %vm1000_vm12, %vm5698_vm2  ;;  %v4632_v63 = vadd.f32 %v4562_v33, %v4557_v50  ;;  %v4636_v43 = vadd.f32 %v4618_v11, %v4605_v40  ;;  %v5700_v58 = vsub.f32 %v5699_v35, %v5690_v54  ;;  %vm5702_vm3 = vcmp.ne.s32.totalorder %v5701_v37, %v5668_v60  ;;  %v5708_v35 = vld [vmem:[#allocation33_spill] sm:$0xff]  ;;  %1596 = vadd.xlane.f32.xlu1 %v4504_v25  ;;  %v5727_v25 = vld [vmem:[#allocation47_spill] sm:$0xff] }
 0x25c   : > { %v1128_v22 = vsel %vm1064_vm5, 1.0, %v5513_v2  ;;  %vm1058_vm15 = vmand %vm994_vm1, %vm5702_vm3  ;;  %v4649_v3 = vadd.f32 %v4602_v15, %v4613_v57  ;;  %v5704_v31 = vsub.f32 %v5703_v42, %v5687_v44  ;;  %v5707_v54 = vsub.f32 %v5705_v1, %v5706_v7  ;;  %v924_v36 = vpop.permute.xlu1 %923  ;;  %v915_v44 = vpop.permute.xlu0 %914  ;;  %v5712_v42 = vld [vmem:[#allocation115_spill] sm:$0xff]  ;;  %v5716_v1 = vld [vmem:[#allocation112_spill] sm:$0xff]  ;;  %1744 = vadd.xlane.f32.xlu0 %v4461_v48 }
 0x25d   : > { %v4641_v55 = vmul.f32 %v5700_v58, %v1120_v9  ;;  %v5709_v58 = vsub.f32 %v5708_v35, %v5706_v7  ;;  %v4666_v37 = vadd.f32 %v1128_v22, %v1127_v29  ;;  %v1122_v53 = vsel %vm1058_vm15, 1.0, %v5513_v2  ;;  %v5718_v35 = vld [vmem:[#allocation23_spill] sm:$0xff]  ;;  %v5733_v50 = vld [vmem:[#allocation36_spill] sm:$0xff] }
 0x25e   : > { %v4654_v45 = vmul.f32 %v5704_v31, %v1109_v61  ;;  %v4659_v9 = vmul.f32 %v5707_v54, %v1123_v52  ;;  %v5711_v61 = vld [vmem:[#allocation38_spill] sm:$0xff]  ;;  %v4675_v52 = vadd.f32 %v1122_v53, %v1121_v8  ;;  %vm1003_vm6 = vcmp.eq.s32.totalorder %v924_v36, %v4078_v16  ;;  %v5751_v57 = vld [vmem:[#allocation116_spill] sm:$0xff] }
 0x25f   : > { %v4664_v23 = vmul.f32 %v5709_v58, %v1124_v14  ;;  %5710 = vst [vmem:[#allocation12_spill] sm:$0xff] %v4666_v37  ;;  %v5713_v31 = vsub.f32 %v5711_v61, %v5712_v42  ;;  %vm1004_vm14 = vcmp.eq.s32.totalorder %v924_v36, %v4080_v30  ;;  %v5715_v14 = vld [vmem:[#allocation29_spill] sm:$0xff]  ;;  %vm5719_vm7 = vcmp.ne.s32.totalorder %v5718_v35, %v5668_v60  ;;  %v5722_v61 = vld [vmem:[#allocation30_spill] sm:$0xff] }
 0x260   : > { %5714 = vst [vmem:[#allocation76_spill] sm:$0xff] %v4675_v52  ;;  %v5717_v7 = vsub.f32 %v5715_v14, %v5716_v1  ;;  %vm1068_vm9 = vmand %vm1004_vm14, %vm5719_vm7  ;;  %v1131_v56 = vsel %vm1003_vm6, 1.0, %v5513_v2  ;;  %vm997_vm8 = vcmp.eq.s32.totalorder %v915_v44, %v4078_v16  ;;  %vm998_vm0 = vcmp.eq.s32.totalorder %v915_v44, %v4080_v30  ;;  %v5728_v37 = vld [vmem:[#allocation117_spill] sm:$0xff]  ;;  %1599 = vadd.xlane.f32.xlu1 %v4477_v18 }
 0x261   : > { %v4673_v33 = vmul.f32 %v5713_v31, %v1127_v29  ;;  %v5720_v29 = vld [vmem:[#allocation41_spill] sm:$0xff]  ;;  %v1132_v14 = vsel %vm1068_vm9, 1.0, %v5513_v2  ;;  %v1125_v44 = vsel %vm997_vm8, 1.0, %v5513_v2  ;;  %1747 = vadd.xlane.f32.xlu0 %v4489_v19  ;;  %v5757_v19 = vld [vmem:[#allocation26_spill] sm:$0xff] }
 0x262   : > { %v4682_v54 = vmul.f32 %v5717_v7, %v1121_v8  ;;  %v5721_v36 = vsub.f32 %v5720_v29, %v5712_v42  ;;  %v5723_v8 = vsub.f32 %v5722_v61, %v5716_v1  ;;  %v5724_v7 = vld [vmem:[#allocation17_spill] sm:$0xff]  ;;  %v4706_v35 = vadd.f32 %v1132_v14, %v1131_v56  ;;  %v930_v61 = vpop.permute.xlu1 %929 }
 0x263   : > { %vm5725_vm4 = vcmp.ne.s32.totalorder %v5724_v7, %v5668_v60  ;;  %v5729_v42 = vsub.f32 %v5727_v25, %v5728_v37  ;;  %v5730_v29 = vld [vmem:[#allocation49_spill] sm:$0xff]  ;;  %vm1007_vm11 = vcmp.eq.s32.totalorder %v930_v61, %v4078_v16  ;;  %vm1008_vm12 = vcmp.eq.s32.totalorder %v930_v61, %v4080_v30 }
 0x264   : > { %v4694_v58 = vmul.f32 %v5721_v36, %v1128_v22  ;;  %v4699_v31 = vmul.f32 %v5723_v8, %v1122_v53  ;;  %vm1062_vm13 = vmand %vm998_vm0, %vm5725_vm4  ;;  %5726 = vst [vmem:[#allocation18_spill] sm:$0xff] %v4706_v35  ;;  %v5731_v1 = vsub.f32 %v5730_v29, %v5728_v37  ;;  %v921_v8 = vpop.permute.xlu0 %920  ;;  %v5734_v35 = vld [vmem:[#allocation114_spill] sm:$0xff]  ;;  %v5736_v37 = vld [vmem:[#allocation37_spill] sm:$0xff]  ;;  %v1135_v48 = vsel %vm1007_vm11, 1.0, %v5513_v2  ;;  %1602 = vadd.xlane.f32.xlu1 %v4581_v49 }
 0x265   : > { %v4711_v22 = vmul.f32 %v5729_v42, %v1131_v56  ;;  %v1126_v36 = vsel %vm1062_vm13, 1.0, %v5513_v2  ;;  %v5735_v52 = vsub.f32 %v5733_v50, %v5734_v35  ;;  %v5737_v56 = vsub.f32 %v5736_v37, %v5734_v35  ;;  %v5738_v25 = vld [vmem:[#allocation53_spill] sm:$0xff]  ;;  %v5743_v29 = vld [vmem:[#allocation22_spill] sm:$0xff]  ;;  %1750 = vadd.xlane.f32.xlu0 %v4491_v13 }
 0x266   : > { %v4716_v53 = vmul.f32 %v5731_v1, %v1132_v14  ;;  %v4720_v7 = vadd.f32 %v1126_v36, %v1125_v44  ;;  %vm5739_vm10 = vcmp.ne.s32.totalorder %v5738_v25, %v5668_v60  ;;  %vm1001_vm2 = vcmp.eq.s32.totalorder %v921_v8, %v4078_v16  ;;  %v5746_v61 = vld [vmem:[#allocation109_spill] sm:$0xff]  ;;  %v936_v38 = vpop.permute.xlu1 %935 }
 0x267   : > { %v4725_v15 = vmul.f32 %v5735_v52, %v1125_v44  ;;  %v4732_v14 = vmul.f32 %v5737_v56, %v1126_v36  ;;  %vm1072_vm1 = vmand %vm1008_vm12, %vm5739_vm10  ;;  %vm1002_vm5 = vcmp.eq.s32.totalorder %v921_v8, %v4080_v30  ;;  %v5740_v52 = vld [vmem:[#allocation70_spill] sm:$0xff]  ;;  %v5741_v44 = vld [vmem:[#allocation44_spill] sm:$0xff]  ;;  %vm5744_vm3 = vcmp.ne.s32.totalorder %v5743_v29, %v5668_v60 }
 0x268   : > { %5732 = vst [vmem:[#allocation16_spill] sm:$0xff] %v4720_v7  ;;  %v1136_v50 = vsel %vm1072_vm1, 1.0, %v5513_v2  ;;  %v5742_v42 = vsub.f32 %v5740_v52, %v5741_v44  ;;  %vm1066_vm15 = vmand %vm1002_vm5, %vm5744_vm3  ;;  %v1129_v1 = vsel %vm1001_vm2, 1.0, %v5513_v2  ;;  %v5745_v36 = vld [vmem:[#allocation25_spill] sm:$0xff]  ;;  %v927_v34 = vpop.permute.xlu0 %926  ;;  %vm1011_vm6 = vcmp.eq.s32.totalorder %v936_v38, %v4078_v16  ;;  %1605 = vadd.xlane.f32.xlu1 %v4527_v27 }
 0x269   : > { %v5747_v37 = vsub.f32 %v5745_v36, %v5746_v61  ;;  %v4755_v56 = vadd.f32 %v1136_v50, %v1135_v48  ;;  %v5748_v18 = vld [vmem:[#allocation65_spill] sm:$0xff]  ;;  %v1130_v52 = vsel %vm1066_vm15, 1.0, %v5513_v2  ;;  %vm1012_vm14 = vcmp.eq.s32.totalorder %v936_v38, %v4080_v30  ;;  %v5759_v38 = vld [vmem:[#allocation75_spill] sm:$0xff]  ;;  %1753 = vadd.xlane.f32.xlu0 %v4523_v46 }
 0x26a   : > { %v4745_v35 = vmul.f32 %v5742_v42, %v1135_v48  ;;  %v5749_v25 = vsub.f32 %v5748_v18, %v5741_v44  ;;  %v5750_v42 = vld [vmem:[#allocation43_spill] sm:$0xff]  ;;  %v4769_v36 = vadd.f32 %v1130_v52, %v1129_v1  ;;  %v1139_v44 = vsel %vm1011_vm6, 1.0, %v5513_v2 }
 0x26b   : > { %v1693_v8 = vmul.f32 %v5747_v37, %v4605_v40  ;;  %v5752_v29 = vsub.f32 %v5750_v42, %v5751_v57  ;;  %v5753_v40 = vld [vmem:[#allocation45_spill] sm:$0xff]  ;;  %vm1005_vm8 = vcmp.eq.s32.totalorder %v927_v34, %v4078_v16  ;;  %vm1006_vm0 = vcmp.eq.s32.totalorder %v927_v34, %v4080_v30 }
 0x26c   : > { %v4760_v7 = vmul.f32 %v5749_v25, %v1136_v50  ;;  %v5754_v48 = vsub.f32 %v5753_v40, %v5751_v57  ;;  %v5755_v50 = vld [vmem:[#allocation66_spill] sm:$0xff]  ;;  %v5758_v57 = vsub.f32 %v5757_v19, %v5746_v61  ;;  %v1133_v34 = vsel %vm1005_vm8, 1.0, %v5513_v2  ;;  %1608 = vadd.xlane.f32.xlu1 %v4649_v3 }
 0x26d   : > { %v4766_v4 = vmul.f32 %v5752_v29, %v1129_v1  ;;  %vm5756_vm7 = vcmp.ne.s32.totalorder %v5755_v50, %v5668_v60  ;;  %v5760_v25 = vld [vmem:[#allocation46_spill] sm:$0xff]  ;;  %v5762_v29 = vld [vmem:[#allocation35_spill] sm:$0xff]  ;;  %v4801_v49 = vadd.f32 %v4641_v55, %v4593_v20  ;;  %v5766_v19 = vsub.f32 %v5608_v17, %v4222_v0  ;;  %1756 = vadd.xlane.f32.xlu0 %v4583_v39 }
 0x26e   : > { %v4774_v37 = vmul.f32 %v5754_v48, %v1130_v52  ;;  %vm1076_vm9 = vmand %vm1012_vm14, %vm5756_vm7  ;;  %v1694_v1 = vmul.f32 %v5758_v57, %v4618_v11  ;;  %v5761_v52 = vsub.f32 %v5759_v38, %v5760_v25  ;;  %vm5763_vm4 = vcmp.ne.s32.totalorder %v5762_v29, %v5668_v60  ;;  %v5764_v11 = vld [vmem:[#allocation71_spill] sm:$0xff]  ;;  %v939_v38 = vpop.permute.xlu1 %938 }
 0x26f   : > { %v1140_v18 = vsel %vm1076_vm9, 1.0, %v5513_v2  ;;  %vm1070_vm13 = vmand %vm1006_vm0, %vm5763_vm4  ;;  %v5765_v40 = vsub.f32 %v5764_v11, %v5760_v25  ;;  %v1709_v57 = vmul.f32 %v5766_v19, %v1133_v34  ;;  %v5767_v20 = vsub.f32 %v5606_v62, %v4222_v0 }
 0x270   : > { %v4793_v42 = vmul.f32 %v5761_v52, %v1139_v44  ;;  %v4803_v61 = vadd.f32 %v1140_v18, %v1139_v44  ;;  %v1134_v50 = vsel %vm1070_vm13, 1.0, %v5513_v2  ;;  %v933_v52 = vpop.permute.xlu0 %932  ;;  %vm1013_vm11 = vcmp.eq.s32.totalorder %v939_v38, %v4078_v16  ;;  %v2876_v44 = vld [vmem:[%s2989_s30 + $0x80] sm:$0xff]  ;;  %1611 = vadd.xlane.f32.xlu1 %v4632_v63 }
 0x271   : > { %v4808_v48 = vmul.f32 %v5765_v40, %v1140_v18  ;;  %v4815_v29 = vadd.f32 %v1134_v50, %v1133_v34  ;;  %v1710_v55 = vmul.f32 %v5767_v20, %v1134_v50  ;;  %vm1014_vm12 = vcmp.eq.s32.totalorder %v939_v38, %v4080_v30  ;;  %v5768_v18 = vld [vmem:[#allocation88_spill] sm:$0xff]  ;;  %1759 = vadd.xlane.f32.xlu0 %v4615_v6  ;;  %v5792_v6 = vld [vmem:[#allocation55_spill] sm:$0xff] }
 0x272   : > { %vm1965_vm10 = vcmp.ne.s32.totalorder %v2876_v44, 0  ;;  %vm5769_vm1 = vcmp.ne.s32.totalorder %v5768_v18, %v5668_v60  ;;  %v1141_v17 = vsel %vm1013_vm11, 1.0, %v5513_v2  ;;  %vm1009_vm5 = vcmp.eq.s32.totalorder %v933_v52, %v4078_v16  ;;  %v5771_v34 = vld [vmem:[#allocation60_spill] sm:$0xff]  ;;  %v942_v38 = vpop.permute.xlu1 %941 }
 0x273   : > { %vm1078_vm2 = vmand %vm1014_vm12, %vm5769_vm1  ;;  %vm1010_vm3 = vcmp.eq.s32.totalorder %v933_v52, %v4080_v30  ;;  %v4830_v0 = vadd.f32 %v1694_v1, %v1693_v8  ;;  %v5770_v13 = vsub.f32 %v5657_v12, %v4232_v32  ;;  %vm5772_vm15 = vcmp.ne.s32.totalorder %v5771_v34, %v5668_v60 }
 0x274   : > { %v1142_v62 = vsel %vm1078_vm2, 1.0, %v5513_v2  ;;  %vm1074_vm6 = vmand %vm1010_vm3, %vm5772_vm15  ;;  %v1137_v11 = vsel %vm1009_vm5, 1.0, %v5513_v2  ;;  %v4842_v40 = vadd.f32 %v4699_v31, %v4682_v54  ;;  %v5773_v27 = vsub.f32 %v3785_v47, %v4232_v32  ;;  %v948_v52 = vpop.permute.xlu0 %947  ;;  %v5775_v54 = vld [vmem:[#allocation72_spill] sm:$0xff]  ;;  %v5777_v47 = vld [vmem:[#allocation89_spill] sm:$0xff]  ;;  %1614 = vadd.xlane.f32.xlu1 %v4636_v43 }
 0x275   : > { %v1717_v25 = vmul.f32 %v5770_v13, %v1141_v17  ;;  %v4844_v50 = vadd.f32 %v1142_v62, %v1141_v17  ;;  %v1138_v1 = vsel %vm1074_vm6, 1.0, %v5513_v2  ;;  %v5774_v12 = vsub.f32 %v5613_v5, %v4224_v41 }
 0x276   : > { %v1718_v8 = vmul.f32 %v5773_v27, %v1142_v62  ;;  %v4854_v20 = vadd.f32 %v1138_v1, %v1137_v11  ;;  %v5776_v31 = vsub.f32 %v5775_v54, %v4224_v41  ;;  %vm1015_vm14 = vcmp.eq.s32.totalorder %v942_v38, %v4078_v16  ;;  %v5780_v62 = vld [vmem:[#allocation91_spill] sm:$0xff] }
 0x277   : > { %v1713_v19 = vmul.f32 %v5774_v12, %v1137_v11  ;;  %vm1016_vm7 = vcmp.eq.s32.totalorder %v942_v38, %v4080_v30  ;;  %vm5778_vm9 = vcmp.ne.s32.totalorder %v5777_v47, %v5668_v60  ;;  %v1143_v32 = vsel %vm1015_vm14, 1.0, %v5513_v2  ;;  %v945_v12 = vpop.permute.xlu1 %944 }
 0x278   : > { %v1714_v18 = vmul.f32 %v5776_v31, %v1138_v1  ;;  %vm1080_vm8 = vmand %vm1016_vm7, %vm5778_vm9  ;;  %vm1019_vm0 = vcmp.eq.s32.totalorder %v948_v52, %v4078_v16  ;;  %vm1020_vm4 = vcmp.eq.s32.totalorder %v948_v52, %v4080_v30  ;;  %v4870_v41 = vadd.f32 %v4664_v23, %v4659_v9  ;;  %v5782_v23 = vld [vmem:[#allocation79_spill] sm:$0xff]  ;;  %v5785_v52 = vld [vmem:[#allocation84_spill] sm:$0xff] }
 0x279   : > { %v1144_v5 = vsel %vm1080_vm8, 1.0, %v5513_v2  ;;  %v5779_v46 = vsub.f32 %v3804_v28, %v4241_v10  ;;  %vm5781_vm13 = vcmp.ne.s32.totalorder %v5780_v62, %v5668_v60  ;;  %v1147_v13 = vsel %vm1019_vm0, 1.0, %v5513_v2  ;;  %v5803_v62 = vld [vmem:[#allocation77_spill] sm:$0xff] }
 0x27a   : > { %vm1084_vm11 = vmand %vm1020_vm4, %vm5781_vm13  ;;  %v4882_v34 = vadd.f32 %v4732_v14, %v4725_v15  ;;  %v4884_v3 = vadd.f32 %v1144_v5, %v1143_v32  ;;  %v5783_v9 = vsub.f32 %v5782_v23, %v4241_v10  ;;  %v5784_v28 = vsub.f32 %v5621_v51, %v4288_v21  ;;  %v5787_v10 = vld [vmem:[#allocation90_spill] sm:$0xff] }
 0x27b   : > { %v1719_v17 = vmul.f32 %v5779_v46, %v1143_v32  ;;  %v1148_v27 = vsel %vm1084_vm11, 1.0, %v5513_v2  ;;  %v5786_v15 = vsub.f32 %v5785_v52, %v4288_v21  ;;  %vm1017_vm12 = vcmp.eq.s32.totalorder %v945_v12, %v4078_v16  ;;  %v2877_v32 = vld [vmem:[%s2989_s30 + $0x88] sm:$0xff]  ;;  %v5800_v46 = vld [vmem:[#allocation108_spill] sm:$0xff]  ;;  %v5804_v23 = vld [vmem:[#allocation78_spill] sm:$0xff] }
 0x27c   : > { %v1720_v11 = vmul.f32 %v5783_v9, %v1144_v5  ;;  %v1723_v1 = vmul.f32 %v5784_v28, %v1147_v13  ;;  %v4894_v38 = vadd.f32 %v1148_v27, %v1147_v13  ;;  %vm1018_vm1 = vcmp.eq.s32.totalorder %v945_v12, %v4080_v30  ;;  %v5799_v5 = vld [vmem:[#allocation110_spill] sm:$0xff] }
 0x27d   : > { %v1724_v14 = vmul.f32 %v5786_v15, %v1148_v27  ;;  %vm5788_vm2 = vcmp.ne.s32.totalorder %v5787_v10, %v5668_v60  ;;  %v1145_v51 = vsel %vm1017_vm12, 1.0, %v5513_v2  ;;  %v4908_v39 = vadd.f32 %v4694_v58, %v4673_v33  ;;  %v5807_v12 = vld [vmem:[#allocation14_spill] sm:$0xff] }
 0x27e   : > { %vm1082_vm5 = vmand %vm1018_vm1, %vm5788_vm2  ;;  %v4912_v21 = vadd.f32 %v4774_v37, %v4766_v4  ;;  %v4916_v16 = vadd.f32 %v4716_v53, %v4711_v22  ;;  %v5789_v60 = vsub.f32 %v5671_v24, %v4271_v26  ;;  %v4922_v31 = vadd.f32 %v1710_v55, %v1709_v57  ;;  %v5790_v4 = vld [vmem:[#allocation83_spill] sm:$0xff]  ;;  %v5793_v55 = vld [vmem:[#allocation73_spill] sm:$0xff] }
 0x27f   : > { %v1146_v30 = vsel %vm1082_vm5, 1.0, %v5513_v2  ;;  %v4926_v33 = vadd.f32 %v4760_v7, %v4745_v35  ;;  %v5791_v58 = vsub.f32 %v5790_v4, %v4271_v26  ;;  %v4934_v53 = vadd.f32 %v1714_v18, %v1713_v19  ;;  %v5796_v19 = vld [vmem:[#allocation56_spill] sm:$0xff]  ;;  %v5797_v18 = vld [vmem:[#allocation74_spill] sm:$0xff] }
 0x280   : > { %v1721_v54 = vmul.f32 %v5789_v60, %v1145_v51  ;;  %v4928_v63 = vadd.f32 %v1146_v30, %v1145_v51  ;;  %v4936_v37 = vadd.f32 %v1718_v8, %v1717_v25  ;;  %v4940_v24 = vsel %vm1965_vm10, 1.0, %v5513_v2  ;;  %v5794_v25 = vld [vmem:[#allocation42_spill] sm:$0xff] }
 0x281   : > { %v1722_v22 = vmul.f32 %v5791_v58, %v1146_v30  ;;  %v4944_v7 = vadd.f32 %v4808_v48, %v4793_v42  ;;  %v4946_v35 = vadd.f32 %v1720_v11, %v1719_v17  ;;  %v4948_v57 = vadd.f32 %v1724_v14, %v1723_v1  ;;  %v5802_v17 = vld [vmem:[#allocation50_spill] sm:$0xff]  ;;  %v5806_v1 = vld [vmem:[#allocation57_spill] sm:$0xff]  ;;  %v5809_v30 = vld [vmem:[#allocation80_spill] sm:$0xff] }
 0x282   : > { %v1761_v26 = vadd.f32 %v4588_v59, %v4654_v45  ;;  %v5795_v8 = vsub.f32 %v5793_v55, %v5794_v25  ;;  %v5798_v47 = vsub.f32 %v5797_v18, %v5794_v25  ;;  %vm1966_vm10 = vcmp.ne.s32.totalorder %v2877_v32, 0  ;;  %v5801_v45 = vld [vmem:[#allocation52_spill] sm:$0xff]  ;;  %1617 = vadd.xlane.f32.xlu1 %v5806_v1  ;;  %v5808_v15 = vld [vmem:[#allocation62_spill] sm:$0xff] }
 0x283   : > { %v4961_v48 = vadd.f32 %v1722_v22, %v1721_v54  ;;  %v2076_v59 = vadd.f32 %v5800_v46, %v5799_v5  ;;  %v1468_v43 = vmul.f32 0.6931472, %v5801_v45  ;;  %v1529_v13 = vsub.f32 %v5803_v62, %v5802_v17  ;;  %v2878_v10 = vld [vmem:[%s2989_s30 + $0x90] sm:$0xff]  ;;  %v5816_v5 = vld [vmem:[#allocation61_spill] sm:$0xff]  ;;  %v2880_v46 = vld [vmem:[%s2989_s30 + $0xa0] sm:$0xff] }
 0x284   : > { %v1687_v44 = vmul.f32 %v5795_v8, %v5792_v6  ;;  %v1688_v42 = vmul.f32 %v5798_v47, %v5796_v19  ;;  %1762 = vadd.xlane.f32.xlu0 %v1761_v26  ;;  %v1530_v9 = vsub.f32 %v5804_v23, %v5802_v17  ;;  %vm5805_vm3 = vcmask 7168   ;;  %v5810_v54 = vld [vmem:[#allocation82_spill] sm:$0xff]  ;;  %v5812_v6 = vld [vmem:[#allocation76_spill] sm:$0xff]  ;;  %v2879_v19 = vld [vmem:[%s2989_s30 + $0x98] sm:$0xff] }
 0x285   : > { %v2077_v11 = vsel %vm5805_vm3, %v4940_v24, 0.0  ;;  %v4974_v27 = vsel %vm1966_vm10, 1.0, %v5513_v2  ;;  %v1689_v52 = vmul.f32 %v1529_v13, %v5807_v12  ;;  %vm1967_vm15 = vcmp.ne.s32.totalorder %v2878_v10, 0  ;;  %vm5811_vm6 = vmmov %vm5805_vm3  ;;  %v5813_v55 = vld [vmem:[#allocation58_spill] sm:$0xff]  ;;  %v5818_v17 = vld [vmem:[#allocation16_spill] sm:$0xff] }
 0x286   : > { %v1764_v28 = vadd.f32 %v1688_v42, %v1687_v44  ;;  %v1690_v14 = vmul.f32 %v1530_v9, %v5808_v15  ;;  %v2078_v51 = vadd.f32 %v2077_v11, %v2076_v59  ;;  %v1531_v60 = vsub.f32 %v5809_v30, %v1468_v43  ;;  %1620 = vadd.xlane.f32.xlu1 %v5812_v6  ;;  %v5814_v8 = vld [vmem:[#allocation10_spill] sm:$0xff]  ;;  %vm5815_vm7 = vmmov %vm5805_vm3  ;;  %v2881_v62 = vld [vmem:[%s2989_s30 + $0xa8] sm:$0xff] }
 0x287   : > { %v1532_v4 = vsub.f32 %v5810_v54, %v1468_v43  ;;  %v2079_v58 = vsel %vm5811_vm6, %v4974_v27, 0.0  ;;  %v4985_v22 = vsel %vm1967_vm15, 1.0, %v5513_v2  ;;  %vm1968_vm14 = vcmp.ne.s32.totalorder %v2879_v19, 0  ;;  %vm5817_vm8 = vmmov %vm5805_vm3  ;;  %v5820_v11 = vld [vmem:[#allocation12_spill] sm:$0xff] }
 0x288   : > { %1765 = vadd.xlane.f32.xlu0 %v1764_v28  ;;  %v1767_v26 = vadd.f32 %v1690_v14, %v1689_v52  ;;  %v1691_v25 = vmul.f32 %v1531_v60, %v5813_v55  ;;  %v2080_v18 = vadd.f32 %v2079_v58, %v2078_v51  ;;  %v2081_v47 = vsel %vm5815_vm7, %v4985_v22, 0.0  ;;  %vm5819_vm4 = vmmov %vm5805_vm3  ;;  %v2882_v28 = vld [vmem:[%s2989_s30 + $0xb0] sm:$0xff]  ;;  %v2884_v51 = vld [vmem:[%s2989_s30 + $0xc0] sm:$0xff] }
 0x289   : > { %v1692_v44 = vmul.f32 %v1532_v4, %v5814_v8  ;;  %v4994_v42 = vsel %vm1968_vm14, 1.0, %v5513_v2  ;;  %vm1969_vm9 = vcmp.ne.s32.totalorder %v2880_v46, 0  ;;  %vm1970_vm0 = vcmp.ne.s32.totalorder %v2881_v62, 0  ;;  %vm5821_vm11 = vmmov %vm5805_vm3 }
 0x28a   : > { %1623 = vadd.xlane.f32.xlu1 %v5816_v5  ;;  %v2082_v59 = vadd.f32 %v2081_v47, %v2080_v18  ;;  %v2083_v45 = vsel %vm5817_vm8, %v4994_v42, 0.0  ;;  %v5001_v43 = vsel %vm1969_vm9, 1.0, %v5513_v2  ;;  %v5009_v9 = vsel %vm1970_vm0, 1.0, %v5513_v2  ;;  %vm5822_vm1 = vmmov %vm5805_vm3 }
 0x28b   : > { %v1770_v32 = vadd.f32 %v1692_v44, %v1691_v25  ;;  %v2085_v23 = vsel %vm5819_vm4, %v5001_v43, 0.0  ;;  %vm1971_vm13 = vcmp.ne.s32.totalorder %v2882_v28, 0  ;;  %v2087_v12 = vsel %vm5821_vm11, %v5009_v9, 0.0  ;;  %vm5824_vm5 = vmmov %vm5822_vm1 }
 0x28c   : > { %1768 = vadd.xlane.f32.xlu0 %v1767_v26  ;;  %v2084_v13 = vadd.f32 %v2083_v45, %v2082_v59  ;;  %v5017_v52 = vsel %vm1971_vm13, 1.0, %v5513_v2  ;;  %vm1973_vm2 = vcmp.ne.s32.totalorder %v2884_v51, 0  ;;  %vm5825_vm3 = vmmov %vm5822_vm1 }
 0x28d   : > { %v2089_v14 = vsel %vm5822_vm1, %v5017_v52, 0.0  ;;  %v5033_v60 = vsel %vm1973_vm2, 1.0, %v5513_v2  ;;  %vm5826_vm6 = vmmov %vm5822_vm1 }
 0x28e   : > { %1626 = vadd.xlane.f32.xlu1 %v5818_v17  ;;  %v2086_v1 = vadd.f32 %v2085_v23, %v2084_v13  ;;  %v2093_v4 = vsel %vm5825_vm3, %v5033_v60, 0.0  ;;  %vm5827_vm7 = vmmov %vm5822_vm1 }
 0x28f   : > { %vm5828_vm8 = vmmov %vm5822_vm1 }
 0x290   : > { %1771 = vadd.xlane.f32.xlu0 %v1770_v32  ;;  %v2088_v15 = vadd.f32 %v2087_v12, %v2086_v1  ;;  %vm5829_vm4 = vmmov %vm5822_vm1 }
 0x291   : > { %vm5830_vm11 = vmmov %vm5822_vm1 }
 0x292   : > { %1629 = vadd.xlane.f32.xlu1 %v5820_v11  ;;  %v2090_v30 = vadd.f32 %v2089_v14, %v2088_v15  ;;  %vm5831_vm2 = vmmov %vm5822_vm1 }
 0x293   : > { %vm5838_vm3 = vmmov %vm5822_vm1 }
 0x294   : > { %1774 = vadd.xlane.f32.xlu0 %v4830_v0  ;;  %v2883_v0 = vld [vmem:[%s2989_s30 + $0xb8] sm:$0xff] }
 0x295   : > { %vm1972_vm12 = vcmp.ne.s32.totalorder %v2883_v0, 0 }
 0x296   : > { %1632 = vadd.xlane.f32.xlu1 %v4769_v36  ;;  %v5025_v10 = vsel %vm1972_vm12, 1.0, %v5513_v2 }
 0x297   : > { %v2091_v36 = vsel %vm5824_vm5, %v5025_v10, 0.0  ;;  %vm5834_vm5 = vmmov %vm5822_vm1 }
 0x298   : > { %1777 = vadd.xlane.f32.xlu0 %v4801_v49  ;;  %v5823_v49 = vld [vmem:[#allocation18_spill] sm:$0xff]  ;;  %v2092_v54 = vadd.f32 %v2091_v36, %v2090_v30 }
 0x29a   : > { %1635 = vadd.xlane.f32.xlu1 %v5823_v49  ;;  %v2094_v26 = vadd.f32 %v2093_v4, %v2092_v54 }
 0x29c   : > { %1780 = vadd.xlane.f32.xlu0 %v4842_v40  ;;  %v2885_v40 = vld [vmem:[%s2989_s30 + $0xc8] sm:$0xff] }
 0x29d   : > { %vm1974_vm10 = vcmp.ne.s32.totalorder %v2885_v40, 0 }
 0x29e   : > { %1638 = vadd.xlane.f32.xlu1 %v4815_v29  ;;  %v5041_v58 = vsel %vm1974_vm10, 1.0, %v5513_v2  ;;  %vm5835_vm10 = vmmov %vm5822_vm1 }
 0x29f   : > { %v2095_v29 = vsel %vm5826_vm6, %v5041_v58, 0.0  ;;  %vm5842_vm6 = vmmov %vm5822_vm1 }
 0x2a0   : > { %1783 = vadd.xlane.f32.xlu0 %v4870_v41  ;;  %v2886_v41 = vld [vmem:[%s2989_s30 + $0xd0] sm:$0xff]  ;;  %v2096_v55 = vadd.f32 %v2095_v29, %v2094_v26 }
 0x2a1   : > { %vm1975_vm15 = vcmp.ne.s32.totalorder %v2886_v41, 0 }
 0x2a2   : > { %1641 = vadd.xlane.f32.xlu1 %v4755_v56  ;;  %v5049_v6 = vsel %vm1975_vm15, 1.0, %v5513_v2  ;;  %vm5840_vm15 = vmmov %vm5822_vm1 }
 0x2a3   : > { %v2097_v56 = vsel %vm5827_vm7, %v5049_v6, 0.0  ;;  %vm5846_vm7 = vmmov %vm5822_vm1 }
 0x2a4   : > { %1786 = vadd.xlane.f32.xlu0 %v4882_v34  ;;  %v2887_v34 = vld [vmem:[%s2989_s30 + $0xd8] sm:$0xff]  ;;  %v2098_v8 = vadd.f32 %v2097_v56, %v2096_v55 }
 0x2a5   : > { %vm1976_vm14 = vcmp.ne.s32.totalorder %v2887_v34, 0 }
 0x2a6   : > { %1644 = vadd.xlane.f32.xlu1 %v4854_v20  ;;  %v5057_v25 = vsel %vm1976_vm14, 1.0, %v5513_v2  ;;  %vm5845_vm14 = vmmov %vm5822_vm1 }
 0x2a7   : > { %v2099_v20 = vsel %vm5828_vm8, %v5057_v25, 0.0  ;;  %vm5850_vm8 = vmmov %vm5822_vm1 }
 0x2a8   : > { %1789 = vadd.xlane.f32.xlu0 %v4908_v39  ;;  %v2888_v39 = vld [vmem:[%s2989_s30 + $0xe0] sm:$0xff]  ;;  %v2100_v19 = vadd.f32 %v2099_v20, %v2098_v8 }
 0x2a9   : > { %vm1977_vm9 = vcmp.ne.s32.totalorder %v2888_v39, 0 }
 0x2aa   : > { %1647 = vadd.xlane.f32.xlu1 %v4803_v61  ;;  %v5065_v44 = vsel %vm1977_vm9, 1.0, %v5513_v2  ;;  %vm5848_vm9 = vmmov %vm5822_vm1 }
 0x2ab   : > { %v2101_v61 = vsel %vm5829_vm4, %v5065_v44, 0.0 }
 0x2ac   : > { %1792 = vadd.xlane.f32.xlu0 %v4912_v21  ;;  %v2889_v21 = vld [vmem:[%s2989_s30 + $0xe8] sm:$0xff]  ;;  %v2102_v47 = vadd.f32 %v2101_v61, %v2100_v19 }
 0x2ad   : > { %vm1978_vm0 = vcmp.ne.s32.totalorder %v2889_v21, 0 }
 0x2ae   : > { %1650 = vadd.xlane.f32.xlu1 %v4844_v50  ;;  %v5073_v18 = vsel %vm1978_vm0, 1.0, %v5513_v2  ;;  %vm5852_vm0 = vmmov %vm5822_vm1 }
 0x2af   : > { %v2103_v50 = vsel %vm5830_vm11, %v5073_v18, 0.0  ;;  %vm5854_vm4 = vmmov %vm5852_vm0 }
 0x2b0   : > { %1795 = vadd.xlane.f32.xlu0 %v4916_v16  ;;  %v2890_v16 = vld [vmem:[%s2989_s30 + $0xf0] sm:$0xff]  ;;  %v2104_v5 = vadd.f32 %v2103_v50, %v2102_v47  ;;  %vm5858_vm11 = vmmov %vm5852_vm0 }
 0x2b1   : > { %vm1979_vm13 = vcmp.ne.s32.totalorder %v2890_v16, 0 }
 0x2b2   : > { %1653 = vadd.xlane.f32.xlu1 %v4884_v3  ;;  %v5081_v32 = vsel %vm1979_vm13, 1.0, %v5513_v2  ;;  %vm5856_vm13 = vmmov %vm5852_vm0 }
 0x2b3   : > { %v2105_v3 = vsel %vm5822_vm1, %v5081_v32, 0.0  ;;  %vm5862_vm1 = vmmov %vm5852_vm0 }
 0x2b4   : > { %1798 = vadd.xlane.f32.xlu0 %v4922_v31  ;;  %v2891_v31 = vld [vmem:[%s2989_s30 + $0xf8] sm:$0xff] }
 0x2b5   : > { %vm1980_vm12 = vcmp.ne.s32.totalorder %v2891_v31, 0 }
 0x2b6   : > { %1656 = vadd.xlane.f32.xlu1 %v4928_v63  ;;  %v5089_v46 = vsel %vm1980_vm12, 1.0, %v5513_v2  ;;  %vm5860_vm12 = vmmov %vm5852_vm0 }
 0x2b7   : > { %v2107_v59 = vsel %vm5831_vm2, %v5089_v46, 0.0  ;;  %vm5863_vm2 = vmmov %vm5852_vm0 }
 0x2b8   : > { %1801 = vadd.xlane.f32.xlu0 %v4926_v33  ;;  %v2106_v33 = vadd.f32 %v2105_v3, %v2104_v5 }
 0x2ba   : > { %1659 = vadd.xlane.f32.xlu1 %v4894_v38  ;;  %v2108_v63 = vadd.f32 %v2107_v59, %v2106_v33 }
 0x2bc   : > { %1804 = vadd.xlane.f32.xlu0 %v4934_v53 }
 0x2be   : > { %1807 = vadd.xlane.f32.xlu1 %v4944_v7  ;;  %v1570_v38 = vpop.xlane.xlu0 %1569 }
 0x2bf   : > { %v1854_v54 = vmax.f32 %v1570_v38, 1.0 }
 0x2c0   : > { %1810 = vadd.xlane.f32.xlu0 %v4936_v37 }
 0x2c2   : > { %1813 = vadd.xlane.f32.xlu1 %v4946_v35 }
 0x2c3   : > { %v1567_v2 = vpop.xlane.xlu1 %1566 }
 0x2c4   : > { %1816 = vadd.xlane.f32.xlu0 %v4961_v48  ;;  %v1853_v36 = vmax.f32 %v1567_v2, 1.0 }
 0x2c6   : > { %1819 = vadd.xlane.f32.xlu1 %v4948_v57  ;;  %2810 = vrcp.f32 %v1853_v36 }
 0x2c7   : > { %v1573_v53 = vpop.xlane.xlu1 %1572  ;;  %2812 = vrcp.f32 %v1854_v54 }
 0x2c8   : > { %2109 = vadd.xlane.f32.xlu0 %v2108_v63  ;;  %v1855_v26 = vmax.f32 %v1573_v53, 1.0  ;;  %v5832_v53 = vld [vmem:[#allocation93_spill] sm:$0xff] }
 0x2ca   : > { %2814 = vrcp.f32 %v1855_v26 }
 0x2cb   : > { %v1576_v45 = vpop.xlane.xlu1 %1575 }
 0x2cc   : > { %v1856_v34 = vmax.f32 %v1576_v45, 1.0 }
 0x2ce   : > { %2816 = vrcp.f32 %v1856_v34 }
 0x2cf   : > { %v1579_v17 = vpop.xlane.xlu1 %1578  ;;  %v1585_v62 = vpop.xlane.xlu0 %1584 }
 0x2d0   : > { %v1857_v56 = vmax.f32 %v1579_v17, 1.0  ;;  %v2811_v61 = vpop.eup %2810  ;;  %v1859_v16 = vmax.f32 %v1585_v62, 1.0 }
 0x2d1   : > { %v2813_v5 = vpop.eup %2812 }
 0x2d2   : > { %2818 = vrcp.f32 %v1857_v56 }
 0x2d3   : > { %v1582_v37 = vpop.xlane.xlu1 %1581 }
 0x2d4   : > { %v1730_v13 = vpop.xlane.xlu0 %1729  ;;  %v1858_v20 = vmax.f32 %v1582_v37, 1.0  ;;  %v2815_v17 = vpop.eup %2814 }
 0x2d5   : > { %v1822_v19 = vsub.f32 0.0, %v1730_v13  ;;  %v5833_v13 = vld [vmem:[#allocation92_spill] sm:$0xff] }
 0x2d6   : > { %2820 = vrcp.f32 %v1858_v20 }
 0x2d7   : > { %v1727_v23 = vpop.xlane.xlu1 %1726  ;;  %v1888_v33 = vmul.f32 %v2813_v5, %v1822_v19  ;;  %2822 = vrcp.f32 %v1859_v16 }
 0x2d8   : > { %v1733_v11 = vpop.xlane.xlu0 %1732  ;;  %v1821_v8 = vsub.f32 0.0, %v1727_v23  ;;  %v2817_v54 = vpop.eup %2816 }
 0x2d9   : > { %v1823_v59 = vsub.f32 0.0, %v1733_v11  ;;  %v2119_v23 = vmul.f32 %v5833_v13, %v1888_v33  ;;  %v5837_v33 = vld [vmem:[#allocation95_spill] sm:$0xff] }
 0x2da   : > { %v1886_v50 = vmul.f32 %v2811_v61, %v1821_v8 }
 0x2db   : > { %v1588_v28 = vpop.xlane.xlu1 %1587  ;;  %v2151_v20 = vsel %vm5835_vm10, %v2119_v23, 0.0  ;;  %vm5865_vm10 = vmmov %vm5852_vm0 }
 0x2dc   : > { %v1736_v7 = vpop.xlane.xlu0 %1735  ;;  %v1860_v31 = vmax.f32 %v1588_v28, 1.0  ;;  %v2118_v45 = vmul.f32 %v5832_v53, %v1886_v50  ;;  %v1890_v28 = vmul.f32 %v2815_v17, %v1823_v59  ;;  %v2819_v56 = vpop.eup %2818  ;;  %v5839_v17 = vld [vmem:[#allocation96_spill] sm:$0xff] }
 0x2dd   : > { %v1824_v38 = vsub.f32 0.0, %v1736_v7 }
 0x2de   : > { %2824 = vrcp.f32 %v1860_v31  ;;  %v2150_v26 = vsel %vm5834_vm5, %v2118_v45, 0.0  ;;  %vm5864_vm5 = vmmov %vm5852_vm0 }
 0x2df   : > { %v1591_v1 = vpop.xlane.xlu1 %1590  ;;  %v1892_v34 = vmul.f32 %v2817_v54, %v1824_v38  ;;  %v2152_v50 = vadd.f32 %v2151_v20, %v2150_v26 }
 0x2e0   : > { %v5099_v48 = vpop.xlane.xlu0 %1738  ;;  %v1861_v63 = vmax.f32 %v1591_v1, 1.0  ;;  %v2821_v16 = vpop.eup %2820 }
 0x2e1   : > { %v1825_v36 = vsub.f32 0.0, %v5099_v48  ;;  %v5836_v48 = vld [vmem:[#allocation94_spill] sm:$0xff] }
 0x2e2   : > { %2826 = vrcp.f32 %v1861_v63  ;;  %v2120_v19 = vmul.f32 %v5836_v48, %v1890_v28  ;;  %v2823_v63 = vpop.eup %2822 }
 0x2e3   : > { %v1894_v61 = vmul.f32 %v2819_v56, %v1825_v36 }
 0x2e4   : > { %v1594_v12 = vpop.xlane.xlu1 %1593  ;;  %v5101_v35 = vpop.xlane.xlu0 %1741 }
 0x2e5   : > { %v1862_v62 = vmax.f32 %v1594_v12, 1.0  ;;  %v1826_v7 = vsub.f32 0.0, %v5101_v35 }
 0x2e7   : > { %2828 = vrcp.f32 %v1862_v62  ;;  %v1896_v59 = vmul.f32 %v2821_v16, %v1826_v7  ;;  %v2122_v62 = vmul.f32 %v5839_v17, %v1894_v61 }
 0x2e8   : > { %v5103_v0 = vpop.xlane.xlu1 %1596  ;;  %v2825_v38 = vpop.eup %2824 }
 0x2e9   : > { %v5105_v57 = vpop.xlane.xlu0 %1744  ;;  %v1863_v11 = vmax.f32 %v5103_v0, 1.0 }
 0x2ea   : > { %v1827_v0 = vsub.f32 0.0, %v5105_v57  ;;  %v2153_v57 = vsel %vm5838_vm3, %v2120_v19, 0.0  ;;  %vm5866_vm3 = vmmov %vm5852_vm0 }
 0x2eb   : > { %2830 = vrcp.f32 %v1863_v11 }
 0x2ec   : > { %v1898_v13 = vmul.f32 %v2823_v63, %v1827_v0  ;;  %v5844_v0 = vld [vmem:[#allocation99_spill] sm:$0xff] }
 0x2ed   : > { %v5107_v15 = vpop.xlane.xlu1 %1599 }
 0x2ee   : > { %v5109_v14 = vpop.xlane.xlu0 %1747  ;;  %v1864_v12 = vmax.f32 %v5107_v15, 1.0  ;;  %v2121_v15 = vmul.f32 %v5837_v33, %v1892_v34  ;;  %v2827_v34 = vpop.eup %2826 }
 0x2ef   : > { %v1828_v31 = vsub.f32 0.0, %v5109_v14 }
 0x2f0   : > { %2832 = vrcp.f32 %v1864_v12  ;;  %v2155_v54 = vsel %vm5840_vm15, %v2121_v15, 0.0  ;;  %v5843_v12 = vld [vmem:[#allocation98_spill] sm:$0xff]  ;;  %vm5867_vm15 = vmmov %vm5852_vm0 }
 0x2f1   : > { %v5111_v49 = vpop.xlane.xlu1 %1602  ;;  %v1900_v23 = vmul.f32 %v2825_v38, %v1828_v31  ;;  %v2124_v20 = vmul.f32 %v5843_v12, %v1898_v13  ;;  %v2829_v19 = vpop.eup %2828 }
 0x2f2   : > { %v5113_v51 = vpop.xlane.xlu0 %1750  ;;  %v1865_v35 = vmax.f32 %v5111_v49, 1.0  ;;  %v2154_v49 = vadd.f32 %v2153_v57, %v2152_v50 }
 0x2f3   : > { %v1829_v14 = vsub.f32 0.0, %v5113_v51  ;;  %v2157_v51 = vsel %vm5842_vm6, %v2122_v62, 0.0  ;;  %v2125_v16 = vmul.f32 %v5844_v0, %v1900_v23  ;;  %v2161_v63 = vsel %vm5846_vm7, %v2124_v20, 0.0  ;;  %vm5868_vm6 = vmmov %vm5852_vm0 }
 0x2f4   : > { %2834 = vrcp.f32 %v1865_v35  ;;  %v2156_v61 = vadd.f32 %v2155_v54, %v2154_v49  ;;  %vm5870_vm7 = vmmov %vm5852_vm0 }
 0x2f5   : > { %v5115_v30 = vpop.xlane.xlu1 %1605  ;;  %v1902_v48 = vmul.f32 %v2827_v34, %v1829_v14  ;;  %v2831_v15 = vpop.eup %2830  ;;  %v2163_v13 = vsel %vm5848_vm9, %v2125_v16, 0.0  ;;  %v5849_v14 = vld [vmem:[#allocation101_spill] sm:$0xff]  ;;  %v5851_v34 = vld [vmem:[#allocation102_spill] sm:$0xff]  ;;  %vm5871_vm9 = vmmov %vm5852_vm0 }
 0x2f6   : > { %v5117_v40 = vpop.xlane.xlu0 %1753  ;;  %v1866_v53 = vmax.f32 %v5115_v30, 1.0  ;;  %v5841_v30 = vld [vmem:[#allocation97_spill] sm:$0xff] }
 0x2f7   : > { %v2123_v11 = vmul.f32 %v5841_v30, %v1896_v59  ;;  %v1830_v26 = vsub.f32 0.0, %v5117_v40  ;;  %v2158_v59 = vadd.f32 %v2157_v51, %v2156_v61 }
 0x2f8   : > { %2836 = vrcp.f32 %v1866_v53  ;;  %v5847_v53 = vld [vmem:[#allocation100_spill] sm:$0xff] }
 0x2f9   : > { %v5119_v4 = vpop.xlane.xlu1 %1608  ;;  %v1904_v31 = vmul.f32 %v2829_v19, %v1830_v26  ;;  %v2126_v38 = vmul.f32 %v5847_v53, %v1902_v48  ;;  %v5853_v19 = vld [vmem:[#allocation103_spill] sm:$0xff] }
 0x2fa   : > { %v5121_v41 = vpop.xlane.xlu0 %1756  ;;  %v1867_v28 = vmax.f32 %v5119_v4, 1.0  ;;  %v2833_v17 = vpop.eup %2832 }
 0x2fb   : > { %v1831_v4 = vsub.f32 0.0, %v5121_v41  ;;  %v2127_v49 = vmul.f32 %v5849_v14, %v1904_v31 }
 0x2fc   : > { %2838 = vrcp.f32 %v1867_v28 }
 0x2fd   : > { %v5123_v29 = vpop.xlane.xlu1 %1611  ;;  %v1906_v57 = vmul.f32 %v2831_v15, %v1831_v4 }
 0x2fe   : > { %v5125_v55 = vpop.xlane.xlu0 %1759  ;;  %v1868_v7 = vmax.f32 %v5123_v29, 1.0  ;;  %v2159_v29 = vsel %vm5845_vm14, %v2123_v11, 0.0  ;;  %v2835_v54 = vpop.eup %2834  ;;  %vm5869_vm14 = vmmov %vm5852_vm0 }
 0x2ff   : > { %v1832_v35 = vsub.f32 0.0, %v5125_v55  ;;  %v2160_v62 = vadd.f32 %v2159_v29, %v2158_v59 }
 0x300   : > { %2840 = vrcp.f32 %v1868_v7  ;;  %v2128_v7 = vmul.f32 %v5851_v34, %v1906_v57 }
 0x301   : > { %v5127_v39 = vpop.xlane.xlu1 %1614  ;;  %v1908_v23 = vmul.f32 %v2833_v17, %v1832_v35  ;;  %v2162_v30 = vadd.f32 %v2161_v63, %v2160_v62  ;;  %v5855_v35 = vld [vmem:[#allocation104_spill] sm:$0xff] }
 0x302   : > { %v1869_v40 = vmax.f32 %v5127_v39, 1.0  ;;  %v2837_v12 = vpop.eup %2836 }
 0x303   : > { %v2164_v20 = vadd.f32 %v2163_v13, %v2162_v30  ;;  %v2129_v61 = vmul.f32 %v5853_v19, %v1908_v23  ;;  %v5859_v23 = vld [vmem:[#allocation106_spill] sm:$0xff] }
 0x304   : > { %2842 = vrcp.f32 %v1869_v40 }
 0x305   : > { %v2171_v57 = vsel %vm5856_vm13, %v2129_v61, 0.0  ;;  %vm5874_vm13 = vmmov %vm5852_vm0 }
 0x306   : > { %v2839_v16 = vpop.eup %2838 }
 0x30a   : > { %v2841_v59 = vpop.eup %2840 }
 0x30e   : > { %v2843_v62 = vpop.eup %2842 }
 0x30f   : > { %v5131_v47 = vpop.xlane.xlu1 %1617 }
 0x310   : > { %v1870_v33 = vmax.f32 %v5131_v47, 1.0 }
 0x311   : > { %v5129_v21 = vpop.xlane.xlu0 %1762 }
 0x312   : > { %v1833_v39 = vsub.f32 0.0, %v5129_v21  ;;  %2844 = vrcp.f32 %v1870_v33  ;;  %v2165_v21 = vsel %vm5850_vm8, %v2126_v38, 0.0  ;;  %vm5872_vm8 = vmmov %vm5852_vm0 }
 0x313   : > { %v5135_v2 = vpop.xlane.xlu1 %1620  ;;  %v2166_v40 = vadd.f32 %v2165_v21, %v2164_v20 }
 0x314   : > { %v1871_v55 = vmax.f32 %v5135_v2, 1.0  ;;  %v1910_v51 = vmul.f32 %v2835_v54, %v1833_v39  ;;  %v5857_v39 = vld [vmem:[#allocation105_spill] sm:$0xff] }
 0x315   : > { %v5133_v3 = vpop.xlane.xlu0 %1765 }
 0x316   : > { %v1834_v28 = vsub.f32 0.0, %v5133_v3  ;;  %2846 = vrcp.f32 %v1871_v55  ;;  %v2167_v3 = vsel %vm5852_vm0, %v2127_v49, 0.0  ;;  %v2130_v33 = vmul.f32 %v5855_v35, %v1910_v51 }
 0x317   : > { %v5143_v1 = vpop.xlane.xlu1 %1623  ;;  %v2168_v63 = vadd.f32 %v2167_v3, %v2166_v40 }
 0x318   : > { %v1872_v11 = vmax.f32 %v5143_v1, 1.0  ;;  %v1912_v1 = vmul.f32 %v2837_v12, %v1834_v28 }
 0x319   : > { %v5138_v37 = vpop.xlane.xlu0 %1768 }
 0x31a   : > { %v1835_v2 = vsub.f32 0.0, %v5138_v37  ;;  %2848 = vrcp.f32 %v1872_v11  ;;  %v2169_v37 = vsel %vm5854_vm4, %v2128_v7, 0.0  ;;  %v5861_v7 = vld [vmem:[#allocation107_spill] sm:$0xff]  ;;  %vm5873_vm4 = vmmov %vm5852_vm0 }
 0x31b   : > { %v5155_v5 = vpop.xlane.xlu1 %1626  ;;  %v2170_v13 = vadd.f32 %v2169_v37, %v2168_v63 }
 0x31c   : > { %v1873_v48 = vmax.f32 %v5155_v5, 1.0  ;;  %v1914_v15 = vmul.f32 %v2839_v16, %v1835_v2  ;;  %v2845_v49 = vpop.eup %2844 }
 0x31d   : > { %v5148_v8 = vpop.xlane.xlu0 %1771 }
 0x31e   : > { %v1836_v0 = vsub.f32 0.0, %v5148_v8  ;;  %2850 = vrcp.f32 %v1873_v48  ;;  %v2132_v28 = vmul.f32 %v5859_v23, %v1914_v15 }
 0x31f   : > { %v5165_v36 = vpop.xlane.xlu1 %1629 }
 0x320   : > { %v1874_v29 = vmax.f32 %v5165_v36, 1.0  ;;  %v2131_v36 = vmul.f32 %v5857_v39, %v1912_v1  ;;  %v1916_v17 = vmul.f32 %v2841_v59, %v1836_v0  ;;  %v2847_v2 = vpop.eup %2846  ;;  %v2177_v3 = vsel %vm5862_vm1, %v2132_v28, 0.0  ;;  %vm5877_vm1 = vmmov %vm5852_vm0 }
 0x321   : > { %v5159_v45 = vpop.xlane.xlu0 %1774 }
 0x322   : > { %v1837_v5 = vsub.f32 0.0, %v5159_v45  ;;  %2852 = vrcp.f32 %v1874_v29  ;;  %v2173_v45 = vsel %vm5858_vm11, %v2130_v33, 0.0  ;;  %v2175_v34 = vsel %vm5860_vm12, %v2131_v36, 0.0  ;;  %vm5875_vm11 = vmmov %vm5852_vm0 }
 0x323   : > { %v5178_v50 = vpop.xlane.xlu1 %1632  ;;  %v2133_v51 = vmul.f32 %v5861_v7, %v1916_v17  ;;  %vm5876_vm12 = vmmov %vm5852_vm0 }
 0x324   : > { %v1875_v8 = vmax.f32 %v5178_v50, 1.0  ;;  %v1918_v54 = vmul.f32 %v2843_v62, %v1837_v5  ;;  %v2172_v50 = vadd.f32 %v2171_v57, %v2170_v13  ;;  %v2849_v1 = vpop.eup %2848 }
 0x325   : > { %v5171_v56 = vpop.xlane.xlu0 %1777  ;;  %v2179_v40 = vsel %vm5863_vm2, %v2133_v51, 0.0  ;;  %vm5878_vm2 = vmmov %vm5852_vm0 }
 0x326   : > { %v1838_v53 = vsub.f32 0.0, %v5171_v56  ;;  %2854 = vrcp.f32 %v1875_v8  ;;  %v2174_v12 = vadd.f32 %v2173_v45, %v2172_v50 }
 0x327   : > { %v1636_v47 = vpop.xlane.xlu1 %1635 }
 0x328   : > { %v1876_v55 = vmax.f32 %v1636_v47, 1.0  ;;  %v1920_v30 = vmul.f32 %v2845_v49, %v1838_v53  ;;  %v2851_v37 = vpop.eup %2850 }
 0x329   : > { %v5183_v41 = vpop.xlane.xlu0 %1780 }
 0x32a   : > { %v1839_v56 = vsub.f32 0.0, %v5183_v41  ;;  %2856 = vrcp.f32 %v1876_v55  ;;  %v2134_v41 = vmul.f32 %v4940_v24, %v1918_v54  ;;  %v2135_v0 = vmul.f32 %v4974_v27, %v1920_v30 }
 0x32b   : > { %v1639_v4 = vpop.xlane.xlu1 %1638 }
 0x32c   : > { %v1877_v11 = vmax.f32 %v1639_v4, 1.0  ;;  %v1922_v19 = vmul.f32 %v2847_v2, %v1839_v56  ;;  %v2176_v4 = vadd.f32 %v2175_v34, %v2174_v12  ;;  %v2181_v5 = vsel %vm5864_vm5, %v2134_v41, 0.0  ;;  %v2853_v63 = vpop.eup %2852 }
 0x32d   : > { %v5193_v26 = vpop.xlane.xlu0 %1783  ;;  %v2183_v27 = vsel %vm5865_vm10, %v2135_v0, 0.0 }
 0x32e   : > { %v1840_v47 = vsub.f32 0.0, %v5193_v26  ;;  %2858 = vrcp.f32 %v1877_v11  ;;  %v2178_v35 = vadd.f32 %v2177_v3, %v2176_v4  ;;  %v2136_v24 = vmul.f32 %v4985_v22, %v1922_v19 }
 0x32f   : > { %v1642_v38 = vpop.xlane.xlu1 %1641 }
 0x330   : > { %v1878_v20 = vmax.f32 %v1642_v38, 1.0  ;;  %v1924_v26 = vmul.f32 %v2849_v1, %v1840_v47  ;;  %v2180_v53 = vadd.f32 %v2179_v40, %v2178_v35  ;;  %v2855_v17 = vpop.eup %2854  ;;  %v2185_v55 = vsel %vm5866_vm3, %v2136_v24, 0.0 }
 0x331   : > { %v1787_v31 = vpop.xlane.xlu0 %1786 }
 0x332   : > { %v1841_v61 = vsub.f32 0.0, %v1787_v31  ;;  %2860 = vrcp.f32 %v1878_v20  ;;  %v2137_v38 = vmul.f32 %v4994_v42, %v1924_v26  ;;  %v2182_v62 = vadd.f32 %v2181_v5, %v2180_v53 }
 0x333   : > { %v1645_v21 = vpop.xlane.xlu1 %1644 }
 0x334   : > { %v1879_v33 = vmax.f32 %v1645_v21, 1.0  ;;  %v1926_v31 = vmul.f32 %v2851_v37, %v1841_v61  ;;  %v2857_v45 = vpop.eup %2856  ;;  %v2184_v23 = vadd.f32 %v2183_v27, %v2182_v62  ;;  %v2187_v42 = vsel %vm5867_vm15, %v2137_v38, 0.0 }
 0x335   : > { %v1790_v14 = vpop.xlane.xlu0 %1789 }
 0x336   : > { %v1842_v29 = vsub.f32 0.0, %v1790_v14  ;;  %2862 = vrcp.f32 %v1879_v33  ;;  %v2138_v22 = vmul.f32 %v5001_v43, %v1926_v31  ;;  %v2186_v11 = vadd.f32 %v2185_v55, %v2184_v23 }
 0x337   : > { %v1648_v16 = vpop.xlane.xlu1 %1647 }
 0x338   : > { %v1928_v57 = vmul.f32 %v2853_v63, %v1842_v29  ;;  %v1880_v28 = vmax.f32 %v1648_v16, 1.0  ;;  %v2859_v30 = vpop.eup %2858  ;;  %v2189_v34 = vsel %vm5868_vm6, %v2138_v22, 0.0  ;;  %v2188_v2 = vadd.f32 %v2187_v42, %v2186_v11 }
 0x339   : > { %v1793_v48 = vpop.xlane.xlu0 %1792 }
 0x33a   : > { %v1843_v59 = vsub.f32 0.0, %v1793_v48  ;;  %v2139_v56 = vmul.f32 %v5009_v9, %v1928_v57  ;;  %v2190_v19 = vadd.f32 %v2189_v34, %v2188_v2 }
 0x33b   : > { %v1651_v8 = vpop.xlane.xlu1 %1650 }
 0x33c   : > { %v1881_v36 = vmax.f32 %v1651_v8, 1.0  ;;  %v1930_v14 = vmul.f32 %v2855_v17, %v1843_v59  ;;  %v2861_v47 = vpop.eup %2860  ;;  %v2191_v48 = vsel %vm5869_vm14, %v2139_v56, 0.0 }
 0x33d   : > { %v1796_v15 = vpop.xlane.xlu0 %1795  ;;  %v2192_v16 = vadd.f32 %v2191_v48, %v2190_v19 }
 0x33e   : > { %v1844_v39 = vsub.f32 0.0, %v1796_v15  ;;  %2864 = vrcp.f32 %v1881_v36  ;;  %v2140_v7 = vmul.f32 %v5017_v52, %v1930_v14 }
 0x33f   : > { %v1654_v54 = vpop.xlane.xlu1 %1653  ;;  %2866 = vrcp.f32 %v1880_v28 }
 0x340   : > { %v1932_v50 = vmul.f32 %v2857_v45, %v1844_v39  ;;  %v1882_v12 = vmax.f32 %v1654_v54, 1.0  ;;  %v2193_v1 = vsel %vm5870_vm7, %v2140_v7, 0.0  ;;  %v2863_v0 = vpop.eup %2862 }
 0x341   : > { %v1799_v13 = vpop.xlane.xlu0 %1798  ;;  %v2194_v33 = vadd.f32 %v2193_v1, %v2192_v16 }
 0x342   : > { %v1845_v49 = vsub.f32 0.0, %v1799_v13  ;;  %v2141_v3 = vmul.f32 %v5025_v10, %v1932_v50 }
 0x343   : > { %v1657_v20 = vpop.xlane.xlu1 %1656 }
 0x344   : > { %v1934_v43 = vmul.f32 %v2859_v30, %v1845_v49  ;;  %v1883_v41 = vmax.f32 %v1657_v20, 1.0  ;;  %v2195_v26 = vsel %vm5871_vm9, %v2141_v3, 0.0 }
 0x345   : > { %v1802_v21 = vpop.xlane.xlu0 %1801  ;;  %v2196_v31 = vadd.f32 %v2195_v26, %v2194_v33 }
 0x346   : > { %v1846_v51 = vsub.f32 0.0, %v1802_v21  ;;  %v2142_v4 = vmul.f32 %v5033_v60, %v1934_v43  ;;  %2868 = vrcp.f32 %v1883_v41 }
 0x347   : > { %2870 = vrcp.f32 %v1882_v12  ;;  %v1660_v40 = vpop.xlane.xlu1 %1659 }
 0x348   : > { %v1936_v9 = vmul.f32 %v2861_v47, %v1846_v51  ;;  %v1884_v10 = vmax.f32 %v1660_v40, 1.0  ;;  %v2865_v35 = vpop.eup %2864  ;;  %v2197_v5 = vsel %vm5872_vm8, %v2142_v4, 0.0 }
 0x349   : > { %v1805_v61 = vpop.xlane.xlu0 %1804  ;;  %v2867_v8 = vpop.eup %2866  ;;  %v2198_v38 = vadd.f32 %v2197_v5, %v2196_v31 }
 0x34a   : > { %v1847_v52 = vsub.f32 0.0, %v1805_v61  ;;  %v2143_v29 = vmul.f32 %v5041_v58, %v1936_v9  ;;  %2872 = vrcp.f32 %v1884_v10 }
 0x34b   : > { %v1808_v59 = vpop.xlane.xlu1 %1807 }
 0x34c   : > { %v1938_v37 = vmul.f32 %v2863_v0, %v1847_v52  ;;  %v2199_v63 = vsel %vm5852_vm0, %v2143_v29, 0.0  ;;  %v1848_v27 = vsub.f32 0.0, %v1808_v59 }
 0x34d   : > { %v1811_v15 = vpop.xlane.xlu0 %1810  ;;  %v2200_v36 = vadd.f32 %v2199_v63, %v2198_v38 }
 0x34e   : > { %v2144_v24 = vmul.f32 %v5049_v6, %v1938_v37  ;;  %v1849_v60 = vsub.f32 0.0, %v1811_v15  ;;  %v1940_v39 = vmul.f32 %v2867_v8, %v1848_v27 }
 0x34f   : > { %v1814_v13 = vpop.xlane.xlu1 %1813 }
 0x350   : > { %v1942_v53 = vmul.f32 %v2865_v35, %v1849_v60  ;;  %v2201_v57 = vsel %vm5873_vm4, %v2144_v24, 0.0  ;;  %v2869_v6 = vpop.eup %2868  ;;  %v2145_v55 = vmul.f32 %v5057_v25, %v1940_v39  ;;  %v1850_v22 = vsub.f32 0.0, %v1814_v13 }
 0x351   : > { %v1817_v58 = vpop.xlane.xlu0 %1816  ;;  %v2871_v14 = vpop.eup %2870  ;;  %v2202_v49 = vadd.f32 %v2201_v57, %v2200_v36 }
 0x352   : > { %v2146_v17 = vmul.f32 %v5065_v44, %v1942_v53  ;;  %v1851_v62 = vsub.f32 0.0, %v1817_v58  ;;  %v2203_v28 = vsel %vm5874_vm13, %v2145_v55, 0.0  ;;  %v1944_v54 = vmul.f32 %v2871_v14, %v1850_v22 }
 0x353   : > { %v2204_v50 = vadd.f32 %v2203_v28, %v2202_v49  ;;  %v1820_v30 = vpop.xlane.xlu1 %1819 }
 0x354   : > { %v1946_v45 = vmul.f32 %v2869_v6, %v1851_v62  ;;  %v2205_v56 = vsel %vm5875_vm11, %v2146_v17, 0.0  ;;  %v2873_v11 = vpop.eup %2872  ;;  %v2147_v21 = vmul.f32 %v5073_v18, %v1944_v54  ;;  %v1852_v34 = vsub.f32 0.0, %v1820_v30 }
 0x355   : > { %v2110_v23 = vpop.xlane.xlu0 %2109  ;;  %v2206_v7 = vadd.f32 %v2205_v56, %v2204_v50 }
 0x356   : > { %v2111_v42 = vrot.slane %v2110_v23, 4  ;;  %v2148_v44 = vmul.f32 %v5081_v32, %v1946_v45  ;;  %v2207_v43 = vsel %vm5876_vm12, %v2147_v21, 0.0  ;;  %v1948_v51 = vmul.f32 %v2873_v11, %v1852_v34 }
 0x357   : > { %v2208_v2 = vadd.f32 %v2207_v43, %v2206_v7 }
 0x358   : > { %v2112_v25 = vadd.f32 %v2111_v42, %v2110_v23  ;;  %v2209_v12 = vsel %vm5877_vm1, %v2148_v44, 0.0  ;;  %v2149_v20 = vmul.f32 %v5089_v46, %v1948_v51 }
 0x359   : > { %v2210_v3 = vadd.f32 %v2209_v12, %v2208_v2 }
 0x35a   : > { %v2113_v47 = vrot.slane %v2112_v25, 2  ;;  %v2211_v9 = vsel %vm5878_vm2, %v2149_v20, 0.0 }
 0x35b   : > { %v2212_v32 = vadd.f32 %v2211_v9, %v2210_v3 }
 0x35c   : > { %v2114_v48 = vadd.f32 %v2113_v47, %v2112_v25 }
 0x35d   : > { %2213 = vadd.xlane.f32.xlu1 %v2212_v32 }
 0x35e   : > { %v2115_v41 = vrot.slane %v2114_v48, 1 }
 0x360   : > { %v2116_v19 = vadd.f32 %v2115_v41, %v2114_v48 }
 0x362   : > { %2587 = vpush %v2116_v19 }
 0x393   : > { %s2588_s8 = spop %2587 }
 0x394   : > { %s2222_s10 = smax.f32 %s2935_s9, %s2588_s8 }
 0x395   : > { %v2223_v18 = vstv %s2222_s10 }
 0x396   : > { %2874 = vrcp.f32 %v2223_v18 }
 0x3a0   : > { %v2875_v40 = vpop.eup %2874 }
 0x3ea   : > { %v2214_v61 = vpop.xlane.xlu1 %2213 }
 0x3eb   : > { %v2215_v1 = vrot.slane %v2214_v61, 4 }
 0x3ed   : > { %v2216_v4 = vadd.f32 %v2215_v1, %v2214_v61 }
 0x3ef   : > { %v2217_v52 = vrot.slane %v2216_v4, 2 }
 0x3f1   : > { %v2218_v46 = vadd.f32 %v2217_v52, %v2216_v4 }
 0x3f3   : > { %v2219_v0 = vrot.slane %v2218_v46, 1 }
 0x3f5   : > { %v2220_v16 = vadd.f32 %v2219_v0, %v2218_v46 }
 0x3f7   : > { %2589 = vpush %v2220_v16 }
 0x3f8   : > { %2591 = vpush %v2875_v40 }
 0x428   : > { %s2590_s11 = spop %2589 }
 0x429   : > { %s2592_s12 = spop %2591 }
 0x42a   : > { %s2226_s15 = smul.f32 %s2592_s12, %s2590_s11 }
 0x42c   : > { %2228 = sst [smem:[%s2424_s14]] %s2226_s15 }
 0x42d PF: > { %s2425_s16 = scalar_lea.smem [#allocation4], %s2930_s20  ;;  %s2936_s18 = smov 0.0  }
 0x42e   : > { %s2426_s17 = scalar_lea.smem %s2425_s16, 4294967295 [#allocation4]  ;;  %p2600_p10 = scmp.eq.s32.totalorder %s2972_s0, 3 }
 0x42f   : > { %2594 = sst [smem:[%s2426_s17]] (%p2317_p9), %s2936_s18  ;;  %s2242_s23 = sshll.u32 %s5273_s4, 4  ;;  %s2243_s23 = int_to_ptr.vmem [resolvable:$true] %s2242_s23 }
 0x430   : > { %s2904_s24 = scalar_lea.vmem %s2243_s23, 16  ;;  %p2911_p0 = scmp.lt.s32.totalorder %s2243_s23, %s2243_s23 }
 0x431   : > { %p2905_p11 = scmp.ne.s32.totalorder %s2243_s23, %s2904_s24  ;;  %p2912_p1 = scmp.lt.s32.totalorder %s2904_s24, %s2904_s24 }
 0x433   : > { %p2906_p12 = pnand %p2905_p11, %p2600_p10  ;;  %p2913_p2 = por %p2912_p1, %p2911_p0 }
 0x435   : > { %p2907_p13 = pneg %p2906_p12 }
 0x437   : > { %p2914_p3 = pnand %p2913_p2, %p2907_p13 }
 0x439   : > { %2917 = shalt.err (!%p2914_p3)
}
 0x43a   : > { %s2937_s25 = smov [#allocation4]  }
 0x43b   : > { %2596 = dma.smem_to_vmem (%p2600_p10), %s2937_s25, 16, %s2243_s23, [#allocation5]  }
 0x43c   : > { %2925 = dma.done.wait (%p2600_p10), [#allocation5], 16  }
 0x43d   : > { %2927 = vsyncadd (%p2600_p10), [#allocation5], 4294967280 }
 0x43e   : > { %2250 = sfence }
 0x43f PF: > { %s21_s20 = sadd.s32 1, %s2930_s20  }
 0x440   : > { %p18_p4 = scmp.ge.s32.totalorder %s21_s20, 6  }
 0x442   :  { %20 = sbr.rel (!%p18_p4) target bundleno = 16 (0x10), region = 75 }
 0x449   :  { %2256 = vsyncpa [#allocation5], 1 }
 0x44a   :  { %2258 = vsyncpa [#allocation5 + $0x1], 1 }

</bundles_post_ra>
